<compile_context>
chip_gen: v7x
topology: tpu7x:2x2x1
jax: 0.10.0
libtpu: 0.0.40
codegen_flags: <defaults>
</compile_context>

<pallas_src>
import jax
import jax.numpy as jnp
from jax import lax
from jax.experimental import pallas as pl
from jax.experimental.pallas import tpu as pltpu

# ---- configuration (matches the module-level constants in TinyFoA_LC.py) ----
KERNEL_SIZE = 3
STRIDE = 1
BIAS = True
LAYER_CHANNELS = [16, 32, 64, 64]
INDEX = 1                 # layer index -> in_channels=16, out_channels=32
OUTPUT_SIZE = 8           # spatial H == W (kept small)
CLASS_NUM = 10
BATCH = 2
EPS = 1e-5                # nn.BatchNorm2d default eps


# =============================================================================
# Single fused kernel (no grid): LC binary contraction + bias  ->  BatchNorm2d
# (training-mode batch stats) -> ReLU -> Binarize (-> ReLU no-op)  ->  lastfc.
# =============================================================================
def net_more_fused_kernel(wscale_ref, x_ref, wsgn_ref, lcb_ref, gamma_ref,
                          beta_ref, fcw_ref, fcb_ref, logits_ref, xint_ref):
    # wscale_ref: (1, 1)         f32   abs-mean of raw LC weight (binarize scale)
    # x_ref:      (P, N, CK)     bf16  im2col patches, CK = Cin*K*K
    # wsgn_ref:   (P, Cout, CK)  bf16  sign(lc_weight) in {-1, 0, +1} (exact)
    # lcb_ref:    (P, 1, Cout)   f32   LC bias
    # gamma_ref:  (1, 1, Cout)   f32   BN weight
    # beta_ref:   (1, 1, Cout)   f32   BN bias
    # fcw_ref:    (P*Cout, J)    bf16  lastfc weight, row index = p*Cout + c
    # fcb_ref:    (1, J)         f32   lastfc bias
    # logits_ref: (N, J)         f32
    # xint_ref:   (N, P*Cout)    f32   lane-dense x_internal, col = p*Cout + c
    P, N, _ = x_ref.shape
    Cout = wsgn_ref.shape[1]

    s_w = wscale_ref[0, 0]

    # --- locally connected binary contraction: batched bf16 MXU matmul over P,
    #     f32 accumulation; the binarize scale is factored out of the sum.
    y = jnp.einsum("pnk,pck->pnc", x_ref[...], wsgn_ref[...],
                   preferred_element_type=jnp.float32)        # (P, N, Cout)
    y = y * s_w + lcb_ref[...]

    # --- BatchNorm2d, training-mode batch statistics (per channel over n, p),
    #     single pass: sum and sum-of-squares, folded scale/shift.
    inv_cnt = 1.0 / (P * N)
    s1 = jnp.sum(y, axis=(0, 1), keepdims=True)               # (1, 1, Cout)
    s2 = jnp.sum(y * y, axis=(0, 1), keepdims=True)
    mean = s1 * inv_cnt
    var = s2 * inv_cnt - mean * mean                          # biased variance
    bn_scale = lax.rsqrt(var + EPS) * gamma_ref[...]
    bn_shift = beta_ref[...] - mean * bn_scale
    bn = y * bn_scale + bn_shift                              # (P, N, Cout)

    # --- ReLU -> Binarize: output values are {0, s_a} with s_a = mean(relu(bn))
    #     (relu >= 0 so |relu| == relu; the outer ReLU in Net_more is a no-op).
    r = jnp.maximum(bn, 0.0)
    s_a = jnp.sum(r) * (1.0 / (P * N * Cout))                 # scalar
    vals01 = jnp.where(bn > 0.0, 1.0, 0.0).astype(jnp.float32)  # {0,1} mask

    # --- re-layout (P, N, Cout) -> lane-dense (N, P*Cout) with P static
    #     sub-vreg stores into the output buffer (no tiled-dim transpose op).
    for p in range(P):
        xint_ref[:, p * Cout:(p + 1) * Cout] = vals01[p]
    flat01 = xint_ref[...]                                    # (N, P*Cout) f32

    # --- lastfc: one (N, P*Cout) x (P*Cout, J) MXU matmul.  The {0,1} mask is
    #     exact in bf16; the binarize scale s_a is applied afterwards in f32.
    logits = jnp.dot(flat01.astype(jnp.bfloat16), fcw_ref[...],
                     preferred_element_type=jnp.float32)      # (N, J)
    logits_ref[...] = logits * s_a + fcb_ref[...]

    # --- final x_internal values {0, s_a}, one dense lane-wide store.
    xint_ref[...] = flat01 * s_a


def net_more_fused(patches_bf16, prep):
    P, N, CK = patches_bf16.shape
    Cout = prep["w_sign"].shape[1]
    J = prep["fc_b"].shape[-1]
    flops = 2 * P * N * Cout * CK + 2 * N * (P * Cout) * J
    bytes_accessed = (
        int(prep["w_scale"].size) * 4 + P * N * CK * 2 + P * Cout * CK * 2
        + P * Cout * 4 + 2 * Cout * 4 + P * Cout * J * 2 + J * 4
        + N * J * 4 + N * P * Cout * 4)
    return pl.pallas_call(
        net_more_fused_kernel,
        out_shape=(jax.ShapeDtypeStruct((N, J), jnp.float32),
                   jax.ShapeDtypeStruct((N, P * Cout), jnp.float32)),
        compiler_params=pltpu.CompilerParams(
            vmem_limit_bytes=16 * 1024 * 1024),
        cost_estimate=pl.CostEstimate(
            flops=flops, transcendentals=Cout, bytes_accessed=bytes_accessed),
    )(prep["w_scale"], patches_bf16, prep["w_sign"], prep["lc_b"],
      prep["bn_gamma"], prep["bn_beta"], prep["fc_w"], prep["fc_b"])


# =============================================================================
# Glue (plain JAX): patch extraction (== F.pad + unfold) and layout fixups.
# =============================================================================
def extract_patches(x, k):
    # x: (N, C, H, W) -> (N, C, H, W, k*k), zero 'same' padding, stride 1.
    # Tap ordering di*k + dj matches torch unfold(kh).unfold(kw).
    N, C, H, W = x.shape
    p = (k - 1) // 2
    xp = jnp.pad(x, ((0, 0), (0, 0), (p, p), (p, p)))
    pats = [xp[:, :, di:di + H, dj:dj + W]
            for di in range(k) for dj in range(k)]
    return jnp.stack(pats, axis=-1)


def net_more_forward(x, prep):
    # previous_model modeled as identity: `_, x = previous_model(x)` -> x.
    N, C_in, H, W = x.shape
    K = KERNEL_SIZE
    P = H * W
    Cout = prep["w_sign"].shape[1]

    # im2col -> (P, N, Cin*K*K), cast to bf16 (native MXU operand dtype).
    pats = extract_patches(x, K)
    pats = pats.transpose(2, 3, 0, 1, 4).reshape(P, N, C_in * K * K)
    pats = pats.astype(jnp.bfloat16)

    logits, xint_flat = net_more_fused(pats, prep)            # one fused kernel

    # xint_flat[n, (h*W + w)*Cout + c]  ->  x_internal[n, c, h, w]
    x_internal = xint_flat.reshape(N, H, W, Cout).transpose(0, 3, 1, 2)
    return logits, x_internal


# =============================================================================
# Parameters: PyTorch-native layouts + one-time (outside-jit) kernel packing.
# =============================================================================
def init_params(key):
    k1, k2, k3, k4 = jax.random.split(key, 4)
    Cin = LAYER_CHANNELS[INDEX - 1]
    Cout = LAYER_CHANNELS[INDEX]
    H = W = OUTPUT_SIZE
    K2 = KERNEL_SIZE ** 2
    F_in = Cout * H * W
    return {
        # nn.Parameter(torch.randn(1, Cout, Cin, H, W, K^2))
        "lc_w": jax.random.normal(k1, (1, Cout, Cin, H, W, K2), jnp.float32),
        # nn.Parameter(torch.randn(1, Cout, H, W))   (bias=True)
        "lc_b": jax.random.normal(k2, (1, Cout, H, W), jnp.float32),
        # nn.BatchNorm2d defaults: weight=1, bias=0
        "bn_gamma": jnp.ones((Cout,), jnp.float32),
        "bn_beta": jnp.zeros((Cout,), jnp.float32),
        # nn.Linear(F_in, class_num)
        "fc_w": 0.02 * jax.random.normal(k3, (CLASS_NUM, F_in), jnp.float32),
        "fc_b": 0.02 * jax.random.normal(k4, (CLASS_NUM,), jnp.float32),
    }


def prepare_params(params):
    """One-time packing of the parameters into kernel-friendly layouts.

    Runs once, outside the jitted forward: sign(w) is exact in bf16, the f32
    binarize scale is applied in-kernel after the contraction (matching
    binarized(w) = sign(w/s)*s, s > 0).  The lastfc weight is re-packed as a
    2-D (P*Cout, class_num) bf16 matrix whose row ordering (p*Cout + c)
    matches the kernel's lane-dense (N, P*Cout) activation.
    """
    w = params["lc_w"][0]                                   # (Cout,Cin,H,W,K2)
    Cout, Cin, H, W, K2 = w.shape
    P = H * W
    w_scale = jnp.mean(jnp.abs(params["lc_w"])).reshape(1, 1).astype(jnp.float32)
    w_sign = (jnp.sign(w).transpose(2, 3, 0, 1, 4)
              .reshape(P, Cout, Cin * K2).astype(jnp.bfloat16))
    lc_b = params["lc_b"][0].transpose(1, 2, 0).reshape(P, 1, Cout)
    # torch flatten of (N, Cout, H, W): column index = c*P + p  ->  re-pack so
    # row index = p*Cout + c.
    fc_w = (params["fc_w"].reshape(CLASS_NUM, Cout, P)
            .transpose(2, 1, 0).reshape(P * Cout, CLASS_NUM))
    return {
        "w_scale": w_scale,
        "w_sign": w_sign,
        "lc_b": lc_b.astype(jnp.float32),
        "bn_gamma": params["bn_gamma"].reshape(1, 1, Cout).astype(jnp.float32),
        "bn_beta": params["bn_beta"].reshape(1, 1, Cout).astype(jnp.float32),
        "fc_w": fc_w.astype(jnp.bfloat16),
        "fc_b": params["fc_b"].reshape(1, CLASS_NUM).astype(jnp.float32),
    }


if __name__ == "__main__":
    key = jax.random.PRNGKey(0)
    pkey, xkey = jax.random.split(key)
    params = init_params(pkey)
    prep = prepare_params(params)          # one-time packing, outside jit
    x = jax.random.normal(
        xkey,
        (BATCH, LAYER_CHANNELS[INDEX - 1], OUTPUT_SIZE, OUTPUT_SIZE),
        jnp.float32,
    )
    logits, x_internal = jax.jit(net_more_forward)(x, prep)
    jax.block_until_ready((logits, x_internal))
    assert logits.shape == (BATCH, CLASS_NUM)
    assert x_internal.shape == (
        BATCH, LAYER_CHANNELS[INDEX], OUTPUT_SIZE, OUTPUT_SIZE
    )
    print("KERNEL_OK")
</pallas_src>

<mosaic_0001>
module attributes {stable_mosaic.version = 11 : i64} {
  func.func @net_more_fused_kernel(%arg0: memref<1x1xf32, #tpu.memory_space<vmem>>, %arg1: memref<64x2x144xbf16, #tpu.memory_space<vmem>>, %arg2: memref<64x32x144xbf16, #tpu.memory_space<vmem>>, %arg3: memref<64x1x32xf32, #tpu.memory_space<vmem>>, %arg4: memref<1x1x32xf32, #tpu.memory_space<vmem>>, %arg5: memref<1x1x32xf32, #tpu.memory_space<vmem>>, %arg6: memref<2048x10xbf16, #tpu.memory_space<vmem>>, %arg7: memref<1x10xf32, #tpu.memory_space<vmem>>, %arg8: memref<2x10xf32, #tpu.memory_space<vmem>>, %arg9: memref<2x2048xf32, #tpu.memory_space<vmem>>) attributes {dimension_semantics = [], scalar_prefetch = 0 : i64, scratch_operands = 0 : i64, tpu.core_type = #tpu.core_type<tc>} {
    %c0 = arith.constant 0 : index
    %c0_0 = arith.constant 0 : index
    %0 = vector.load %arg0[%c0, %c0_0] : memref<1x1xf32, #tpu.memory_space<vmem>>, vector<1x1xf32>
    %1 = vector.extract %0[0, 0] : f32 from vector<1x1xf32>
    %c0_1 = arith.constant 0 : index
    %c0_2 = arith.constant 0 : index
    %c0_3 = arith.constant 0 : index
    %2 = vector.load %arg1[%c0_1, %c0_2, %c0_3] : memref<64x2x144xbf16, #tpu.memory_space<vmem>>, vector<64x2x144xbf16>
    %c0_4 = arith.constant 0 : index
    %c0_5 = arith.constant 0 : index
    %c0_6 = arith.constant 0 : index
    %3 = vector.load %arg2[%c0_4, %c0_5, %c0_6] : memref<64x32x144xbf16, #tpu.memory_space<vmem>>, vector<64x32x144xbf16>
    "tpu.trace_start"() <{level = 10 : i32, message = "pnk,pck->pnc"}> : () -> ()
    %cst = arith.constant dense<0.000000e+00> : vector<64x2x32xf32>
    %4 = tpu.matmul %2, %3, %cst {dimension_numbers = #tpu.dot_dimension_numbers<[2], [2], [1], [1], [0, 0, 0, 1, 1, 1], [0], [0]>} : vector<64x2x144xbf16>, vector<64x32x144xbf16>, vector<64x2x32xf32> -> vector<64x2x32xf32>
    "tpu.trace_stop"() : () -> ()
    %5 = vector.broadcast %1 : f32 to vector<64x2x32xf32>
    %6 = arith.mulf %4, %5 : vector<64x2x32xf32>
    %c0_7 = arith.constant 0 : index
    %c0_8 = arith.constant 0 : index
    %c0_9 = arith.constant 0 : index
    %7 = vector.load %arg3[%c0_7, %c0_8, %c0_9] : memref<64x1x32xf32, #tpu.memory_space<vmem>>, vector<64x1x32xf32>
    %8 = vector.broadcast %7 : vector<64x1x32xf32> to vector<64x2x32xf32>
    %9 = arith.addf %6, %8 : vector<64x2x32xf32>
    %cst_10 = arith.constant dense<0.000000e+00> : vector<32xf32>
    %10 = vector.multi_reduction <add>, %9, %cst_10 [0, 1] : vector<64x2x32xf32> to vector<32xf32>
    %11 = vector.shape_cast %10 : vector<32xf32> to vector<1x1x32xf32>
    %12 = arith.mulf %9, %9 : vector<64x2x32xf32>
    %cst_11 = arith.constant dense<0.000000e+00> : vector<32xf32>
    %13 = vector.multi_reduction <add>, %12, %cst_11 [0, 1] : vector<64x2x32xf32> to vector<32xf32>
    %14 = vector.shape_cast %13 : vector<32xf32> to vector<1x1x32xf32>
    %cst_12 = arith.constant 7.812500e-03 : f32
    %15 = vector.broadcast %cst_12 : f32 to vector<1x1x32xf32>
    %16 = arith.mulf %11, %15 : vector<1x1x32xf32>
    %cst_13 = arith.constant 7.812500e-03 : f32
    %17 = vector.broadcast %cst_13 : f32 to vector<1x1x32xf32>
    %18 = arith.mulf %14, %17 : vector<1x1x32xf32>
    %19 = arith.mulf %16, %16 : vector<1x1x32xf32>
    %20 = arith.subf %18, %19 : vector<1x1x32xf32>
    %cst_14 = arith.constant 9.99999974E-6 : f32
    %21 = vector.broadcast %cst_14 : f32 to vector<1x1x32xf32>
    %22 = arith.addf %20, %21 : vector<1x1x32xf32>
    %23 = math.rsqrt %22 : vector<1x1x32xf32>
    %c0_15 = arith.constant 0 : index
    %c0_16 = arith.constant 0 : index
    %c0_17 = arith.constant 0 : index
    %24 = vector.load %arg4[%c0_15, %c0_16, %c0_17] : memref<1x1x32xf32, #tpu.memory_space<vmem>>, vector<1x1x32xf32>
    %25 = arith.mulf %23, %24 : vector<1x1x32xf32>
    %c0_18 = arith.constant 0 : index
    %c0_19 = arith.constant 0 : index
    %c0_20 = arith.constant 0 : index
    %26 = vector.load %arg5[%c0_18, %c0_19, %c0_20] : memref<1x1x32xf32, #tpu.memory_space<vmem>>, vector<1x1x32xf32>
    %27 = arith.mulf %16, %25 : vector<1x1x32xf32>
    %28 = arith.subf %26, %27 : vector<1x1x32xf32>
    %29 = vector.broadcast %25 : vector<1x1x32xf32> to vector<64x2x32xf32>
    %30 = arith.mulf %9, %29 : vector<64x2x32xf32>
    %31 = vector.broadcast %28 : vector<1x1x32xf32> to vector<64x2x32xf32>
    %32 = arith.addf %30, %31 : vector<64x2x32xf32>
    %cst_21 = arith.constant 0.000000e+00 : f32
    %33 = vector.broadcast %cst_21 : f32 to vector<64x2x32xf32>
    %34 = arith.maximumf %32, %33 : vector<64x2x32xf32>
    %35 = vector.shape_cast %34 : vector<64x2x32xf32> to vector<1x64x2x32xf32>
    %cst_22 = arith.constant dense<0.000000e+00> : vector<1xf32>
    %36 = vector.multi_reduction <add>, %35, %cst_22 [1, 2, 3] : vector<1x64x2x32xf32> to vector<1xf32>
    %37 = vector.shape_cast %36 : vector<1xf32> to vector<1x1x1x1xf32>
    %38 = vector.extract %37[0, 0, 0, 0] : f32 from vector<1x1x1x1xf32>
    %cst_23 = arith.constant 2.44140625E-4 : f32
    %39 = arith.mulf %38, %cst_23 : f32
    %cst_24 = arith.constant 0.000000e+00 : f32
    %40 = vector.broadcast %cst_24 : f32 to vector<64x2x32xf32>
    %41 = arith.cmpf ogt, %32, %40 : vector<64x2x32xf32>
    %cst_25 = arith.constant 1.000000e+00 : f32
    %cst_26 = arith.constant 0.000000e+00 : f32
    %42 = vector.broadcast %cst_25 : f32 to vector<64x2x32xf32>
    %43 = vector.broadcast %cst_26 : f32 to vector<64x2x32xf32>
    %44 = arith.select %41, %42, %43 : vector<64x2x32xi1>, vector<64x2x32xf32>
    %45 = vector.extract_strided_slice %44 {offsets = [0, 0, 0], sizes = [1, 2, 32], strides = [1, 1, 1]} : vector<64x2x32xf32> to vector<1x2x32xf32>
    %46 = vector.shape_cast %45 : vector<1x2x32xf32> to vector<2x32xf32>
    %c0_27 = arith.constant 0 : index
    %c0_28 = arith.constant 0 : index
    %47 = vector.load %arg9[%c0_27, %c0_28] : memref<2x2048xf32, #tpu.memory_space<vmem>>, vector<2x32xf32>
    tpu.vector_store %arg9[%c0_27, %c0_28], %46 {strides = array<i32>} : memref<2x2048xf32, #tpu.memory_space<vmem>>, vector<2x32xf32>,
    %48 = vector.extract_strided_slice %44 {offsets = [1, 0, 0], sizes = [1, 2, 32], strides = [1, 1, 1]} : vector<64x2x32xf32> to vector<1x2x32xf32>
    %49 = vector.shape_cast %48 : vector<1x2x32xf32> to vector<2x32xf32>
    %c0_29 = arith.constant 0 : index
    %c32 = arith.constant 32 : index
    %50 = vector.load %arg9[%c0_29, %c32] : memref<2x2048xf32, #tpu.memory_space<vmem>>, vector<2x32xf32>
    tpu.vector_store %arg9[%c0_29, %c32], %49 {strides = array<i32>} : memref<2x2048xf32, #tpu.memory_space<vmem>>, vector<2x32xf32>,
    %51 = vector.extract_strided_slice %44 {offsets = [2, 0, 0], sizes = [1, 2, 32], strides = [1, 1, 1]} : vector<64x2x32xf32> to vector<1x2x32xf32>
    %52 = vector.shape_cast %51 : vector<1x2x32xf32> to vector<2x32xf32>
    %c0_30 = arith.constant 0 : index
    %c64 = arith.constant 64 : index
    %53 = vector.load %arg9[%c0_30, %c64] : memref<2x2048xf32, #tpu.memory_space<vmem>>, vector<2x32xf32>
    tpu.vector_store %arg9[%c0_30, %c64], %52 {strides = array<i32>} : memref<2x2048xf32, #tpu.memory_space<vmem>>, vector<2x32xf32>,
    %54 = vector.extract_strided_slice %44 {offsets = [3, 0, 0], sizes = [1, 2, 32], strides = [1, 1, 1]} : vector<64x2x32xf32> to vector<1x2x32xf32>
    %55 = vector.shape_cast %54 : vector<1x2x32xf32> to vector<2x32xf32>
    %c0_31 = arith.constant 0 : index
    %c96 = arith.constant 96 : index
    %56 = vector.load %arg9[%c0_31, %c96] : memref<2x2048xf32, #tpu.memory_space<vmem>>, vector<2x32xf32>
    tpu.vector_store %arg9[%c0_31, %c96], %55 {strides = array<i32>} : memref<2x2048xf32, #tpu.memory_space<vmem>>, vector<2x32xf32>,
    %57 = vector.extract_strided_slice %44 {offsets = [4, 0, 0], sizes = [1, 2, 32], strides = [1, 1, 1]} : vector<64x2x32xf32> to vector<1x2x32xf32>
    %58 = vector.shape_cast %57 : vector<1x2x32xf32> to vector<2x32xf32>
    %c0_32 = arith.constant 0 : index
    %c128 = arith.constant 128 : index
    %59 = vector.load %arg9[%c0_32, %c128] : memref<2x2048xf32, #tpu.memory_space<vmem>>, vector<2x32xf32>
    tpu.vector_store %arg9[%c0_32, %c128], %58 {strides = array<i32>} : memref<2x2048xf32, #tpu.memory_space<vmem>>, vector<2x32xf32>,
    %60 = vector.extract_strided_slice %44 {offsets = [5, 0, 0], sizes = [1, 2, 32], strides = [1, 1, 1]} : vector<64x2x32xf32> to vector<1x2x32xf32>
    %61 = vector.shape_cast %60 : vector<1x2x32xf32> to vector<2x32xf32>
    %c0_33 = arith.constant 0 : index
    %c160 = arith.constant 160 : index
    %62 = vector.load %arg9[%c0_33, %c160] : memref<2x2048xf32, #tpu.memory_space<vmem>>, vector<2x32xf32>
    tpu.vector_store %arg9[%c0_33, %c160], %61 {strides = array<i32>} : memref<2x2048xf32, #tpu.memory_space<vmem>>, vector<2x32xf32>,
    %63 = vector.extract_strided_slice %44 {offsets = [6, 0, 0], sizes = [1, 2, 32], strides = [1, 1, 1]} : vector<64x2x32xf32> to vector<1x2x32xf32>
    %64 = vector.shape_cast %63 : vector<1x2x32xf32> to vector<2x32xf32>
    %c0_34 = arith.constant 0 : index
    %c192 = arith.constant 192 : index
    %65 = vector.load %arg9[%c0_34, %c192] : memref<2x2048xf32, #tpu.memory_space<vmem>>, vector<2x32xf32>
    tpu.vector_store %arg9[%c0_34, %c192], %64 {strides = array<i32>} : memref<2x2048xf32, #tpu.memory_space<vmem>>, vector<2x32xf32>,
    %66 = vector.extract_strided_slice %44 {offsets = [7, 0, 0], sizes = [1, 2, 32], strides = [1, 1, 1]} : vector<64x2x32xf32> to vector<1x2x32xf32>
    %67 = vector.shape_cast %66 : vector<1x2x32xf32> to vector<2x32xf32>
    %c0_35 = arith.constant 0 : index
    %c224 = arith.constant 224 : index
    %68 = vector.load %arg9[%c0_35, %c224] : memref<2x2048xf32, #tpu.memory_space<vmem>>, vector<2x32xf32>
    tpu.vector_store %arg9[%c0_35, %c224], %67 {strides = array<i32>} : memref<2x2048xf32, #tpu.memory_space<vmem>>, vector<2x32xf32>,
    %69 = vector.extract_strided_slice %44 {offsets = [8, 0, 0], sizes = [1, 2, 32], strides = [1, 1, 1]} : vector<64x2x32xf32> to vector<1x2x32xf32>
    %70 = vector.shape_cast %69 : vector<1x2x32xf32> to vector<2x32xf32>
    %c0_36 = arith.constant 0 : index
    %c256 = arith.constant 256 : index
    %71 = vector.load %arg9[%c0_36, %c256] : memref<2x2048xf32, #tpu.memory_space<vmem>>, vector<2x32xf32>
    tpu.vector_store %arg9[%c0_36, %c256], %70 {strides = array<i32>} : memref<2x2048xf32, #tpu.memory_space<vmem>>, vector<2x32xf32>,
    %72 = vector.extract_strided_slice %44 {offsets = [9, 0, 0], sizes = [1, 2, 32], strides = [1, 1, 1]} : vector<64x2x32xf32> to vector<1x2x32xf32>
    %73 = vector.shape_cast %72 : vector<1x2x32xf32> to vector<2x32xf32>
    %c0_37 = arith.constant 0 : index
    %c288 = arith.constant 288 : index
    %74 = vector.load %arg9[%c0_37, %c288] : memref<2x2048xf32, #tpu.memory_space<vmem>>, vector<2x32xf32>
    tpu.vector_store %arg9[%c0_37, %c288], %73 {strides = array<i32>} : memref<2x2048xf32, #tpu.memory_space<vmem>>, vector<2x32xf32>,
    %75 = vector.extract_strided_slice %44 {offsets = [10, 0, 0], sizes = [1, 2, 32], strides = [1, 1, 1]} : vector<64x2x32xf32> to vector<1x2x32xf32>
    %76 = vector.shape_cast %75 : vector<1x2x32xf32> to vector<2x32xf32>
    %c0_38 = arith.constant 0 : index
    %c320 = arith.constant 320 : index
    %77 = vector.load %arg9[%c0_38, %c320] : memref<2x2048xf32, #tpu.memory_space<vmem>>, vector<2x32xf32>
    tpu.vector_store %arg9[%c0_38, %c320], %76 {strides = array<i32>} : memref<2x2048xf32, #tpu.memory_space<vmem>>, vector<2x32xf32>,
    %78 = vector.extract_strided_slice %44 {offsets = [11, 0, 0], sizes = [1, 2, 32], strides = [1, 1, 1]} : vector<64x2x32xf32> to vector<1x2x32xf32>
    %79 = vector.shape_cast %78 : vector<1x2x32xf32> to vector<2x32xf32>
    %c0_39 = arith.constant 0 : index
    %c352 = arith.constant 352 : index
    %80 = vector.load %arg9[%c0_39, %c352] : memref<2x2048xf32, #tpu.memory_space<vmem>>, vector<2x32xf32>
    tpu.vector_store %arg9[%c0_39, %c352], %79 {strides = array<i32>} : memref<2x2048xf32, #tpu.memory_space<vmem>>, vector<2x32xf32>,
    %81 = vector.extract_strided_slice %44 {offsets = [12, 0, 0], sizes = [1, 2, 32], strides = [1, 1, 1]} : vector<64x2x32xf32> to vector<1x2x32xf32>
    %82 = vector.shape_cast %81 : vector<1x2x32xf32> to vector<2x32xf32>
    %c0_40 = arith.constant 0 : index
    %c384 = arith.constant 384 : index
    %83 = vector.load %arg9[%c0_40, %c384] : memref<2x2048xf32, #tpu.memory_space<vmem>>, vector<2x32xf32>
    tpu.vector_store %arg9[%c0_40, %c384], %82 {strides = array<i32>} : memref<2x2048xf32, #tpu.memory_space<vmem>>, vector<2x32xf32>,
    %84 = vector.extract_strided_slice %44 {offsets = [13, 0, 0], sizes = [1, 2, 32], strides = [1, 1, 1]} : vector<64x2x32xf32> to vector<1x2x32xf32>
    %85 = vector.shape_cast %84 : vector<1x2x32xf32> to vector<2x32xf32>
    %c0_41 = arith.constant 0 : index
    %c416 = arith.constant 416 : index
    %86 = vector.load %arg9[%c0_41, %c416] : memref<2x2048xf32, #tpu.memory_space<vmem>>, vector<2x32xf32>
    tpu.vector_store %arg9[%c0_41, %c416], %85 {strides = array<i32>} : memref<2x2048xf32, #tpu.memory_space<vmem>>, vector<2x32xf32>,
    %87 = vector.extract_strided_slice %44 {offsets = [14, 0, 0], sizes = [1, 2, 32], strides = [1, 1, 1]} : vector<64x2x32xf32> to vector<1x2x32xf32>
    %88 = vector.shape_cast %87 : vector<1x2x32xf32> to vector<2x32xf32>
    %c0_42 = arith.constant 0 : index
    %c448 = arith.constant 448 : index
    %89 = vector.load %arg9[%c0_42, %c448] : memref<2x2048xf32, #tpu.memory_space<vmem>>, vector<2x32xf32>
    tpu.vector_store %arg9[%c0_42, %c448], %88 {strides = array<i32>} : memref<2x2048xf32, #tpu.memory_space<vmem>>, vector<2x32xf32>,
    %90 = vector.extract_strided_slice %44 {offsets = [15, 0, 0], sizes = [1, 2, 32], strides = [1, 1, 1]} : vector<64x2x32xf32> to vector<1x2x32xf32>
    %91 = vector.shape_cast %90 : vector<1x2x32xf32> to vector<2x32xf32>
    %c0_43 = arith.constant 0 : index
    %c480 = arith.constant 480 : index
    %92 = vector.load %arg9[%c0_43, %c480] : memref<2x2048xf32, #tpu.memory_space<vmem>>, vector<2x32xf32>
    tpu.vector_store %arg9[%c0_43, %c480], %91 {strides = array<i32>} : memref<2x2048xf32, #tpu.memory_space<vmem>>, vector<2x32xf32>,
    %93 = vector.extract_strided_slice %44 {offsets = [16, 0, 0], sizes = [1, 2, 32], strides = [1, 1, 1]} : vector<64x2x32xf32> to vector<1x2x32xf32>
    %94 = vector.shape_cast %93 : vector<1x2x32xf32> to vector<2x32xf32>
    %c0_44 = arith.constant 0 : index
    %c512 = arith.constant 512 : index
    %95 = vector.load %arg9[%c0_44, %c512] : memref<2x2048xf32, #tpu.memory_space<vmem>>, vector<2x32xf32>
    tpu.vector_store %arg9[%c0_44, %c512], %94 {strides = array<i32>} : memref<2x2048xf32, #tpu.memory_space<vmem>>, vector<2x32xf32>,
    %96 = vector.extract_strided_slice %44 {offsets = [17, 0, 0], sizes = [1, 2, 32], strides = [1, 1, 1]} : vector<64x2x32xf32> to vector<1x2x32xf32>
    %97 = vector.shape_cast %96 : vector<1x2x32xf32> to vector<2x32xf32>
    %c0_45 = arith.constant 0 : index
    %c544 = arith.constant 544 : index
    %98 = vector.load %arg9[%c0_45, %c544] : memref<2x2048xf32, #tpu.memory_space<vmem>>, vector<2x32xf32>
    tpu.vector_store %arg9[%c0_45, %c544], %97 {strides = array<i32>} : memref<2x2048xf32, #tpu.memory_space<vmem>>, vector<2x32xf32>,
    %99 = vector.extract_strided_slice %44 {offsets = [18, 0, 0], sizes = [1, 2, 32], strides = [1, 1, 1]} : vector<64x2x32xf32> to vector<1x2x32xf32>
    %100 = vector.shape_cast %99 : vector<1x2x32xf32> to vector<2x32xf32>
    %c0_46 = arith.constant 0 : index
    %c576 = arith.constant 576 : index
    %101 = vector.load %arg9[%c0_46, %c576] : memref<2x2048xf32, #tpu.memory_space<vmem>>, vector<2x32xf32>
    tpu.vector_store %arg9[%c0_46, %c576], %100 {strides = array<i32>} : memref<2x2048xf32, #tpu.memory_space<vmem>>, vector<2x32xf32>,
    %102 = vector.extract_strided_slice %44 {offsets = [19, 0, 0], sizes = [1, 2, 32], strides = [1, 1, 1]} : vector<64x2x32xf32> to vector<1x2x32xf32>
    %103 = vector.shape_cast %102 : vector<1x2x32xf32> to vector<2x32xf32>
    %c0_47 = arith.constant 0 : index
    %c608 = arith.constant 608 : index
    %104 = vector.load %arg9[%c0_47, %c608] : memref<2x2048xf32, #tpu.memory_space<vmem>>, vector<2x32xf32>
    tpu.vector_store %arg9[%c0_47, %c608], %103 {strides = array<i32>} : memref<2x2048xf32, #tpu.memory_space<vmem>>, vector<2x32xf32>,
    %105 = vector.extract_strided_slice %44 {offsets = [20, 0, 0], sizes = [1, 2, 32], strides = [1, 1, 1]} : vector<64x2x32xf32> to vector<1x2x32xf32>
    %106 = vector.shape_cast %105 : vector<1x2x32xf32> to vector<2x32xf32>
    %c0_48 = arith.constant 0 : index
    %c640 = arith.constant 640 : index
    %107 = vector.load %arg9[%c0_48, %c640] : memref<2x2048xf32, #tpu.memory_space<vmem>>, vector<2x32xf32>
    tpu.vector_store %arg9[%c0_48, %c640], %106 {strides = array<i32>} : memref<2x2048xf32, #tpu.memory_space<vmem>>, vector<2x32xf32>,
    %108 = vector.extract_strided_slice %44 {offsets = [21, 0, 0], sizes = [1, 2, 32], strides = [1, 1, 1]} : vector<64x2x32xf32> to vector<1x2x32xf32>
    %109 = vector.shape_cast %108 : vector<1x2x32xf32> to vector<2x32xf32>
    %c0_49 = arith.constant 0 : index
    %c672 = arith.constant 672 : index
    %110 = vector.load %arg9[%c0_49, %c672] : memref<2x2048xf32, #tpu.memory_space<vmem>>, vector<2x32xf32>
    tpu.vector_store %arg9[%c0_49, %c672], %109 {strides = array<i32>} : memref<2x2048xf32, #tpu.memory_space<vmem>>, vector<2x32xf32>,
    %111 = vector.extract_strided_slice %44 {offsets = [22, 0, 0], sizes = [1, 2, 32], strides = [1, 1, 1]} : vector<64x2x32xf32> to vector<1x2x32xf32>
    %112 = vector.shape_cast %111 : vector<1x2x32xf32> to vector<2x32xf32>
    %c0_50 = arith.constant 0 : index
    %c704 = arith.constant 704 : index
    %113 = vector.load %arg9[%c0_50, %c704] : memref<2x2048xf32, #tpu.memory_space<vmem>>, vector<2x32xf32>
    tpu.vector_store %arg9[%c0_50, %c704], %112 {strides = array<i32>} : memref<2x2048xf32, #tpu.memory_space<vmem>>, vector<2x32xf32>,
    %114 = vector.extract_strided_slice %44 {offsets = [23, 0, 0], sizes = [1, 2, 32], strides = [1, 1, 1]} : vector<64x2x32xf32> to vector<1x2x32xf32>
    %115 = vector.shape_cast %114 : vector<1x2x32xf32> to vector<2x32xf32>
    %c0_51 = arith.constant 0 : index
    %c736 = arith.constant 736 : index
    %116 = vector.load %arg9[%c0_51, %c736] : memref<2x2048xf32, #tpu.memory_space<vmem>>, vector<2x32xf32>
    tpu.vector_store %arg9[%c0_51, %c736], %115 {strides = array<i32>} : memref<2x2048xf32, #tpu.memory_space<vmem>>, vector<2x32xf32>,
    %117 = vector.extract_strided_slice %44 {offsets = [24, 0, 0], sizes = [1, 2, 32], strides = [1, 1, 1]} : vector<64x2x32xf32> to vector<1x2x32xf32>
    %118 = vector.shape_cast %117 : vector<1x2x32xf32> to vector<2x32xf32>
    %c0_52 = arith.constant 0 : index
    %c768 = arith.constant 768 : index
    %119 = vector.load %arg9[%c0_52, %c768] : memref<2x2048xf32, #tpu.memory_space<vmem>>, vector<2x32xf32>
    tpu.vector_store %arg9[%c0_52, %c768], %118 {strides = array<i32>} : memref<2x2048xf32, #tpu.memory_space<vmem>>, vector<2x32xf32>,
    %120 = vector.extract_strided_slice %44 {offsets = [25, 0, 0], sizes = [1, 2, 32], strides = [1, 1, 1]} : vector<64x2x32xf32> to vector<1x2x32xf32>
    %121 = vector.shape_cast %120 : vector<1x2x32xf32> to vector<2x32xf32>
    %c0_53 = arith.constant 0 : index
    %c800 = arith.constant 800 : index
    %122 = vector.load %arg9[%c0_53, %c800] : memref<2x2048xf32, #tpu.memory_space<vmem>>, vector<2x32xf32>
    tpu.vector_store %arg9[%c0_53, %c800], %121 {strides = array<i32>} : memref<2x2048xf32, #tpu.memory_space<vmem>>, vector<2x32xf32>,
    %123 = vector.extract_strided_slice %44 {offsets = [26, 0, 0], sizes = [1, 2, 32], strides = [1, 1, 1]} : vector<64x2x32xf32> to vector<1x2x32xf32>
    %124 = vector.shape_cast %123 : vector<1x2x32xf32> to vector<2x32xf32>
    %c0_54 = arith.constant 0 : index
    %c832 = arith.constant 832 : index
    %125 = vector.load %arg9[%c0_54, %c832] : memref<2x2048xf32, #tpu.memory_space<vmem>>, vector<2x32xf32>
    tpu.vector_store %arg9[%c0_54, %c832], %124 {strides = array<i32>} : memref<2x2048xf32, #tpu.memory_space<vmem>>, vector<2x32xf32>,
    %126 = vector.extract_strided_slice %44 {offsets = [27, 0, 0], sizes = [1, 2, 32], strides = [1, 1, 1]} : vector<64x2x32xf32> to vector<1x2x32xf32>
    %127 = vector.shape_cast %126 : vector<1x2x32xf32> to vector<2x32xf32>
    %c0_55 = arith.constant 0 : index
    %c864 = arith.constant 864 : index
    %128 = vector.load %arg9[%c0_55, %c864] : memref<2x2048xf32, #tpu.memory_space<vmem>>, vector<2x32xf32>
    tpu.vector_store %arg9[%c0_55, %c864], %127 {strides = array<i32>} : memref<2x2048xf32, #tpu.memory_space<vmem>>, vector<2x32xf32>,
    %129 = vector.extract_strided_slice %44 {offsets = [28, 0, 0], sizes = [1, 2, 32], strides = [1, 1, 1]} : vector<64x2x32xf32> to vector<1x2x32xf32>
    %130 = vector.shape_cast %129 : vector<1x2x32xf32> to vector<2x32xf32>
    %c0_56 = arith.constant 0 : index
    %c896 = arith.constant 896 : index
    %131 = vector.load %arg9[%c0_56, %c896] : memref<2x2048xf32, #tpu.memory_space<vmem>>, vector<2x32xf32>
    tpu.vector_store %arg9[%c0_56, %c896], %130 {strides = array<i32>} : memref<2x2048xf32, #tpu.memory_space<vmem>>, vector<2x32xf32>,
    %132 = vector.extract_strided_slice %44 {offsets = [29, 0, 0], sizes = [1, 2, 32], strides = [1, 1, 1]} : vector<64x2x32xf32> to vector<1x2x32xf32>
    %133 = vector.shape_cast %132 : vector<1x2x32xf32> to vector<2x32xf32>
    %c0_57 = arith.constant 0 : index
    %c928 = arith.constant 928 : index
    %134 = vector.load %arg9[%c0_57, %c928] : memref<2x2048xf32, #tpu.memory_space<vmem>>, vector<2x32xf32>
    tpu.vector_store %arg9[%c0_57, %c928], %133 {strides = array<i32>} : memref<2x2048xf32, #tpu.memory_space<vmem>>, vector<2x32xf32>,
    %135 = vector.extract_strided_slice %44 {offsets = [30, 0, 0], sizes = [1, 2, 32], strides = [1, 1, 1]} : vector<64x2x32xf32> to vector<1x2x32xf32>
    %136 = vector.shape_cast %135 : vector<1x2x32xf32> to vector<2x32xf32>
    %c0_58 = arith.constant 0 : index
    %c960 = arith.constant 960 : index
    %137 = vector.load %arg9[%c0_58, %c960] : memref<2x2048xf32, #tpu.memory_space<vmem>>, vector<2x32xf32>
    tpu.vector_store %arg9[%c0_58, %c960], %136 {strides = array<i32>} : memref<2x2048xf32, #tpu.memory_space<vmem>>, vector<2x32xf32>,
    %138 = vector.extract_strided_slice %44 {offsets = [31, 0, 0], sizes = [1, 2, 32], strides = [1, 1, 1]} : vector<64x2x32xf32> to vector<1x2x32xf32>
    %139 = vector.shape_cast %138 : vector<1x2x32xf32> to vector<2x32xf32>
    %c0_59 = arith.constant 0 : index
    %c992 = arith.constant 992 : index
    %140 = vector.load %arg9[%c0_59, %c992] : memref<2x2048xf32, #tpu.memory_space<vmem>>, vector<2x32xf32>
    tpu.vector_store %arg9[%c0_59, %c992], %139 {strides = array<i32>} : memref<2x2048xf32, #tpu.memory_space<vmem>>, vector<2x32xf32>,
    %141 = vector.extract_strided_slice %44 {offsets = [32, 0, 0], sizes = [1, 2, 32], strides = [1, 1, 1]} : vector<64x2x32xf32> to vector<1x2x32xf32>
    %142 = vector.shape_cast %141 : vector<1x2x32xf32> to vector<2x32xf32>
    %c0_60 = arith.constant 0 : index
    %c1024 = arith.constant 1024 : index
    %143 = vector.load %arg9[%c0_60, %c1024] : memref<2x2048xf32, #tpu.memory_space<vmem>>, vector<2x32xf32>
    tpu.vector_store %arg9[%c0_60, %c1024], %142 {strides = array<i32>} : memref<2x2048xf32, #tpu.memory_space<vmem>>, vector<2x32xf32>,
    %144 = vector.extract_strided_slice %44 {offsets = [33, 0, 0], sizes = [1, 2, 32], strides = [1, 1, 1]} : vector<64x2x32xf32> to vector<1x2x32xf32>
    %145 = vector.shape_cast %144 : vector<1x2x32xf32> to vector<2x32xf32>
    %c0_61 = arith.constant 0 : index
    %c1056 = arith.constant 1056 : index
    %146 = vector.load %arg9[%c0_61, %c1056] : memref<2x2048xf32, #tpu.memory_space<vmem>>, vector<2x32xf32>
    tpu.vector_store %arg9[%c0_61, %c1056], %145 {strides = array<i32>} : memref<2x2048xf32, #tpu.memory_space<vmem>>, vector<2x32xf32>,
    %147 = vector.extract_strided_slice %44 {offsets = [34, 0, 0], sizes = [1, 2, 32], strides = [1, 1, 1]} : vector<64x2x32xf32> to vector<1x2x32xf32>
    %148 = vector.shape_cast %147 : vector<1x2x32xf32> to vector<2x32xf32>
    %c0_62 = arith.constant 0 : index
    %c1088 = arith.constant 1088 : index
    %149 = vector.load %arg9[%c0_62, %c1088] : memref<2x2048xf32, #tpu.memory_space<vmem>>, vector<2x32xf32>
    tpu.vector_store %arg9[%c0_62, %c1088], %148 {strides = array<i32>} : memref<2x2048xf32, #tpu.memory_space<vmem>>, vector<2x32xf32>,
    %150 = vector.extract_strided_slice %44 {offsets = [35, 0, 0], sizes = [1, 2, 32], strides = [1, 1, 1]} : vector<64x2x32xf32> to vector<1x2x32xf32>
    %151 = vector.shape_cast %150 : vector<1x2x32xf32> to vector<2x32xf32>
    %c0_63 = arith.constant 0 : index
    %c1120 = arith.constant 1120 : index
    %152 = vector.load %arg9[%c0_63, %c1120] : memref<2x2048xf32, #tpu.memory_space<vmem>>, vector<2x32xf32>
    tpu.vector_store %arg9[%c0_63, %c1120], %151 {strides = array<i32>} : memref<2x2048xf32, #tpu.memory_space<vmem>>, vector<2x32xf32>,
    %153 = vector.extract_strided_slice %44 {offsets = [36, 0, 0], sizes = [1, 2, 32], strides = [1, 1, 1]} : vector<64x2x32xf32> to vector<1x2x32xf32>
    %154 = vector.shape_cast %153 : vector<1x2x32xf32> to vector<2x32xf32>
    %c0_64 = arith.constant 0 : index
    %c1152 = arith.constant 1152 : index
    %155 = vector.load %arg9[%c0_64, %c1152] : memref<2x2048xf32, #tpu.memory_space<vmem>>, vector<2x32xf32>
    tpu.vector_store %arg9[%c0_64, %c1152], %154 {strides = array<i32>} : memref<2x2048xf32, #tpu.memory_space<vmem>>, vector<2x32xf32>,
    %156 = vector.extract_strided_slice %44 {offsets = [37, 0, 0], sizes = [1, 2, 32], strides = [1, 1, 1]} : vector<64x2x32xf32> to vector<1x2x32xf32>
    %157 = vector.shape_cast %156 : vector<1x2x32xf32> to vector<2x32xf32>
    %c0_65 = arith.constant 0 : index
    %c1184 = arith.constant 1184 : index
    %158 = vector.load %arg9[%c0_65, %c1184] : memref<2x2048xf32, #tpu.memory_space<vmem>>, vector<2x32xf32>
    tpu.vector_store %arg9[%c0_65, %c1184], %157 {strides = array<i32>} : memref<2x2048xf32, #tpu.memory_space<vmem>>, vector<2x32xf32>,
    %159 = vector.extract_strided_slice %44 {offsets = [38, 0, 0], sizes = [1, 2, 32], strides = [1, 1, 1]} : vector<64x2x32xf32> to vector<1x2x32xf32>
    %160 = vector.shape_cast %159 : vector<1x2x32xf32> to vector<2x32xf32>
    %c0_66 = arith.constant 0 : index
    %c1216 = arith.constant 1216 : index
    %161 = vector.load %arg9[%c0_66, %c1216] : memref<2x2048xf32, #tpu.memory_space<vmem>>, vector<2x32xf32>
    tpu.vector_store %arg9[%c0_66, %c1216], %160 {strides = array<i32>} : memref<2x2048xf32, #tpu.memory_space<vmem>>, vector<2x32xf32>,
    %162 = vector.extract_strided_slice %44 {offsets = [39, 0, 0], sizes = [1, 2, 32], strides = [1, 1, 1]} : vector<64x2x32xf32> to vector<1x2x32xf32>
    %163 = vector.shape_cast %162 : vector<1x2x32xf32> to vector<2x32xf32>
    %c0_67 = arith.constant 0 : index
    %c1248 = arith.constant 1248 : index
    %164 = vector.load %arg9[%c0_67, %c1248] : memref<2x2048xf32, #tpu.memory_space<vmem>>, vector<2x32xf32>
    tpu.vector_store %arg9[%c0_67, %c1248], %163 {strides = array<i32>} : memref<2x2048xf32, #tpu.memory_space<vmem>>, vector<2x32xf32>,
    %165 = vector.extract_strided_slice %44 {offsets = [40, 0, 0], sizes = [1, 2, 32], strides = [1, 1, 1]} : vector<64x2x32xf32> to vector<1x2x32xf32>
    %166 = vector.shape_cast %165 : vector<1x2x32xf32> to vector<2x32xf32>
    %c0_68 = arith.constant 0 : index
    %c1280 = arith.constant 1280 : index
    %167 = vector.load %arg9[%c0_68, %c1280] : memref<2x2048xf32, #tpu.memory_space<vmem>>, vector<2x32xf32>
    tpu.vector_store %arg9[%c0_68, %c1280], %166 {strides = array<i32>} : memref<2x2048xf32, #tpu.memory_space<vmem>>, vector<2x32xf32>,
    %168 = vector.extract_strided_slice %44 {offsets = [41, 0, 0], sizes = [1, 2, 32], strides = [1, 1, 1]} : vector<64x2x32xf32> to vector<1x2x32xf32>
    %169 = vector.shape_cast %168 : vector<1x2x32xf32> to vector<2x32xf32>
    %c0_69 = arith.constant 0 : index
    %c1312 = arith.constant 1312 : index
    %170 = vector.load %arg9[%c0_69, %c1312] : memref<2x2048xf32, #tpu.memory_space<vmem>>, vector<2x32xf32>
    tpu.vector_store %arg9[%c0_69, %c1312], %169 {strides = array<i32>} : memref<2x2048xf32, #tpu.memory_space<vmem>>, vector<2x32xf32>,
    %171 = vector.extract_strided_slice %44 {offsets = [42, 0, 0], sizes = [1, 2, 32], strides = [1, 1, 1]} : vector<64x2x32xf32> to vector<1x2x32xf32>
    %172 = vector.shape_cast %171 : vector<1x2x32xf32> to vector<2x32xf32>
    %c0_70 = arith.constant 0 : index
    %c1344 = arith.constant 1344 : index
    %173 = vector.load %arg9[%c0_70, %c1344] : memref<2x2048xf32, #tpu.memory_space<vmem>>, vector<2x32xf32>
    tpu.vector_store %arg9[%c0_70, %c1344], %172 {strides = array<i32>} : memref<2x2048xf32, #tpu.memory_space<vmem>>, vector<2x32xf32>,
    %174 = vector.extract_strided_slice %44 {offsets = [43, 0, 0], sizes = [1, 2, 32], strides = [1, 1, 1]} : vector<64x2x32xf32> to vector<1x2x32xf32>
    %175 = vector.shape_cast %174 : vector<1x2x32xf32> to vector<2x32xf32>
    %c0_71 = arith.constant 0 : index
    %c1376 = arith.constant 1376 : index
    %176 = vector.load %arg9[%c0_71, %c1376] : memref<2x2048xf32, #tpu.memory_space<vmem>>, vector<2x32xf32>
    tpu.vector_store %arg9[%c0_71, %c1376], %175 {strides = array<i32>} : memref<2x2048xf32, #tpu.memory_space<vmem>>, vector<2x32xf32>,
    %177 = vector.extract_strided_slice %44 {offsets = [44, 0, 0], sizes = [1, 2, 32], strides = [1, 1, 1]} : vector<64x2x32xf32> to vector<1x2x32xf32>
    %178 = vector.shape_cast %177 : vector<1x2x32xf32> to vector<2x32xf32>
    %c0_72 = arith.constant 0 : index
    %c1408 = arith.constant 1408 : index
    %179 = vector.load %arg9[%c0_72, %c1408] : memref<2x2048xf32, #tpu.memory_space<vmem>>, vector<2x32xf32>
    tpu.vector_store %arg9[%c0_72, %c1408], %178 {strides = array<i32>} : memref<2x2048xf32, #tpu.memory_space<vmem>>, vector<2x32xf32>,
    %180 = vector.extract_strided_slice %44 {offsets = [45, 0, 0], sizes = [1, 2, 32], strides = [1, 1, 1]} : vector<64x2x32xf32> to vector<1x2x32xf32>
    %181 = vector.shape_cast %180 : vector<1x2x32xf32> to vector<2x32xf32>
    %c0_73 = arith.constant 0 : index
    %c1440 = arith.constant 1440 : index
    %182 = vector.load %arg9[%c0_73, %c1440] : memref<2x2048xf32, #tpu.memory_space<vmem>>, vector<2x32xf32>
    tpu.vector_store %arg9[%c0_73, %c1440], %181 {strides = array<i32>} : memref<2x2048xf32, #tpu.memory_space<vmem>>, vector<2x32xf32>,
    %183 = vector.extract_strided_slice %44 {offsets = [46, 0, 0], sizes = [1, 2, 32], strides = [1, 1, 1]} : vector<64x2x32xf32> to vector<1x2x32xf32>
    %184 = vector.shape_cast %183 : vector<1x2x32xf32> to vector<2x32xf32>
    %c0_74 = arith.constant 0 : index
    %c1472 = arith.constant 1472 : index
    %185 = vector.load %arg9[%c0_74, %c1472] : memref<2x2048xf32, #tpu.memory_space<vmem>>, vector<2x32xf32>
    tpu.vector_store %arg9[%c0_74, %c1472], %184 {strides = array<i32>} : memref<2x2048xf32, #tpu.memory_space<vmem>>, vector<2x32xf32>,
    %186 = vector.extract_strided_slice %44 {offsets = [47, 0, 0], sizes = [1, 2, 32], strides = [1, 1, 1]} : vector<64x2x32xf32> to vector<1x2x32xf32>
    %187 = vector.shape_cast %186 : vector<1x2x32xf32> to vector<2x32xf32>
    %c0_75 = arith.constant 0 : index
    %c1504 = arith.constant 1504 : index
    %188 = vector.load %arg9[%c0_75, %c1504] : memref<2x2048xf32, #tpu.memory_space<vmem>>, vector<2x32xf32>
    tpu.vector_store %arg9[%c0_75, %c1504], %187 {strides = array<i32>} : memref<2x2048xf32, #tpu.memory_space<vmem>>, vector<2x32xf32>,
    %189 = vector.extract_strided_slice %44 {offsets = [48, 0, 0], sizes = [1, 2, 32], strides = [1, 1, 1]} : vector<64x2x32xf32> to vector<1x2x32xf32>
    %190 = vector.shape_cast %189 : vector<1x2x32xf32> to vector<2x32xf32>
    %c0_76 = arith.constant 0 : index
    %c1536 = arith.constant 1536 : index
    %191 = vector.load %arg9[%c0_76, %c1536] : memref<2x2048xf32, #tpu.memory_space<vmem>>, vector<2x32xf32>
    tpu.vector_store %arg9[%c0_76, %c1536], %190 {strides = array<i32>} : memref<2x2048xf32, #tpu.memory_space<vmem>>, vector<2x32xf32>,
    %192 = vector.extract_strided_slice %44 {offsets = [49, 0, 0], sizes = [1, 2, 32], strides = [1, 1, 1]} : vector<64x2x32xf32> to vector<1x2x32xf32>
    %193 = vector.shape_cast %192 : vector<1x2x32xf32> to vector<2x32xf32>
    %c0_77 = arith.constant 0 : index
    %c1568 = arith.constant 1568 : index
    %194 = vector.load %arg9[%c0_77, %c1568] : memref<2x2048xf32, #tpu.memory_space<vmem>>, vector<2x32xf32>
    tpu.vector_store %arg9[%c0_77, %c1568], %193 {strides = array<i32>} : memref<2x2048xf32, #tpu.memory_space<vmem>>, vector<2x32xf32>,
    %195 = vector.extract_strided_slice %44 {offsets = [50, 0, 0], sizes = [1, 2, 32], strides = [1, 1, 1]} : vector<64x2x32xf32> to vector<1x2x32xf32>
    %196 = vector.shape_cast %195 : vector<1x2x32xf32> to vector<2x32xf32>
    %c0_78 = arith.constant 0 : index
    %c1600 = arith.constant 1600 : index
    %197 = vector.load %arg9[%c0_78, %c1600] : memref<2x2048xf32, #tpu.memory_space<vmem>>, vector<2x32xf32>
    tpu.vector_store %arg9[%c0_78, %c1600], %196 {strides = array<i32>} : memref<2x2048xf32, #tpu.memory_space<vmem>>, vector<2x32xf32>,
    %198 = vector.extract_strided_slice %44 {offsets = [51, 0, 0], sizes = [1, 2, 32], strides = [1, 1, 1]} : vector<64x2x32xf32> to vector<1x2x32xf32>
    %199 = vector.shape_cast %198 : vector<1x2x32xf32> to vector<2x32xf32>
    %c0_79 = arith.constant 0 : index
    %c1632 = arith.constant 1632 : index
    %200 = vector.load %arg9[%c0_79, %c1632] : memref<2x2048xf32, #tpu.memory_space<vmem>>, vector<2x32xf32>
    tpu.vector_store %arg9[%c0_79, %c1632], %199 {strides = array<i32>} : memref<2x2048xf32, #tpu.memory_space<vmem>>, vector<2x32xf32>,
    %201 = vector.extract_strided_slice %44 {offsets = [52, 0, 0], sizes = [1, 2, 32], strides = [1, 1, 1]} : vector<64x2x32xf32> to vector<1x2x32xf32>
    %202 = vector.shape_cast %201 : vector<1x2x32xf32> to vector<2x32xf32>
    %c0_80 = arith.constant 0 : index
    %c1664 = arith.constant 1664 : index
    %203 = vector.load %arg9[%c0_80, %c1664] : memref<2x2048xf32, #tpu.memory_space<vmem>>, vector<2x32xf32>
    tpu.vector_store %arg9[%c0_80, %c1664], %202 {strides = array<i32>} : memref<2x2048xf32, #tpu.memory_space<vmem>>, vector<2x32xf32>,
    %204 = vector.extract_strided_slice %44 {offsets = [53, 0, 0], sizes = [1, 2, 32], strides = [1, 1, 1]} : vector<64x2x32xf32> to vector<1x2x32xf32>
    %205 = vector.shape_cast %204 : vector<1x2x32xf32> to vector<2x32xf32>
    %c0_81 = arith.constant 0 : index
    %c1696 = arith.constant 1696 : index
    %206 = vector.load %arg9[%c0_81, %c1696] : memref<2x2048xf32, #tpu.memory_space<vmem>>, vector<2x32xf32>
    tpu.vector_store %arg9[%c0_81, %c1696], %205 {strides = array<i32>} : memref<2x2048xf32, #tpu.memory_space<vmem>>, vector<2x32xf32>,
    %207 = vector.extract_strided_slice %44 {offsets = [54, 0, 0], sizes = [1, 2, 32], strides = [1, 1, 1]} : vector<64x2x32xf32> to vector<1x2x32xf32>
    %208 = vector.shape_cast %207 : vector<1x2x32xf32> to vector<2x32xf32>
    %c0_82 = arith.constant 0 : index
    %c1728 = arith.constant 1728 : index
    %209 = vector.load %arg9[%c0_82, %c1728] : memref<2x2048xf32, #tpu.memory_space<vmem>>, vector<2x32xf32>
    tpu.vector_store %arg9[%c0_82, %c1728], %208 {strides = array<i32>} : memref<2x2048xf32, #tpu.memory_space<vmem>>, vector<2x32xf32>,
    %210 = vector.extract_strided_slice %44 {offsets = [55, 0, 0], sizes = [1, 2, 32], strides = [1, 1, 1]} : vector<64x2x32xf32> to vector<1x2x32xf32>
    %211 = vector.shape_cast %210 : vector<1x2x32xf32> to vector<2x32xf32>
    %c0_83 = arith.constant 0 : index
    %c1760 = arith.constant 1760 : index
    %212 = vector.load %arg9[%c0_83, %c1760] : memref<2x2048xf32, #tpu.memory_space<vmem>>, vector<2x32xf32>
    tpu.vector_store %arg9[%c0_83, %c1760], %211 {strides = array<i32>} : memref<2x2048xf32, #tpu.memory_space<vmem>>, vector<2x32xf32>,
    %213 = vector.extract_strided_slice %44 {offsets = [56, 0, 0], sizes = [1, 2, 32], strides = [1, 1, 1]} : vector<64x2x32xf32> to vector<1x2x32xf32>
    %214 = vector.shape_cast %213 : vector<1x2x32xf32> to vector<2x32xf32>
    %c0_84 = arith.constant 0 : index
    %c1792 = arith.constant 1792 : index
    %215 = vector.load %arg9[%c0_84, %c1792] : memref<2x2048xf32, #tpu.memory_space<vmem>>, vector<2x32xf32>
    tpu.vector_store %arg9[%c0_84, %c1792], %214 {strides = array<i32>} : memref<2x2048xf32, #tpu.memory_space<vmem>>, vector<2x32xf32>,
    %216 = vector.extract_strided_slice %44 {offsets = [57, 0, 0], sizes = [1, 2, 32], strides = [1, 1, 1]} : vector<64x2x32xf32> to vector<1x2x32xf32>
    %217 = vector.shape_cast %216 : vector<1x2x32xf32> to vector<2x32xf32>
    %c0_85 = arith.constant 0 : index
    %c1824 = arith.constant 1824 : index
    %218 = vector.load %arg9[%c0_85, %c1824] : memref<2x2048xf32, #tpu.memory_space<vmem>>, vector<2x32xf32>
    tpu.vector_store %arg9[%c0_85, %c1824], %217 {strides = array<i32>} : memref<2x2048xf32, #tpu.memory_space<vmem>>, vector<2x32xf32>,
    %219 = vector.extract_strided_slice %44 {offsets = [58, 0, 0], sizes = [1, 2, 32], strides = [1, 1, 1]} : vector<64x2x32xf32> to vector<1x2x32xf32>
    %220 = vector.shape_cast %219 : vector<1x2x32xf32> to vector<2x32xf32>
    %c0_86 = arith.constant 0 : index
    %c1856 = arith.constant 1856 : index
    %221 = vector.load %arg9[%c0_86, %c1856] : memref<2x2048xf32, #tpu.memory_space<vmem>>, vector<2x32xf32>
    tpu.vector_store %arg9[%c0_86, %c1856], %220 {strides = array<i32>} : memref<2x2048xf32, #tpu.memory_space<vmem>>, vector<2x32xf32>,
    %222 = vector.extract_strided_slice %44 {offsets = [59, 0, 0], sizes = [1, 2, 32], strides = [1, 1, 1]} : vector<64x2x32xf32> to vector<1x2x32xf32>
    %223 = vector.shape_cast %222 : vector<1x2x32xf32> to vector<2x32xf32>
    %c0_87 = arith.constant 0 : index
    %c1888 = arith.constant 1888 : index
    %224 = vector.load %arg9[%c0_87, %c1888] : memref<2x2048xf32, #tpu.memory_space<vmem>>, vector<2x32xf32>
    tpu.vector_store %arg9[%c0_87, %c1888], %223 {strides = array<i32>} : memref<2x2048xf32, #tpu.memory_space<vmem>>, vector<2x32xf32>,
    %225 = vector.extract_strided_slice %44 {offsets = [60, 0, 0], sizes = [1, 2, 32], strides = [1, 1, 1]} : vector<64x2x32xf32> to vector<1x2x32xf32>
    %226 = vector.shape_cast %225 : vector<1x2x32xf32> to vector<2x32xf32>
    %c0_88 = arith.constant 0 : index
    %c1920 = arith.constant 1920 : index
    %227 = vector.load %arg9[%c0_88, %c1920] : memref<2x2048xf32, #tpu.memory_space<vmem>>, vector<2x32xf32>
    tpu.vector_store %arg9[%c0_88, %c1920], %226 {strides = array<i32>} : memref<2x2048xf32, #tpu.memory_space<vmem>>, vector<2x32xf32>,
    %228 = vector.extract_strided_slice %44 {offsets = [61, 0, 0], sizes = [1, 2, 32], strides = [1, 1, 1]} : vector<64x2x32xf32> to vector<1x2x32xf32>
    %229 = vector.shape_cast %228 : vector<1x2x32xf32> to vector<2x32xf32>
    %c0_89 = arith.constant 0 : index
    %c1952 = arith.constant 1952 : index
    %230 = vector.load %arg9[%c0_89, %c1952] : memref<2x2048xf32, #tpu.memory_space<vmem>>, vector<2x32xf32>
    tpu.vector_store %arg9[%c0_89, %c1952], %229 {strides = array<i32>} : memref<2x2048xf32, #tpu.memory_space<vmem>>, vector<2x32xf32>,
    %231 = vector.extract_strided_slice %44 {offsets = [62, 0, 0], sizes = [1, 2, 32], strides = [1, 1, 1]} : vector<64x2x32xf32> to vector<1x2x32xf32>
    %232 = vector.shape_cast %231 : vector<1x2x32xf32> to vector<2x32xf32>
    %c0_90 = arith.constant 0 : index
    %c1984 = arith.constant 1984 : index
    %233 = vector.load %arg9[%c0_90, %c1984] : memref<2x2048xf32, #tpu.memory_space<vmem>>, vector<2x32xf32>
    tpu.vector_store %arg9[%c0_90, %c1984], %232 {strides = array<i32>} : memref<2x2048xf32, #tpu.memory_space<vmem>>, vector<2x32xf32>,
    %234 = vector.extract_strided_slice %44 {offsets = [63, 0, 0], sizes = [1, 2, 32], strides = [1, 1, 1]} : vector<64x2x32xf32> to vector<1x2x32xf32>
    %235 = vector.shape_cast %234 : vector<1x2x32xf32> to vector<2x32xf32>
    %c0_91 = arith.constant 0 : index
    %c2016 = arith.constant 2016 : index
    %236 = vector.load %arg9[%c0_91, %c2016] : memref<2x2048xf32, #tpu.memory_space<vmem>>, vector<2x32xf32>
    tpu.vector_store %arg9[%c0_91, %c2016], %235 {strides = array<i32>} : memref<2x2048xf32, #tpu.memory_space<vmem>>, vector<2x32xf32>,
    %c0_92 = arith.constant 0 : index
    %c0_93 = arith.constant 0 : index
    %237 = vector.load %arg9[%c0_92, %c0_93] : memref<2x2048xf32, #tpu.memory_space<vmem>>, vector<2x2048xf32>
    %238 = arith.truncf %237 : vector<2x2048xf32> to vector<2x2048xbf16>
    %c0_94 = arith.constant 0 : index
    %c0_95 = arith.constant 0 : index
    %239 = vector.load %arg6[%c0_94, %c0_95] : memref<2048x10xbf16, #tpu.memory_space<vmem>>, vector<2048x10xbf16>
    %cst_96 = arith.constant dense<0.000000e+00> : vector<2x10xf32>
    %240 = tpu.matmul %238, %239, %cst_96 {dimension_numbers = #tpu.dot_dimension_numbers<[1], [0], [0], [1], [0, 0, 1, 1], [], []>} : vector<2x2048xbf16>, vector<2048x10xbf16>, vector<2x10xf32> -> vector<2x10xf32>
    %241 = vector.broadcast %39 : f32 to vector<2x10xf32>
    %242 = arith.mulf %240, %241 : vector<2x10xf32>
    %c0_97 = arith.constant 0 : index
    %c0_98 = arith.constant 0 : index
    %243 = vector.load %arg7[%c0_97, %c0_98] : memref<1x10xf32, #tpu.memory_space<vmem>>, vector<1x10xf32>
    %244 = vector.broadcast %243 : vector<1x10xf32> to vector<2x10xf32>
    %245 = arith.addf %242, %244 : vector<2x10xf32>
    %c0_99 = arith.constant 0 : index
    %c0_100 = arith.constant 0 : index
    %246 = vector.load %arg8[%c0_99, %c0_100] : memref<2x10xf32, #tpu.memory_space<vmem>>, vector<2x10xf32>
    tpu.vector_store %arg8[%c0_99, %c0_100], %245 {strides = array<i32>} : memref<2x10xf32, #tpu.memory_space<vmem>>, vector<2x10xf32>,
    %247 = vector.broadcast %39 : f32 to vector<2x2048xf32>
    %248 = arith.mulf %237, %247 : vector<2x2048xf32>
    %c0_101 = arith.constant 0 : index
    %c0_102 = arith.constant 0 : index
    %249 = vector.load %arg9[%c0_101, %c0_102] : memref<2x2048xf32, #tpu.memory_space<vmem>>, vector<2x2048xf32>
    tpu.vector_store %arg9[%c0_101, %c0_102], %248 {strides = array<i32>} : memref<2x2048xf32, #tpu.memory_space<vmem>>, vector<2x2048xf32>,
    return
  }
}

</mosaic_0001>

<bundles_post_ra>
// kernel: net_more_forward.1
= control target key start
LH: loop header
LB: loop body
LE: loop exit
PB: predicated region body
PF: predicated region fallthrough
CT: control target
= control target key end

     0   :  { %s14952_s0 = inlined_call_operand.<no memory space> [shape: f32[1,1], index: 0, kind: input, shape index: {}]   ;;  %s14953_s1 = inlined_call_operand.vmem [shape: bf16[64,2,144], index: 1, kind: input, shape index: {}]   ;;  %s14954_s2 = inlined_call_operand.vmem [shape: bf16[64,32,144], index: 2, kind: input, shape index: {}]   ;;  %s14955_s3 = inlined_call_operand.vmem [shape: f32[64,1,32], index: 3, kind: input, shape index: {}]   ;;  %s14956_s4 = inlined_call_operand.vmem [shape: f32[1,1,32], index: 4, kind: input, shape index: {}]   ;;  %s14957_s5 = inlined_call_operand.vmem [shape: f32[1,1,32], index: 5, kind: input, shape index: {}]   ;;  %s14958_s6 = inlined_call_operand.vmem [shape: bf16[2048,10], index: 6, kind: input, shape index: {}]   ;;  %s14959_s7 = inlined_call_operand.vmem [shape: f32[1,10], index: 7, kind: input, shape index: {}]   ;;  %s14960_s8 = inlined_call_operand.hbm [shape: f32[2,10], index: 8, kind: output, shape index: {0}]   ;;  %s14961_s9 = inlined_call_operand.vmem [shape: f32[2,2048], index: 9, kind: output, shape index: {1}]  }
   0x1   :  { %v15_v0 = vstv %s14952_s0 }
   0x2   :  { %16 = vst [vmem:[#allocation2] sm:$0x1] %v15_v0 }
   0x3   :  { %v10665_v1 = vld [vmem:[%s14954_s2 + $0x4] ss:$8 sps:$4 sm:$0xff]   ;;  %vm399_vm0 = vcmask 130048   ;;  %v369_v2 = vlaneseq  ;;  %v10669_v4 = vld [vmem:[%s14954_s2] ss:$8 sps:$4 sm:$0xff]  }
   0x4   :  { %v10667_v3 = vld [vmem:[%s14954_s2 + $0x24] ss:$8 sps:$4 sm:$0xff]   ;;  %9658 = vmatprep.subr.msk.bf16.mxu0 %vm399_vm0, %v10665_v1  ;;  %v10670_v5 = vld [vmem:[%s14954_s2 + $0x20] ss:$8 sps:$4 sm:$0xff]   ;;  %v11207_v6 = vmov 1966171168  }
   0x5   :  { %v367_v7 = vunpack.c.l.s4 %v11207_v6  ;;  %v11280_v8 = vshrl.u32 %v369_v2, 7  ;;  %9666 = vmatprep.subr.msk.bf16.mxu1 %vm399_vm0, %v10667_v3  ;;  %v10671_v9 = vld [vmem:[%s14954_s2 + $0x14] ss:$8 sps:$4 sm:$0xff]   ;;  %410 = vmatpush1.bf16.xpose.msra.mxu0 %v10669_v4  ;;  %v10675_v17 = vld [vmem:[%s14954_s2 + $0x10] ss:$8 sps:$4 sm:$0xff]  }
   0x6   :  { %501 = vmatpush1.bf16.xpose.msra.mxu1 %v10670_v5  ;;  %v10673_v10 = vld [vmem:[%s14954_s2 + $0x34] ss:$8 sps:$4 sm:$0xff]   ;;  %9659 = vmatprep.subr.msk.bf16.mxu0 %vm399_vm0, %v10671_v9  ;;  %v9653_v12 = vld.sshfl [vmem:[%s14953_s1] sm:$0x11 pattern:$0x75316420] }
   0x7   :  { %15024 = vst [vmem:[#allocation6_spill] sm:$0xff] %v11280_v8  ;;  %v368_v11 = vunpack.c.0.s8 %v367_v7  ;;  %9667 = vmatprep.subr.msk.bf16.mxu1 %vm399_vm0, %v10673_v10  ;;  %v365_v13 = vcombine.high %v9653_v12, %v9653_v12  ;;  %v9661_v15 = vld.sshfl [vmem:[%s14953_s1 + $0x2] sm:$0x11 pattern:$0x75316420] }
   0x8   :  { %v457_v16 = vcombine.high %v9661_v15, %v9661_v15  ;;  %v10676_v18 = vld [vmem:[%s14954_s2 + $0x30] ss:$8 sps:$4 sm:$0xff]   ;;  %v10677_v20 = vld [vmem:[%s14954_s2 + $0x44] ss:$8 sps:$4 sm:$0xff]   ;;  %v10681_v29 = vld [vmem:[%s14954_s2 + $0x40] ss:$8 sps:$4 sm:$0xff]  }
   0x9   :  { %v11295_v14 = vsub.s32 %v368_v11, %v11280_v8  ;;  %v10679_v22 = vld [vmem:[%s14954_s2 + $0x64] ss:$8 sps:$4 sm:$0xff]   ;;  %v10682_v30 = vld [vmem:[%s14954_s2 + $0x60] ss:$8 sps:$4 sm:$0xff]   ;;  %v10683_v31 = vld [vmem:[%s14954_s2 + $0x54] ss:$8 sps:$4 sm:$0xff]  }
   0xa   :  { %v9669_v23 = vld.sshfl [vmem:[%s14953_s1 + $0x4] sm:$0x11 pattern:$0x75316420]  ;;  %v10685_v32 = vld [vmem:[%s14954_s2 + $0x74] ss:$8 sps:$4 sm:$0xff]  }
   0xb   :  { %v379_v19 = vrot.slane %v365_v13, %v11295_v14  ;;  %v471_v21 = vrot.slane %v457_v16, %v11295_v14  ;;  %v9677_v24 = vld.sshfl [vmem:[%s14953_s1 + $0x6] sm:$0x11 pattern:$0x75316420]  ;;  %v548_v25 = vcombine.high %v9669_v23, %v9669_v23  ;;  %v372_v27 = vrot.slane %v9653_v12, %v11295_v14  ;;  %v10687_v35 = vld [vmem:[%s14954_s2 + $0x50] ss:$8 sps:$4 sm:$0xff]  }
   0xc   :  { %v639_v26 = vcombine.high %v9677_v24, %v9677_v24  ;;  %v464_v28 = vrot.slane %v9661_v15, %v11295_v14  ;;  %v10688_v36 = vld [vmem:[%s14954_s2 + $0x70] ss:$8 sps:$4 sm:$0xff]   ;;  %v10689_v37 = vld [vmem:[%s14954_s2 + $0x84] ss:$8 sps:$4 sm:$0xff]   ;;  %v555_v43 = vrot.slane %v9669_v23, %v11295_v14  ;;  %v646_v44 = vrot.slane %v9677_v24, %v11295_v14  ;;  %v10693_v45 = vld [vmem:[%s14954_s2 + $0x80] ss:$8 sps:$4 sm:$0xff]  }
   0xd   :  { %9660 = vmatprep.mubr.msk.bf16.mxu0 %vm399_vm0, %v379_v19  ;;  %9668 = vmatprep.mubr.msk.bf16.mxu1 %vm399_vm0, %v471_v21  ;;  %v562_v33 = vrot.slane %v548_v25, %v11295_v14  ;;  %v10691_v38 = vld [vmem:[%s14954_s2 + $0xa4] ss:$8 sps:$4 sm:$0xff]   ;;  %v9685_v39 = vld.sshfl [vmem:[%s14953_s1 + $0x8] sm:$0x11 pattern:$0x75316420] }
   0xe   :  { %412 = vmatpush1.bf16.xpose.msra.mxu0 %v10675_v17  ;;  %503 = vmatpush1.bf16.xpose.msra.mxu1 %v10676_v18  ;;  %v653_v34 = vrot.slane %v639_v26, %v11295_v14  ;;  %v9693_v40 = vld.sshfl [vmem:[%s14953_s1 + $0xa] sm:$0x11 pattern:$0x75316420]  ;;  %v730_v41 = vcombine.high %v9685_v39, %v9685_v39  ;;  %v10695_v47 = vld [vmem:[%s14954_s2 + $0x94] ss:$8 sps:$4 sm:$0xff]   ;;  %v737_v59 = vrot.slane %v9685_v39, %v11295_v14 }
   0xf   :  { %9674 = vmatprep.subr.msk.bf16.mxu0 %vm399_vm0, %v10677_v20  ;;  %9682 = vmatprep.subr.msk.bf16.mxu1 %vm399_vm0, %v10679_v22  ;;  %v821_v42 = vcombine.high %v9693_v40, %v9693_v40  ;;  %v10694_v46 = vld [vmem:[%s14954_s2 + $0xa0] ss:$8 sps:$4 sm:$0xff]   ;;  %v10697_v48 = vld [vmem:[%s14954_s2 + $0xb4] ss:$8 sps:$4 sm:$0xff]   ;;  %v10699_v51 = vld [vmem:[%s14954_s2 + $0x90] ss:$8 sps:$4 sm:$0xff]   ;;  %v828_v60 = vrot.slane %v9693_v40, %v11295_v14 }
  0x10   :  { %v744_v49 = vrot.slane %v730_v41, %v11295_v14  ;;  %v10700_v52 = vld [vmem:[%s14954_s2 + $0xb0] ss:$8 sps:$4 sm:$0xff]   ;;  %v10701_v53 = vld [vmem:[%s14954_s2 + $0xc4] ss:$8 sps:$4 sm:$0xff]   ;;  %v10705_v61 = vld [vmem:[%s14954_s2 + $0xc0] ss:$8 sps:$4 sm:$0xff]  }
  0x11   :  { %v835_v50 = vrot.slane %v821_v42, %v11295_v14  ;;  %v10703_v54 = vld [vmem:[%s14954_s2 + $0xe4] ss:$8 sps:$4 sm:$0xff]   ;;  %v10706_v62 = vld [vmem:[%s14954_s2 + $0xe0] ss:$8 sps:$4 sm:$0xff]   ;;  %v10707_v63 = vld [vmem:[%s14954_s2 + $0xd4] ss:$8 sps:$4 sm:$0xff]  }
  0x12   :  { %v9701_v55 = vld.sshfl [vmem:[%s14953_s1 + $0xc] sm:$0x11 pattern:$0x75316420]  ;;  %v10709_v0 = vld [vmem:[%s14954_s2 + $0xf4] ss:$8 sps:$4 sm:$0xff]  }
  0x13   :  { %v9709_v56 = vld.sshfl [vmem:[%s14953_s1 + $0xe] sm:$0x11 pattern:$0x75316420]  ;;  %v912_v57 = vcombine.high %v9701_v55, %v9701_v55  ;;  %v10711_v3 = vld [vmem:[%s14954_s2 + $0xd0] ss:$8 sps:$4 sm:$0xff]   ;;  %v919_v12 = vrot.slane %v9701_v55, %v11295_v14 }
  0x14   :  { %v1003_v58 = vcombine.high %v9709_v56, %v9709_v56  ;;  %v10712_v4 = vld [vmem:[%s14954_s2 + $0xf0] ss:$8 sps:$4 sm:$0xff]   ;;  %v10713_v5 = vld [vmem:[%s14954_s2 + $0x104] ss:$8 sps:$4 sm:$0xff]   ;;  %v1010_v13 = vrot.slane %v9709_v56, %v11295_v14  ;;  %v10717_v15 = vld [vmem:[%s14954_s2 + $0x100] ss:$8 sps:$4 sm:$0xff]  }
  0x15   :  { %442 = vmatmul.mubr.bf16.vlgmr.msra.gmra.mrb[0].mxu0 %v372_v27  ;;  %533 = vmatmul.mubr.bf16.vlgmr.msra.gmra.mrb[0].mxu1 %v464_v28  ;;  %v926_v1 = vrot.slane %v912_v57, %v11295_v14  ;;  %v10715_v6 = vld [vmem:[%s14954_s2 + $0x124] ss:$8 sps:$4 sm:$0xff]   ;;  %v9717_v7 = vld.sshfl [vmem:[%s14953_s1 + $0x10] sm:$0x11 pattern:$0x75316420] }
  0x16   :  { %592 = vmatpush1.bf16.xpose.msra.mxu0 %v10681_v29  ;;  %683 = vmatpush1.bf16.xpose.msra.mxu1 %v10682_v30  ;;  %v1017_v2 = vrot.slane %v1003_v58, %v11295_v14  ;;  %v9725_v9 = vld.sshfl [vmem:[%s14953_s1 + $0x12] sm:$0x11 pattern:$0x75316420]  ;;  %v1094_v10 = vcombine.high %v9717_v7, %v9717_v7  ;;  %v10718_v16 = vld [vmem:[%s14954_s2 + $0x120] ss:$8 sps:$4 sm:$0xff]   ;;  %v1101_v30 = vrot.slane %v9717_v7, %v11295_v14 }
  0x17   :  { %9675 = vmatprep.subr.msk.bf16.mxu0 %vm399_vm0, %v10683_v31  ;;  %9683 = vmatprep.subr.msk.bf16.mxu1 %vm399_vm0, %v10685_v32  ;;  %v1185_v11 = vcombine.high %v9725_v9, %v9725_v9  ;;  %v10719_v17 = vld [vmem:[%s14954_s2 + $0x114] ss:$8 sps:$4 sm:$0xff]   ;;  %v10723_v21 = vld [vmem:[%s14954_s2 + $0x110] ss:$8 sps:$4 sm:$0xff]   ;;  %v10725_v23 = vld [vmem:[%s14954_s2 + $0x144] ss:$8 sps:$4 sm:$0xff]   ;;  %v1192_v31 = vrot.slane %v9725_v9, %v11295_v14 }
  0x18   :  { %9676 = vmatprep.mubr.msk.bf16.mxu0 %vm399_vm0, %v562_v33  ;;  %9684 = vmatprep.mubr.msk.bf16.mxu1 %vm399_vm0, %v653_v34  ;;  %v10721_v18 = vld [vmem:[%s14954_s2 + $0x134] ss:$8 sps:$4 sm:$0xff]   ;;  %v1108_v19 = vrot.slane %v1094_v10, %v11295_v14  ;;  %v10724_v22 = vld [vmem:[%s14954_s2 + $0x130] ss:$8 sps:$4 sm:$0xff]   ;;  %v35_v24 = vld [vmem:[#allocation2] sm:$0x1] }
  0x19   :  { %v1199_v20 = vrot.slane %v1185_v11, %v11295_v14  ;;  %v10727_v25 = vld [vmem:[%s14954_s2 + $0x164] ss:$8 sps:$4 sm:$0xff]   ;;  %10534 = vpush %v35_v24  ;;  %v9733_v26 = vld.sshfl [vmem:[%s14953_s1 + $0x14] sm:$0x11 pattern:$0x75316420] }
  0x1a   :  { %v9741_v27 = vld.sshfl [vmem:[%s14953_s1 + $0x16] sm:$0x11 pattern:$0x75316420]  ;;  %v1276_v28 = vcombine.high %v9733_v26, %v9733_v26  ;;  %v10729_v32 = vld [vmem:[%s14954_s2 + $0x140] ss:$8 sps:$4 sm:$0xff]  }
  0x1b   :  { %v1367_v29 = vcombine.high %v9741_v27, %v9741_v27  ;;  %v10730_v33 = vld [vmem:[%s14954_s2 + $0x160] ss:$8 sps:$4 sm:$0xff]   ;;  %v10731_v34 = vld [vmem:[%s14954_s2 + $0x154] ss:$8 sps:$4 sm:$0xff]   ;;  %v10736_v39 = vld [vmem:[%s14954_s2 + $0x170] ss:$8 sps:$4 sm:$0xff]  }
  0x1c   :  { %v10737_v40 = vld [vmem:[%s14954_s2 + $0x184] ss:$8 sps:$4 sm:$0xff]   ;;  %v9749_v42 = vld.sshfl [vmem:[%s14953_s1 + $0x18] sm:$0x11 pattern:$0x75316420] }
  0x1d   :  { %v10739_v41 = vld [vmem:[%s14954_s2 + $0x1a4] ss:$8 sps:$4 sm:$0xff]   ;;  %v10748_v55 = vld [vmem:[%s14954_s2 + $0x1b0] ss:$8 sps:$4 sm:$0xff]  }
  0x1e   :  { %594 = vmatpush1.bf16.xpose.msra.mxu0 %v10687_v35  ;;  %685 = vmatpush1.bf16.xpose.msra.mxu1 %v10688_v36  ;;  %v10733_v35 = vld [vmem:[%s14954_s2 + $0x174] ss:$8 sps:$4 sm:$0xff]   ;;  %v1290_v36 = vrot.slane %v1276_v28, %v11295_v14  ;;  %v10749_v56 = vld [vmem:[%s14954_s2 + $0x1c4] ss:$8 sps:$4 sm:$0xff]   ;;  %v10760_v7 = vld [vmem:[%s14954_s2 + $0x1f0] ss:$8 sps:$4 sm:$0xff]  }
  0x1f   :  { %9690 = vmatprep.subr.msk.bf16.mxu0 %vm399_vm0, %v10689_v37  ;;  %9698 = vmatprep.subr.msk.bf16.mxu1 %vm399_vm0, %v10691_v38  ;;  %v1381_v37 = vrot.slane %v1367_v29, %v11295_v14  ;;  %v10735_v38 = vld [vmem:[%s14954_s2 + $0x150] ss:$8 sps:$4 sm:$0xff]   ;;  %v10751_v57 = vld [vmem:[%s14954_s2 + $0x1e4] ss:$8 sps:$4 sm:$0xff]  }
  0x20   :  { %v9765_v58 = vld.sshfl [vmem:[%s14953_s1 + $0x1c] sm:$0x11 pattern:$0x75316420]  ;;  %v10761_v9 = vld [vmem:[%s14954_s2 + $0x204] ss:$8 sps:$4 sm:$0xff]  }
  0x21   :  { %v10763_v10 = vld [vmem:[%s14954_s2 + $0x224] ss:$8 sps:$4 sm:$0xff]   ;;  %v9781_v11 = vld.sshfl [vmem:[%s14953_s1 + $0x20] sm:$0x11 pattern:$0x75316420] }
  0x22   :  { %v10771_v24 = vld [vmem:[%s14954_s2 + $0x210] ss:$8 sps:$4 sm:$0xff]   ;;  %v9797_v28 = vld.sshfl [vmem:[%s14953_s1 + $0x24] sm:$0x11 pattern:$0x75316420] }
  0x23   :  { %v9805_v29 = vld.sshfl [vmem:[%s14953_s1 + $0x26] sm:$0x11 pattern:$0x75316420] }
  0x25   :  { %624 = vmatmul.mubr.bf16.vlgmr.msra.gmra.mrb[4].mxu0 %v555_v43  ;;  %715 = vmatmul.mubr.bf16.vlgmr.msra.gmra.mrb[4].mxu1 %v646_v44  ;;  %v9757_v43 = vld.sshfl [vmem:[%s14953_s1 + $0x1a] sm:$0x11 pattern:$0x75316420]  ;;  %v10741_v44 = vld [vmem:[%s14954_s2 + $0x180] ss:$8 sps:$4 sm:$0xff]  }
  0x26   :  { %774 = vmatpush1.bf16.xpose.msra.mxu0 %v10693_v45  ;;  %865 = vmatpush1.bf16.xpose.msra.mxu1 %v10694_v46  ;;  %v10742_v45 = vld [vmem:[%s14954_s2 + $0x1a0] ss:$8 sps:$4 sm:$0xff]   ;;  %v1458_v46 = vcombine.high %v9749_v42, %v9749_v42 }
  0x27   :  { %9691 = vmatprep.subr.msk.bf16.mxu0 %vm399_vm0, %v10695_v47  ;;  %9699 = vmatprep.subr.msk.bf16.mxu1 %vm399_vm0, %v10697_v48  ;;  %v1549_v47 = vcombine.high %v9757_v43, %v9757_v43  ;;  %v1283_v48 = vrot.slane %v9733_v26, %v11295_v14  ;;  %v10773_v26 = vld [vmem:[%s14954_s2 + $0x244] ss:$8 sps:$4 sm:$0xff]  }
  0x28   :  { %9692 = vmatprep.mubr.msk.bf16.mxu0 %vm399_vm0, %v744_v49  ;;  %9700 = vmatprep.mubr.msk.bf16.mxu1 %vm399_vm0, %v835_v50  ;;  %v1374_v49 = vrot.slane %v9741_v27, %v11295_v14  ;;  %v10743_v50 = vld [vmem:[%s14954_s2 + $0x194] ss:$8 sps:$4 sm:$0xff]   ;;  %v10775_v27 = vld [vmem:[%s14954_s2 + $0x264] ss:$8 sps:$4 sm:$0xff]  }
  0x2e   :  { %776 = vmatpush1.bf16.xpose.msra.mxu0 %v10699_v51  ;;  %867 = vmatpush1.bf16.xpose.msra.mxu1 %v10700_v52  ;;  %v10745_v51 = vld [vmem:[%s14954_s2 + $0x1b4] ss:$8 sps:$4 sm:$0xff]   ;;  %v1472_v52 = vrot.slane %v1458_v46, %v11295_v14  ;;  %v10789_v46 = vld [vmem:[%s14954_s2 + $0x280] ss:$8 sps:$4 sm:$0xff]  }
  0x2f   :  { %9706 = vmatprep.subr.msk.bf16.mxu0 %vm399_vm0, %v10701_v53  ;;  %9714 = vmatprep.subr.msk.bf16.mxu1 %vm399_vm0, %v10703_v54  ;;  %v1563_v53 = vrot.slane %v1549_v47, %v11295_v14  ;;  %v10747_v54 = vld [vmem:[%s14954_s2 + $0x190] ss:$8 sps:$4 sm:$0xff]   ;;  %v10790_v47 = vld [vmem:[%s14954_s2 + $0x2a0] ss:$8 sps:$4 sm:$0xff]  }
  0x35   :  { %806 = vmatmul.mubr.bf16.vlgmr.msra.gmra.mrb[8].mxu0 %v737_v59  ;;  %897 = vmatmul.mubr.bf16.vlgmr.msra.gmra.mrb[8].mxu1 %v828_v60  ;;  %v9773_v59 = vld.sshfl [vmem:[%s14953_s1 + $0x1e] sm:$0x11 pattern:$0x75316420]  ;;  %v10753_v60 = vld [vmem:[%s14954_s2 + $0x1c0] ss:$8 sps:$4 sm:$0xff]  }
  0x36   :  { %956 = vmatpush1.bf16.xpose.msra.mxu0 %v10705_v61  ;;  %1047 = vmatpush1.bf16.xpose.msra.mxu1 %v10706_v62  ;;  %v10754_v61 = vld [vmem:[%s14954_s2 + $0x1e0] ss:$8 sps:$4 sm:$0xff]   ;;  %v1640_v62 = vcombine.high %v9765_v58, %v9765_v58 }
  0x37   :  { %9707 = vmatprep.subr.msk.bf16.mxu0 %vm399_vm0, %v10707_v63  ;;  %9715 = vmatprep.subr.msk.bf16.mxu1 %vm399_vm0, %v10709_v0  ;;  %v1731_v63 = vcombine.high %v9773_v59, %v9773_v59  ;;  %v1465_v0 = vrot.slane %v9749_v42, %v11295_v14  ;;  %v10785_v42 = vld [vmem:[%s14954_s2 + $0x284] ss:$8 sps:$4 sm:$0xff]  }
  0x38   :  { %9708 = vmatprep.mubr.msk.bf16.mxu0 %vm399_vm0, %v926_v1  ;;  %9716 = vmatprep.mubr.msk.bf16.mxu1 %vm399_vm0, %v1017_v2  ;;  %v1556_v1 = vrot.slane %v9757_v43, %v11295_v14  ;;  %v10755_v2 = vld [vmem:[%s14954_s2 + $0x1d4] ss:$8 sps:$4 sm:$0xff]   ;;  %v10787_v43 = vld [vmem:[%s14954_s2 + $0x2a4] ss:$8 sps:$4 sm:$0xff]  }
  0x3e   :  { %958 = vmatpush1.bf16.xpose.msra.mxu0 %v10711_v3  ;;  %1049 = vmatpush1.bf16.xpose.msra.mxu1 %v10712_v4  ;;  %v10757_v3 = vld [vmem:[%s14954_s2 + $0x1f4] ss:$8 sps:$4 sm:$0xff]   ;;  %v1654_v4 = vrot.slane %v1640_v62, %v11295_v14  ;;  %v10801_v62 = vld [vmem:[%s14954_s2 + $0x2c0] ss:$8 sps:$4 sm:$0xff]  }
  0x3f   :  { %9722 = vmatprep.subr.msk.bf16.mxu0 %vm399_vm0, %v10713_v5  ;;  %9730 = vmatprep.subr.msk.bf16.mxu1 %vm399_vm0, %v10715_v6  ;;  %v1745_v5 = vrot.slane %v1731_v63, %v11295_v14  ;;  %v10759_v6 = vld [vmem:[%s14954_s2 + $0x1d0] ss:$8 sps:$4 sm:$0xff]   ;;  %v10802_v63 = vld [vmem:[%s14954_s2 + $0x2e0] ss:$8 sps:$4 sm:$0xff]  }
  0x45   :  { %988 = vmatmul.mubr.bf16.vlgmr.msra.gmra.mrb[12].mxu0 %v919_v12  ;;  %1079 = vmatmul.mubr.bf16.vlgmr.msra.gmra.mrb[12].mxu1 %v1010_v13  ;;  %v9789_v12 = vld.sshfl [vmem:[%s14953_s1 + $0x22] sm:$0x11 pattern:$0x75316420] }
  0x46   :  { %1138 = vmatpush1.bf16.xpose.msra.mxu0 %v10717_v15  ;;  %1229 = vmatpush1.bf16.xpose.msra.mxu1 %v10718_v16  ;;  %v10765_v13 = vld [vmem:[%s14954_s2 + $0x200] ss:$8 sps:$4 sm:$0xff]   ;;  %v1822_v16 = vcombine.high %v9781_v11, %v9781_v11 }
  0x47   :  { %9723 = vmatprep.subr.msk.bf16.mxu0 %vm399_vm0, %v10719_v17  ;;  %9731 = vmatprep.subr.msk.bf16.mxu1 %vm399_vm0, %v10721_v18  ;;  %v10766_v15 = vld [vmem:[%s14954_s2 + $0x220] ss:$8 sps:$4 sm:$0xff]   ;;  %v1913_v17 = vcombine.high %v9789_v12, %v9789_v12  ;;  %v1647_v18 = vrot.slane %v9765_v58, %v11295_v14  ;;  %v10797_v58 = vld [vmem:[%s14954_s2 + $0x2c4] ss:$8 sps:$4 sm:$0xff]  }
  0x48   :  { %9724 = vmatprep.mubr.msk.bf16.mxu0 %vm399_vm0, %v1108_v19  ;;  %9732 = vmatprep.mubr.msk.bf16.mxu1 %vm399_vm0, %v1199_v20  ;;  %v1738_v19 = vrot.slane %v9773_v59, %v11295_v14  ;;  %v10767_v20 = vld [vmem:[%s14954_s2 + $0x214] ss:$8 sps:$4 sm:$0xff]   ;;  %v10799_v59 = vld [vmem:[%s14954_s2 + $0x2e4] ss:$8 sps:$4 sm:$0xff]  }
  0x4e   :  { %1140 = vmatpush1.bf16.xpose.msra.mxu0 %v10723_v21  ;;  %1231 = vmatpush1.bf16.xpose.msra.mxu1 %v10724_v22  ;;  %v10769_v21 = vld [vmem:[%s14954_s2 + $0x234] ss:$8 sps:$4 sm:$0xff]   ;;  %v1836_v22 = vrot.slane %v1822_v16, %v11295_v14  ;;  %v10813_v16 = vld [vmem:[%s14954_s2 + $0x300] ss:$8 sps:$4 sm:$0xff]  }
  0x4f   :  { %9738 = vmatprep.subr.msk.bf16.mxu0 %vm399_vm0, %v10725_v23  ;;  %9746 = vmatprep.subr.msk.bf16.mxu1 %vm399_vm0, %v10727_v25  ;;  %v1927_v23 = vrot.slane %v1913_v17, %v11295_v14  ;;  %v10772_v25 = vld [vmem:[%s14954_s2 + $0x230] ss:$8 sps:$4 sm:$0xff]   ;;  %v10814_v17 = vld [vmem:[%s14954_s2 + $0x320] ss:$8 sps:$4 sm:$0xff]  }
  0x55   :  { %1170 = vmatmul.mubr.bf16.vlgmr.msra.gmra.mrb[16].mxu0 %v1101_v30  ;;  %1261 = vmatmul.mubr.bf16.vlgmr.msra.gmra.mrb[16].mxu1 %v1192_v31  ;;  %v10777_v30 = vld [vmem:[%s14954_s2 + $0x240] ss:$8 sps:$4 sm:$0xff]  }
  0x56   :  { %1320 = vmatpush1.bf16.xpose.msra.mxu0 %v10729_v32  ;;  %1411 = vmatpush1.bf16.xpose.msra.mxu1 %v10730_v33  ;;  %v10778_v31 = vld [vmem:[%s14954_s2 + $0x260] ss:$8 sps:$4 sm:$0xff]   ;;  %v2004_v32 = vcombine.high %v9797_v28, %v9797_v28  ;;  %v2095_v33 = vcombine.high %v9805_v29, %v9805_v29 }
  0x57   :  { %9739 = vmatprep.subr.msk.bf16.mxu0 %vm399_vm0, %v10731_v34  ;;  %9747 = vmatprep.subr.msk.bf16.mxu1 %vm399_vm0, %v10733_v35  ;;  %v1829_v34 = vrot.slane %v9781_v11, %v11295_v14  ;;  %v1920_v35 = vrot.slane %v9789_v12, %v11295_v14  ;;  %v10809_v11 = vld [vmem:[%s14954_s2 + $0x304] ss:$8 sps:$4 sm:$0xff]  }
  0x58   :  { %9740 = vmatprep.mubr.msk.bf16.mxu0 %vm399_vm0, %v1290_v36  ;;  %9748 = vmatprep.mubr.msk.bf16.mxu1 %vm399_vm0, %v1381_v37  ;;  %v10779_v36 = vld [vmem:[%s14954_s2 + $0x254] ss:$8 sps:$4 sm:$0xff]   ;;  %v10811_v12 = vld [vmem:[%s14954_s2 + $0x324] ss:$8 sps:$4 sm:$0xff]  }
  0x59   :  { %v10781_v37 = vld [vmem:[%s14954_s2 + $0x274] ss:$8 sps:$4 sm:$0xff]  }
  0x5e   :  { %1322 = vmatpush1.bf16.xpose.msra.mxu0 %v10735_v38  ;;  %1413 = vmatpush1.bf16.xpose.msra.mxu1 %v10736_v39  ;;  %v2018_v38 = vrot.slane %v2004_v32, %v11295_v14  ;;  %v2109_v39 = vrot.slane %v2095_v33, %v11295_v14  ;;  %v10825_v32 = vld [vmem:[%s14954_s2 + $0x340] ss:$8 sps:$4 sm:$0xff]  }
  0x5f   :  { %9754 = vmatprep.subr.msk.bf16.mxu0 %vm399_vm0, %v10737_v40  ;;  %9762 = vmatprep.subr.msk.bf16.mxu1 %vm399_vm0, %v10739_v41  ;;  %v10783_v40 = vld [vmem:[%s14954_s2 + $0x250] ss:$8 sps:$4 sm:$0xff]   ;;  %v10826_v33 = vld [vmem:[%s14954_s2 + $0x360] ss:$8 sps:$4 sm:$0xff]  }
  0x60   :  { %v10784_v41 = vld [vmem:[%s14954_s2 + $0x270] ss:$8 sps:$4 sm:$0xff]  }
  0x65   :  { %1352 = vmatmul.mubr.bf16.vlgmr.msra.gmra.mrb[20].mxu0 %v1283_v48  ;;  %1443 = vmatmul.mubr.bf16.vlgmr.msra.gmra.mrb[20].mxu1 %v1374_v49 }
  0x66   :  { %1502 = vmatpush1.bf16.xpose.msra.mxu0 %v10741_v44  ;;  %1593 = vmatpush1.bf16.xpose.msra.mxu1 %v10742_v45  ;;  %v9813_v44 = vld.sshfl [vmem:[%s14953_s1 + $0x28] sm:$0x11 pattern:$0x75316420] }
  0x67   :  { %9755 = vmatprep.subr.msk.bf16.mxu0 %vm399_vm0, %v10743_v50  ;;  %9763 = vmatprep.subr.msk.bf16.mxu1 %vm399_vm0, %v10745_v51  ;;  %v9821_v45 = vld.sshfl [vmem:[%s14953_s1 + $0x2a] sm:$0x11 pattern:$0x75316420]  ;;  %v2186_v48 = vcombine.high %v9813_v44, %v9813_v44  ;;  %v2011_v50 = vrot.slane %v9797_v28, %v11295_v14  ;;  %v2102_v51 = vrot.slane %v9805_v29, %v11295_v14  ;;  %v10821_v28 = vld [vmem:[%s14954_s2 + $0x344] ss:$8 sps:$4 sm:$0xff]  }
  0x68   :  { %9756 = vmatprep.mubr.msk.bf16.mxu0 %vm399_vm0, %v1472_v52  ;;  %9764 = vmatprep.mubr.msk.bf16.mxu1 %vm399_vm0, %v1563_v53  ;;  %v2277_v49 = vcombine.high %v9821_v45, %v9821_v45  ;;  %v10791_v52 = vld [vmem:[%s14954_s2 + $0x294] ss:$8 sps:$4 sm:$0xff]   ;;  %v10823_v29 = vld [vmem:[%s14954_s2 + $0x364] ss:$8 sps:$4 sm:$0xff]  }
  0x69   :  { %v10793_v53 = vld [vmem:[%s14954_s2 + $0x2b4] ss:$8 sps:$4 sm:$0xff]  }
  0x6e   :  { %1504 = vmatpush1.bf16.xpose.msra.mxu0 %v10747_v54  ;;  %1595 = vmatpush1.bf16.xpose.msra.mxu1 %v10748_v55  ;;  %v2200_v54 = vrot.slane %v2186_v48, %v11295_v14  ;;  %v2291_v55 = vrot.slane %v2277_v49, %v11295_v14  ;;  %v10837_v48 = vld [vmem:[%s14954_s2 + $0x380] ss:$8 sps:$4 sm:$0xff]  }
  0x6f   :  { %9770 = vmatprep.subr.msk.bf16.mxu0 %vm399_vm0, %v10749_v56  ;;  %9778 = vmatprep.subr.msk.bf16.mxu1 %vm399_vm0, %v10751_v57  ;;  %v10795_v56 = vld [vmem:[%s14954_s2 + $0x290] ss:$8 sps:$4 sm:$0xff]   ;;  %v10838_v49 = vld [vmem:[%s14954_s2 + $0x3a0] ss:$8 sps:$4 sm:$0xff]  }
  0x70   :  { %v10796_v57 = vld [vmem:[%s14954_s2 + $0x2b0] ss:$8 sps:$4 sm:$0xff]  }
  0x75   :  { %1534 = vmatmul.mubr.bf16.vlgmr.msra.gmra.mrb[24].mxu0 %v1465_v0  ;;  %1625 = vmatmul.mubr.bf16.vlgmr.msra.gmra.mrb[24].mxu1 %v1556_v1 }
  0x76   :  { %1684 = vmatpush1.bf16.xpose.msra.mxu0 %v10753_v60  ;;  %1775 = vmatpush1.bf16.xpose.msra.mxu1 %v10754_v61  ;;  %v9829_v60 = vld.sshfl [vmem:[%s14953_s1 + $0x2c] sm:$0x11 pattern:$0x75316420] }
  0x77   :  { %9771 = vmatprep.subr.msk.bf16.mxu0 %vm399_vm0, %v10755_v2  ;;  %9779 = vmatprep.subr.msk.bf16.mxu1 %vm399_vm0, %v10757_v3  ;;  %v9837_v61 = vld.sshfl [vmem:[%s14953_s1 + $0x2e] sm:$0x11 pattern:$0x75316420]  ;;  %v2368_v0 = vcombine.high %v9829_v60, %v9829_v60  ;;  %v2193_v2 = vrot.slane %v9813_v44, %v11295_v14  ;;  %v2284_v3 = vrot.slane %v9821_v45, %v11295_v14 }
  0x78   :  { %9772 = vmatprep.mubr.msk.bf16.mxu0 %vm399_vm0, %v1654_v4  ;;  %9780 = vmatprep.mubr.msk.bf16.mxu1 %vm399_vm0, %v1745_v5  ;;  %v2459_v1 = vcombine.high %v9837_v61, %v9837_v61  ;;  %v10803_v4 = vld [vmem:[%s14954_s2 + $0x2d4] ss:$8 sps:$4 sm:$0xff]   ;;  %v10833_v44 = vld [vmem:[%s14954_s2 + $0x384] ss:$8 sps:$4 sm:$0xff]  }
  0x79   :  { %v10805_v5 = vld [vmem:[%s14954_s2 + $0x2f4] ss:$8 sps:$4 sm:$0xff]   ;;  %v10835_v45 = vld [vmem:[%s14954_s2 + $0x3a4] ss:$8 sps:$4 sm:$0xff]  }
  0x7e   :  { %1686 = vmatpush1.bf16.xpose.msra.mxu0 %v10759_v6  ;;  %1777 = vmatpush1.bf16.xpose.msra.mxu1 %v10760_v7  ;;  %v2382_v6 = vrot.slane %v2368_v0, %v11295_v14  ;;  %v2473_v7 = vrot.slane %v2459_v1, %v11295_v14  ;;  %v10845_v0 = vld [vmem:[%s14954_s2 + $0x3c4] ss:$8 sps:$4 sm:$0xff]  }
  0x7f   :  { %9786 = vmatprep.subr.msk.bf16.mxu0 %vm399_vm0, %v10761_v9  ;;  %9794 = vmatprep.subr.msk.bf16.mxu1 %vm399_vm0, %v10763_v10  ;;  %v10807_v9 = vld [vmem:[%s14954_s2 + $0x2d0] ss:$8 sps:$4 sm:$0xff]   ;;  %v10847_v1 = vld [vmem:[%s14954_s2 + $0x3e4] ss:$8 sps:$4 sm:$0xff]  }
  0x80   :  { %v10808_v10 = vld [vmem:[%s14954_s2 + $0x2f0] ss:$8 sps:$4 sm:$0xff]  }
  0x85   :  { %1716 = vmatmul.mubr.bf16.vlgmr.msra.gmra.mrb[28].mxu0 %v1647_v18  ;;  %1807 = vmatmul.mubr.bf16.vlgmr.msra.gmra.mrb[28].mxu1 %v1738_v19 }
  0x86   :  { %1866 = vmatpush1.bf16.xpose.msra.mxu0 %v10765_v13  ;;  %1957 = vmatpush1.bf16.xpose.msra.mxu1 %v10766_v15  ;;  %v9845_v13 = vld.sshfl [vmem:[%s14953_s1 + $0x30] sm:$0x11 pattern:$0x75316420] }
  0x87   :  { %9787 = vmatprep.subr.msk.bf16.mxu0 %vm399_vm0, %v10767_v20  ;;  %9795 = vmatprep.subr.msk.bf16.mxu1 %vm399_vm0, %v10769_v21  ;;  %v9853_v15 = vld.sshfl [vmem:[%s14953_s1 + $0x32] sm:$0x11 pattern:$0x75316420]  ;;  %v2550_v18 = vcombine.high %v9845_v13, %v9845_v13  ;;  %v2375_v20 = vrot.slane %v9829_v60, %v11295_v14  ;;  %v2466_v21 = vrot.slane %v9837_v61, %v11295_v14 }
  0x88   :  { %9788 = vmatprep.mubr.msk.bf16.mxu0 %vm399_vm0, %v1836_v22  ;;  %9796 = vmatprep.mubr.msk.bf16.mxu1 %vm399_vm0, %v1927_v23  ;;  %v2641_v19 = vcombine.high %v9853_v15, %v9853_v15  ;;  %v10815_v22 = vld [vmem:[%s14954_s2 + $0x314] ss:$8 sps:$4 sm:$0xff]   ;;  %v10843_v60 = vld [vmem:[%s14954_s2 + $0x390] ss:$8 sps:$4 sm:$0xff]  }
  0x89   :  { %v10817_v23 = vld [vmem:[%s14954_s2 + $0x334] ss:$8 sps:$4 sm:$0xff]   ;;  %v10844_v61 = vld [vmem:[%s14954_s2 + $0x3b0] ss:$8 sps:$4 sm:$0xff]  }
  0x8e   :  { %1868 = vmatpush1.bf16.xpose.msra.mxu0 %v10771_v24  ;;  %1959 = vmatpush1.bf16.xpose.msra.mxu1 %v10772_v25  ;;  %v2564_v24 = vrot.slane %v2550_v18, %v11295_v14  ;;  %v2655_v25 = vrot.slane %v2641_v19, %v11295_v14 }
  0x8f   :  { %9802 = vmatprep.subr.msk.bf16.mxu0 %vm399_vm0, %v10773_v26  ;;  %9810 = vmatprep.subr.msk.bf16.mxu1 %vm399_vm0, %v10775_v27  ;;  %v10819_v26 = vld [vmem:[%s14954_s2 + $0x310] ss:$8 sps:$4 sm:$0xff]  }
  0x90   :  { %v10820_v27 = vld [vmem:[%s14954_s2 + $0x330] ss:$8 sps:$4 sm:$0xff]  }
  0x95   :  { %1898 = vmatmul.mubr.bf16.vlgmr.msra.gmra.mrb[32].mxu0 %v1829_v34  ;;  %1989 = vmatmul.mubr.bf16.vlgmr.msra.gmra.mrb[32].mxu1 %v1920_v35 }
  0x96   :  { %2048 = vmatpush1.bf16.xpose.msra.mxu0 %v10777_v30  ;;  %2139 = vmatpush1.bf16.xpose.msra.mxu1 %v10778_v31  ;;  %v9861_v30 = vld.sshfl [vmem:[%s14953_s1 + $0x34] sm:$0x11 pattern:$0x75316420] }
  0x97   :  { %9803 = vmatprep.subr.msk.bf16.mxu0 %vm399_vm0, %v10779_v36  ;;  %9811 = vmatprep.subr.msk.bf16.mxu1 %vm399_vm0, %v10781_v37  ;;  %v9869_v31 = vld.sshfl [vmem:[%s14953_s1 + $0x36] sm:$0x11 pattern:$0x75316420]  ;;  %v2732_v34 = vcombine.high %v9861_v30, %v9861_v30  ;;  %v2557_v36 = vrot.slane %v9845_v13, %v11295_v14  ;;  %v2648_v37 = vrot.slane %v9853_v15, %v11295_v14 }
  0x98   :  { %9804 = vmatprep.mubr.msk.bf16.mxu0 %vm399_vm0, %v2018_v38  ;;  %9812 = vmatprep.mubr.msk.bf16.mxu1 %vm399_vm0, %v2109_v39  ;;  %v2823_v35 = vcombine.high %v9869_v31, %v9869_v31  ;;  %v10827_v38 = vld [vmem:[%s14954_s2 + $0x354] ss:$8 sps:$4 sm:$0xff]  }
  0x99   :  { %v10829_v39 = vld [vmem:[%s14954_s2 + $0x374] ss:$8 sps:$4 sm:$0xff]  }
  0x9e   :  { %2050 = vmatpush1.bf16.xpose.msra.mxu0 %v10783_v40  ;;  %2141 = vmatpush1.bf16.xpose.msra.mxu1 %v10784_v41  ;;  %v2746_v40 = vrot.slane %v2732_v34, %v11295_v14  ;;  %v2837_v41 = vrot.slane %v2823_v35, %v11295_v14  ;;  %v10861_v34 = vld [vmem:[%s14954_s2 + $0x400] ss:$8 sps:$4 sm:$0xff]  }
  0x9f   :  { %9818 = vmatprep.subr.msk.bf16.mxu0 %vm399_vm0, %v10785_v42  ;;  %9826 = vmatprep.subr.msk.bf16.mxu1 %vm399_vm0, %v10787_v43  ;;  %v10831_v42 = vld [vmem:[%s14954_s2 + $0x350] ss:$8 sps:$4 sm:$0xff]   ;;  %v10862_v35 = vld [vmem:[%s14954_s2 + $0x420] ss:$8 sps:$4 sm:$0xff]  }
  0xa0   :  { %v10832_v43 = vld [vmem:[%s14954_s2 + $0x370] ss:$8 sps:$4 sm:$0xff]  }
  0xa5   :  { %2080 = vmatmul.mubr.bf16.vlgmr.msra.gmra.mrb[36].mxu0 %v2011_v50  ;;  %2171 = vmatmul.mubr.bf16.vlgmr.msra.gmra.mrb[36].mxu1 %v2102_v51 }
  0xa6   :  { %2230 = vmatpush1.bf16.xpose.msra.mxu0 %v10789_v46  ;;  %2321 = vmatpush1.bf16.xpose.msra.mxu1 %v10790_v47  ;;  %v9877_v46 = vld.sshfl [vmem:[%s14953_s1 + $0x38] sm:$0x11 pattern:$0x75316420] }
  0xa7   :  { %9819 = vmatprep.subr.msk.bf16.mxu0 %vm399_vm0, %v10791_v52  ;;  %9827 = vmatprep.subr.msk.bf16.mxu1 %vm399_vm0, %v10793_v53  ;;  %v9885_v47 = vld.sshfl [vmem:[%s14953_s1 + $0x3a] sm:$0x11 pattern:$0x75316420]  ;;  %v2914_v50 = vcombine.high %v9877_v46, %v9877_v46  ;;  %v2739_v52 = vrot.slane %v9861_v30, %v11295_v14  ;;  %v2830_v53 = vrot.slane %v9869_v31, %v11295_v14 }
  0xa8   :  { %9820 = vmatprep.mubr.msk.bf16.mxu0 %vm399_vm0, %v2200_v54  ;;  %9828 = vmatprep.mubr.msk.bf16.mxu1 %vm399_vm0, %v2291_v55  ;;  %v3005_v51 = vcombine.high %v9885_v47, %v9885_v47  ;;  %v10839_v54 = vld [vmem:[%s14954_s2 + $0x394] ss:$8 sps:$4 sm:$0xff]   ;;  %v2921_v13 = vrot.slane %v9877_v46, %v11295_v14  ;;  %v3012_v15 = vrot.slane %v9885_v47, %v11295_v14  ;;  %v10867_v46 = vld [vmem:[%s14954_s2 + $0x410] ss:$8 sps:$4 sm:$0xff]  }
  0xa9   :  { %v10841_v55 = vld [vmem:[%s14954_s2 + $0x3b4] ss:$8 sps:$4 sm:$0xff]   ;;  %v10868_v47 = vld [vmem:[%s14954_s2 + $0x430] ss:$8 sps:$4 sm:$0xff]  }
  0xae   :  { %2232 = vmatpush1.bf16.xpose.msra.mxu0 %v10795_v56  ;;  %2323 = vmatpush1.bf16.xpose.msra.mxu1 %v10796_v57  ;;  %v2928_v56 = vrot.slane %v2914_v50, %v11295_v14  ;;  %v3019_v57 = vrot.slane %v3005_v51, %v11295_v14  ;;  %v10869_v50 = vld [vmem:[%s14954_s2 + $0x444] ss:$8 sps:$4 sm:$0xff]  }
  0xaf   :  { %9834 = vmatprep.subr.msk.bf16.mxu0 %vm399_vm0, %v10797_v58  ;;  %9842 = vmatprep.subr.msk.bf16.mxu1 %vm399_vm0, %v10799_v59  ;;  %v10871_v51 = vld [vmem:[%s14954_s2 + $0x464] ss:$8 sps:$4 sm:$0xff]  }
  0xb5   :  { %2262 = vmatmul.mubr.bf16.vlgmr.msra.gmra.mrb[40].mxu0 %v2193_v2  ;;  %2353 = vmatmul.mubr.bf16.vlgmr.msra.gmra.mrb[40].mxu1 %v2284_v3 }
  0xb6   :  { %2412 = vmatpush1.bf16.xpose.msra.mxu0 %v10801_v62  ;;  %2503 = vmatpush1.bf16.xpose.msra.mxu1 %v10802_v63 }
  0xb7   :  { %9835 = vmatprep.subr.msk.bf16.mxu0 %vm399_vm0, %v10803_v4  ;;  %9843 = vmatprep.subr.msk.bf16.mxu1 %vm399_vm0, %v10805_v5 }
  0xb8   :  { %9836 = vmatprep.mubr.msk.bf16.mxu0 %vm399_vm0, %v2382_v6  ;;  %9844 = vmatprep.mubr.msk.bf16.mxu1 %vm399_vm0, %v2473_v7  ;;  %v9893_v6 = vld.sshfl [vmem:[%s14953_s1 + $0x3c] sm:$0x11 pattern:$0x75316420] }
  0xb9   :  { %v9901_v7 = vld.sshfl [vmem:[%s14953_s1 + $0x3e] sm:$0x11 pattern:$0x75316420] }
  0xbe   :  { %2414 = vmatpush1.bf16.xpose.msra.mxu0 %v10807_v9  ;;  %2505 = vmatpush1.bf16.xpose.msra.mxu1 %v10808_v10  ;;  %v10849_v9 = vld [vmem:[%s14954_s2 + $0x3c0] ss:$8 sps:$4 sm:$0xff]  }
  0xbf   :  { %9850 = vmatprep.subr.msk.bf16.mxu0 %vm399_vm0, %v10809_v11  ;;  %9858 = vmatprep.subr.msk.bf16.mxu1 %vm399_vm0, %v10811_v12  ;;  %v10850_v10 = vld [vmem:[%s14954_s2 + $0x3e0] ss:$8 sps:$4 sm:$0xff]   ;;  %v3096_v11 = vcombine.high %v9893_v6, %v9893_v6  ;;  %v3187_v12 = vcombine.high %v9901_v7, %v9901_v7 }
  0xc1   :  { %v3110_v18 = vrot.slane %v3096_v11, %v11295_v14  ;;  %v3201_v19 = vrot.slane %v3187_v12, %v11295_v14 }
  0xc5   :  { %2444 = vmatmul.mubr.bf16.vlgmr.msra.gmra.mrb[44].mxu0 %v2375_v20  ;;  %2535 = vmatmul.mubr.bf16.vlgmr.msra.gmra.mrb[44].mxu1 %v2466_v21 }
  0xc6   :  { %2594 = vmatpush1.bf16.xpose.msra.mxu0 %v10813_v16  ;;  %2685 = vmatpush1.bf16.xpose.msra.mxu1 %v10814_v17  ;;  %v10851_v16 = vld [vmem:[%s14954_s2 + $0x3d4] ss:$8 sps:$4 sm:$0xff]  }
  0xc7   :  { %9851 = vmatprep.subr.msk.bf16.mxu0 %vm399_vm0, %v10815_v22  ;;  %9859 = vmatprep.subr.msk.bf16.mxu1 %vm399_vm0, %v10817_v23  ;;  %v10853_v17 = vld [vmem:[%s14954_s2 + $0x3f4] ss:$8 sps:$4 sm:$0xff]   ;;  %v10855_v22 = vld [vmem:[%s14954_s2 + $0x3d0] ss:$8 sps:$4 sm:$0xff]  }
  0xc8   :  { %9852 = vmatprep.mubr.msk.bf16.mxu0 %vm399_vm0, %v2564_v24  ;;  %9860 = vmatprep.mubr.msk.bf16.mxu1 %vm399_vm0, %v2655_v25  ;;  %v10856_v23 = vld [vmem:[%s14954_s2 + $0x3f0] ss:$8 sps:$4 sm:$0xff]  }
  0xce   :  { %2596 = vmatpush1.bf16.xpose.msra.mxu0 %v10819_v26  ;;  %2687 = vmatpush1.bf16.xpose.msra.mxu1 %v10820_v27  ;;  %v10857_v26 = vld [vmem:[%s14954_s2 + $0x404] ss:$8 sps:$4 sm:$0xff]  }
  0xcf   :  { %9866 = vmatprep.subr.msk.bf16.mxu0 %vm399_vm0, %v10821_v28  ;;  %9874 = vmatprep.subr.msk.bf16.mxu1 %vm399_vm0, %v10823_v29  ;;  %v10859_v27 = vld [vmem:[%s14954_s2 + $0x424] ss:$8 sps:$4 sm:$0xff]  }
  0xd5   :  { %2626 = vmatmul.mubr.bf16.vlgmr.msra.gmra.mrb[48].mxu0 %v2557_v36  ;;  %2717 = vmatmul.mubr.bf16.vlgmr.msra.gmra.mrb[48].mxu1 %v2648_v37 }
  0xd6   :  { %2776 = vmatpush1.bf16.xpose.msra.mxu0 %v10825_v32  ;;  %2867 = vmatpush1.bf16.xpose.msra.mxu1 %v10826_v33  ;;  %v9909_v32 = vld.sshfl [vmem:[%s14953_s1 + $0x40] sm:$0x11 pattern:$0x75316420] }
  0xd7   :  { %9867 = vmatprep.subr.msk.bf16.mxu0 %vm399_vm0, %v10827_v38  ;;  %9875 = vmatprep.subr.msk.bf16.mxu1 %vm399_vm0, %v10829_v39  ;;  %v9917_v33 = vld.sshfl [vmem:[%s14953_s1 + $0x42] sm:$0x11 pattern:$0x75316420]  ;;  %v3278_v36 = vcombine.high %v9909_v32, %v9909_v32  ;;  %v3103_v38 = vrot.slane %v9893_v6, %v11295_v14  ;;  %v3194_v39 = vrot.slane %v9901_v7, %v11295_v14 }
  0xd8   :  { %9868 = vmatprep.mubr.msk.bf16.mxu0 %vm399_vm0, %v2746_v40  ;;  %9876 = vmatprep.mubr.msk.bf16.mxu1 %vm399_vm0, %v2837_v41  ;;  %v3369_v37 = vcombine.high %v9917_v33, %v9917_v33  ;;  %v10863_v40 = vld [vmem:[%s14954_s2 + $0x414] ss:$8 sps:$4 sm:$0xff]  }
  0xd9   :  { %v10865_v41 = vld [vmem:[%s14954_s2 + $0x434] ss:$8 sps:$4 sm:$0xff]  }
  0xde   :  { %2778 = vmatpush1.bf16.xpose.msra.mxu0 %v10831_v42  ;;  %2869 = vmatpush1.bf16.xpose.msra.mxu1 %v10832_v43  ;;  %v3292_v42 = vrot.slane %v3278_v36, %v11295_v14  ;;  %v3383_v43 = vrot.slane %v3369_v37, %v11295_v14 }
  0xdf   :  { %9882 = vmatprep.subr.msk.bf16.mxu0 %vm399_vm0, %v10833_v44  ;;  %9890 = vmatprep.subr.msk.bf16.mxu1 %vm399_vm0, %v10835_v45 }
  0xe5   :  { %2808 = vmatmul.mubr.bf16.vlgmr.msra.gmra.mrb[52].mxu0 %v2739_v52  ;;  %2899 = vmatmul.mubr.bf16.vlgmr.msra.gmra.mrb[52].mxu1 %v2830_v53 }
  0xe6   :  { %2958 = vmatpush1.bf16.xpose.msra.mxu0 %v10837_v48  ;;  %3049 = vmatpush1.bf16.xpose.msra.mxu1 %v10838_v49 }
  0xe7   :  { %9883 = vmatprep.subr.msk.bf16.mxu0 %vm399_vm0, %v10839_v54  ;;  %9891 = vmatprep.subr.msk.bf16.mxu1 %vm399_vm0, %v10841_v55 }
  0xe8   :  { %v11862_v58 = vpop.f32.mrb[0].mxu0  ;;  %v11864_v59 = vpop.f32.mrb[0].mxu1  ;;  %9884 = vmatprep.mubr.msk.bf16.mxu0 %vm399_vm0, %v2928_v56  ;;  %9892 = vmatprep.mubr.msk.bf16.mxu1 %vm399_vm0, %v3019_v57  ;;  %v9925_v56 = vld.sshfl [vmem:[%s14953_s1 + $0x44] sm:$0x11 pattern:$0x75316420] }
  0xe9   :  { %v445_v62 = vpop.f32.mrb[1].mxu0  ;;  %v536_v63 = vpop.f32.mrb[1].mxu1  ;;  %v9933_v57 = vld.sshfl [vmem:[%s14953_s1 + $0x46] sm:$0x11 pattern:$0x75316420] }
  0xea   :  { %v446_v2 = vpop.f32.mrb[2].mxu0  ;;  %v537_v3 = vpop.f32.mrb[2].mxu1  ;;  %v3460_v62 = vcombine.high %v9925_v56, %v9925_v56  ;;  %v3551_v63 = vcombine.high %v9933_v57, %v9933_v57 }
  0xeb   :  { %v447_v4 = vpop.f32.mrb[3].mxu0  ;;  %v538_v5 = vpop.f32.mrb[3].mxu1  ;;  %v10875_v2 = vld [vmem:[%s14954_s2 + $0x454] ss:$8 sps:$4 sm:$0xff]  }
  0xec   :  { %v10877_v3 = vld [vmem:[%s14954_s2 + $0x474] ss:$8 sps:$4 sm:$0xff]   ;;  %v3474_v4 = vrot.slane %v3460_v62, %v11295_v14  ;;  %v3565_v5 = vrot.slane %v3551_v63, %v11295_v14 }
  0xee   :  { %2960 = vmatpush1.bf16.xpose.msra.mxu0 %v10843_v60  ;;  %3051 = vmatpush1.bf16.xpose.msra.mxu1 %v10844_v61  ;;  %v10873_v60 = vld [vmem:[%s14954_s2 + $0x440] ss:$8 sps:$4 sm:$0xff]  }
  0xef   :  { %9898 = vmatprep.subr.msk.bf16.mxu0 %vm399_vm0, %v10845_v0  ;;  %9906 = vmatprep.subr.msk.bf16.mxu1 %vm399_vm0, %v10847_v1  ;;  %v10874_v61 = vld [vmem:[%s14954_s2 + $0x460] ss:$8 sps:$4 sm:$0xff]   ;;  %v3285_v0 = vrot.slane %v9909_v32, %v11295_v14  ;;  %v3376_v1 = vrot.slane %v9917_v33, %v11295_v14 }
  0xf5   :  { %2990 = vmatmul.mubr.bf16.vlgmr.msra.gmra.mrb[56].mxu0 %v2921_v13  ;;  %3081 = vmatmul.mubr.bf16.vlgmr.msra.gmra.mrb[56].mxu1 %v3012_v15 }
  0xf6   :  { %3140 = vmatpush1.bf16.xpose.msra.mxu0 %v10849_v9  ;;  %3231 = vmatpush1.bf16.xpose.msra.mxu1 %v10850_v10 }
  0xf7   :  { %9899 = vmatprep.subr.msk.bf16.mxu0 %vm399_vm0, %v10851_v16  ;;  %9907 = vmatprep.subr.msk.bf16.mxu1 %vm399_vm0, %v10853_v17 }
  0xf8   :  { %v11906_v20 = vpop.f32.mrb[4].mxu0  ;;  %v11908_v21 = vpop.f32.mrb[4].mxu1  ;;  %9900 = vmatprep.mubr.msk.bf16.mxu0 %vm399_vm0, %v3110_v18  ;;  %9908 = vmatprep.mubr.msk.bf16.mxu1 %vm399_vm0, %v3201_v19 }
  0xf9   :  { %v627_v24 = vpop.f32.mrb[5].mxu0  ;;  %v718_v25 = vpop.f32.mrb[5].mxu1 }
  0xfa   :  { %v628_v28 = vpop.f32.mrb[6].mxu0  ;;  %v719_v29 = vpop.f32.mrb[6].mxu1 }
  0xfb   :  { %v629_v30 = vpop.f32.mrb[7].mxu0  ;;  %v720_v31 = vpop.f32.mrb[7].mxu1 }
  0xfe   :  { %3142 = vmatpush1.bf16.xpose.msra.mxu0 %v10855_v22  ;;  %3233 = vmatpush1.bf16.xpose.msra.mxu1 %v10856_v23 }
  0xff   :  { %9914 = vmatprep.subr.msk.bf16.mxu0 %vm399_vm0, %v10857_v26  ;;  %9922 = vmatprep.subr.msk.bf16.mxu1 %vm399_vm0, %v10859_v27 }
 0x105   :  { %3172 = vmatmul.mubr.bf16.vlgmr.msra.gmra.mrb[60].mxu0 %v3103_v38  ;;  %3263 = vmatmul.mubr.bf16.vlgmr.msra.gmra.mrb[60].mxu1 %v3194_v39 }
 0x106   :  { %3322 = vmatpush1.bf16.xpose.msra.mxu0 %v10861_v34  ;;  %3413 = vmatpush1.bf16.xpose.msra.mxu1 %v10862_v35 }
 0x107   :  { %9915 = vmatprep.subr.msk.bf16.mxu0 %vm399_vm0, %v10863_v40  ;;  %9923 = vmatprep.subr.msk.bf16.mxu1 %vm399_vm0, %v10865_v41 }
 0x108   :  { %v11950_v44 = vpop.f32.mrb[8].mxu0  ;;  %v11952_v45 = vpop.f32.mrb[8].mxu1  ;;  %9916 = vmatprep.mubr.msk.bf16.mxu0 %vm399_vm0, %v3292_v42  ;;  %9924 = vmatprep.mubr.msk.bf16.mxu1 %vm399_vm0, %v3383_v43 }
 0x109   :  { %v809_v48 = vpop.f32.mrb[9].mxu0  ;;  %v900_v49 = vpop.f32.mrb[9].mxu1 }
 0x10a   :  { %v810_v52 = vpop.f32.mrb[10].mxu0  ;;  %v901_v53 = vpop.f32.mrb[10].mxu1 }
 0x10b   :  { %v811_v54 = vpop.f32.mrb[11].mxu0  ;;  %v902_v55 = vpop.f32.mrb[11].mxu1 }
 0x10e   :  { %3324 = vmatpush1.bf16.xpose.msra.mxu0 %v10867_v46  ;;  %3415 = vmatpush1.bf16.xpose.msra.mxu1 %v10868_v47 }
 0x10f   :  { %9930 = vmatprep.subr.msk.bf16.mxu0 %vm399_vm0, %v10869_v50  ;;  %9938 = vmatprep.subr.msk.bf16.mxu1 %vm399_vm0, %v10871_v51 }
 0x115   :  { %3354 = vmatmul.mubr.bf16.vlgmr.msra.gmra.mrb[64].mxu0 %v3285_v0  ;;  %3445 = vmatmul.mubr.bf16.vlgmr.msra.gmra.mrb[64].mxu1 %v3376_v1 }
 0x116   :  { %3504 = vmatpush1.bf16.xpose.msra.mxu0 %v10873_v60  ;;  %3595 = vmatpush1.bf16.xpose.msra.mxu1 %v10874_v61 }
 0x117   :  { %9931 = vmatprep.subr.msk.bf16.mxu0 %vm399_vm0, %v10875_v2  ;;  %9939 = vmatprep.subr.msk.bf16.mxu1 %vm399_vm0, %v10877_v3 }
 0x118   :  { %v11994_v6 = vpop.f32.mrb[12].mxu0  ;;  %v11996_v7 = vpop.f32.mrb[12].mxu1  ;;  %9932 = vmatprep.mubr.msk.bf16.mxu0 %vm399_vm0, %v3474_v4  ;;  %9940 = vmatprep.mubr.msk.bf16.mxu1 %vm399_vm0, %v3565_v5 }
 0x119   :  { %v991_v9 = vpop.f32.mrb[13].mxu0  ;;  %v1082_v10 = vpop.f32.mrb[13].mxu1 }
 0x11a   :  { %17 = vsyncpa [#allocation4], 0  ;;  %v992_v11 = vpop.f32.mrb[14].mxu0  ;;  %v1083_v12 = vpop.f32.mrb[14].mxu1  ;;  %v10879_v13 = vld [vmem:[%s14954_s2 + $0x450] ss:$8 sps:$4 sm:$0xff]   ;;  %v3467_v26 = vrot.slane %v9925_v56, %v11295_v14  ;;  %v3558_v27 = vrot.slane %v9933_v57, %v11295_v14 }
 0x11b   :  { %v10880_v15 = vld [vmem:[%s14954_s2 + $0x470] ss:$8 sps:$4 sm:$0xff]   ;;  %v993_v16 = vpop.f32.mrb[15].mxu0  ;;  %v1084_v17 = vpop.f32.mrb[15].mxu1  ;;  %v10881_v18 = vld [vmem:[%s14954_s2 + $0x484] ss:$8 sps:$4 sm:$0xff]  }
 0x11c   :  { %v10883_v19 = vld [vmem:[%s14954_s2 + $0x4a4] ss:$8 sps:$4 sm:$0xff]   ;;  %v9941_v22 = vld.sshfl [vmem:[%s14953_s1 + $0x48] sm:$0x11 pattern:$0x75316420] }
 0x11d   :  { %v9949_v23 = vld.sshfl [vmem:[%s14953_s1 + $0x4a] sm:$0x11 pattern:$0x75316420]  ;;  %v3642_v24 = vcombine.high %v9941_v22, %v9941_v22  ;;  %v10887_v30 = vld [vmem:[%s14954_s2 + $0x494] ss:$8 sps:$4 sm:$0xff]   ;;  %v3649_v52 = vrot.slane %v9941_v22, %v11295_v14 }
 0x11e   :  { %3506 = vmatpush1.bf16.xpose.msra.mxu0 %v10879_v13  ;;  %3597 = vmatpush1.bf16.xpose.msra.mxu1 %v10880_v15  ;;  %v3733_v25 = vcombine.high %v9949_v23, %v9949_v23  ;;  %v10885_v28 = vld [vmem:[%s14954_s2 + $0x480] ss:$8 sps:$4 sm:$0xff]   ;;  %v10889_v31 = vld [vmem:[%s14954_s2 + $0x4b4] ss:$8 sps:$4 sm:$0xff]   ;;  %v10891_v40 = vld [vmem:[%s14954_s2 + $0x490] ss:$8 sps:$4 sm:$0xff]   ;;  %v3740_v53 = vrot.slane %v9949_v23, %v11295_v14 }
 0x11f   :  { %9946 = vmatprep.subr.msk.bf16.mxu0 %vm399_vm0, %v10881_v18  ;;  %9954 = vmatprep.subr.msk.bf16.mxu1 %vm399_vm0, %v10883_v19  ;;  %v10886_v29 = vld [vmem:[%s14954_s2 + $0x4a0] ss:$8 sps:$4 sm:$0xff]   ;;  %v3656_v32 = vrot.slane %v3642_v24, %v11295_v14  ;;  %v10892_v41 = vld [vmem:[%s14954_s2 + $0x4b0] ss:$8 sps:$4 sm:$0xff]   ;;  %v10893_v46 = vld [vmem:[%s14954_s2 + $0x4c4] ss:$8 sps:$4 sm:$0xff]  }
 0x120   :  { %v3747_v33 = vrot.slane %v3733_v25, %v11295_v14  ;;  %v10895_v47 = vld [vmem:[%s14954_s2 + $0x4e4] ss:$8 sps:$4 sm:$0xff]   ;;  %v10897_v54 = vld [vmem:[%s14954_s2 + $0x4c0] ss:$8 sps:$4 sm:$0xff]   ;;  %v10899_v56 = vld [vmem:[%s14954_s2 + $0x4d4] ss:$8 sps:$4 sm:$0xff]  }
 0x121   :  { %v9957_v48 = vld.sshfl [vmem:[%s14953_s1 + $0x4c] sm:$0x11 pattern:$0x75316420]  ;;  %v10898_v55 = vld [vmem:[%s14954_s2 + $0x4e0] ss:$8 sps:$4 sm:$0xff]  }
 0x122   :  { %v9965_v49 = vld.sshfl [vmem:[%s14953_s1 + $0x4e] sm:$0x11 pattern:$0x75316420]  ;;  %v3824_v50 = vcombine.high %v9957_v48, %v9957_v48  ;;  %v10901_v57 = vld [vmem:[%s14954_s2 + $0x4f4] ss:$8 sps:$4 sm:$0xff]   ;;  %v3831_v18 = vrot.slane %v9957_v48, %v11295_v14 }
 0x123   :  { %v3915_v51 = vcombine.high %v9965_v49, %v9965_v49  ;;  %v10903_v4 = vld [vmem:[%s14954_s2 + $0x4d0] ss:$8 sps:$4 sm:$0xff]   ;;  %v10905_v11 = vld [vmem:[%s14954_s2 + $0x504] ss:$8 sps:$4 sm:$0xff]   ;;  %v3922_v19 = vrot.slane %v9965_v49, %v11295_v14  ;;  %v10909_v22 = vld [vmem:[%s14954_s2 + $0x500] ss:$8 sps:$4 sm:$0xff]  }
 0x124   :  { %v3838_v60 = vrot.slane %v3824_v50, %v11295_v14  ;;  %v10904_v5 = vld [vmem:[%s14954_s2 + $0x4f0] ss:$8 sps:$4 sm:$0xff]   ;;  %v10907_v12 = vld [vmem:[%s14954_s2 + $0x524] ss:$8 sps:$4 sm:$0xff]   ;;  %v10910_v23 = vld [vmem:[%s14954_s2 + $0x520] ss:$8 sps:$4 sm:$0xff]  }
 0x125   :  { %3536 = vmatmul.mubr.bf16.vlgmr.msra.gmra.mrb[68].mxu0 %v3467_v26  ;;  %3627 = vmatmul.mubr.bf16.vlgmr.msra.gmra.mrb[68].mxu1 %v3558_v27  ;;  %v3929_v61 = vrot.slane %v3915_v51, %v11295_v14  ;;  %v9973_v13 = vld.sshfl [vmem:[%s14953_s1 + $0x50] sm:$0x11 pattern:$0x75316420]  ;;  %v10911_v24 = vld [vmem:[%s14954_s2 + $0x514] ss:$8 sps:$4 sm:$0xff]  }
 0x126   :  { %3686 = vmatpush1.bf16.xpose.msra.mxu0 %v10885_v28  ;;  %3777 = vmatpush1.bf16.xpose.msra.mxu1 %v10886_v29  ;;  %v9981_v15 = vld.sshfl [vmem:[%s14953_s1 + $0x52] sm:$0x11 pattern:$0x75316420]  ;;  %v4006_v16 = vcombine.high %v9973_v13, %v9973_v13  ;;  %v10913_v25 = vld [vmem:[%s14954_s2 + $0x534] ss:$8 sps:$4 sm:$0xff]   ;;  %v4013_v48 = vrot.slane %v9973_v13, %v11295_v14 }
 0x127   :  { %9947 = vmatprep.subr.msk.bf16.mxu0 %vm399_vm0, %v10887_v30  ;;  %9955 = vmatprep.subr.msk.bf16.mxu1 %vm399_vm0, %v10889_v31  ;;  %v4097_v17 = vcombine.high %v9981_v15, %v9981_v15  ;;  %v4104_v49 = vrot.slane %v9981_v15, %v11295_v14  ;;  %v10921_v50 = vld [vmem:[%s14954_s2 + $0x540] ss:$8 sps:$4 sm:$0xff]   ;;  %vm6759_vm1 = vcmask 254976   ;;  %s11213_s22 = smov [#allocation3]  }
 0x128   :  { %v12038_v34 = vpop.f32.mrb[16].mxu0  ;;  %v12040_v35 = vpop.f32.mrb[16].mxu1  ;;  %9948 = vmatprep.mubr.msk.bf16.mxu0 %vm399_vm0, %v3656_v32  ;;  %9956 = vmatprep.mubr.msk.bf16.mxu1 %vm399_vm0, %v3747_v33  ;;  %v4020_v26 = vrot.slane %v4006_v16, %v11295_v14  ;;  %v10922_v51 = vld [vmem:[%s14954_s2 + $0x560] ss:$8 sps:$4 sm:$0xff]   ;;  %s9641_s23 = sshll.u32 %s11213_s22, 4  ;;  %s9642_s23 = int_to_ptr.vmem [resolvable:$true] %s9641_s23 }
 0x129   :  { %v1173_v36 = vpop.f32.mrb[17].mxu0  ;;  %v1264_v37 = vpop.f32.mrb[17].mxu1  ;;  %v4111_v27 = vrot.slane %v4097_v17, %v11295_v14  ;;  %s11183_s24 = scalar_lea.vmem %s9642_s23, 32  ;;  %p11188_p1 = scmp.lt.s32.totalorder %s9642_s23, %s9642_s23 }
 0x12a   :  { %v1174_v38 = vpop.f32.mrb[18].mxu0  ;;  %v1265_v39 = vpop.f32.mrb[18].mxu1  ;;  %v10915_v36 = vld [vmem:[%s14954_s2 + $0x510] ss:$8 sps:$4 sm:$0xff]   ;;  %p11184_p0 = scmp.ne.s32.totalorder %s9642_s23, %s11183_s24  ;;  %p11189_p2 = scmp.lt.s32.totalorder %s11183_s24, %s11183_s24 }
 0x12b   :  { %v1175_v42 = vpop.f32.mrb[19].mxu0  ;;  %v1266_v43 = vpop.f32.mrb[19].mxu1  ;;  %v10916_v37 = vld [vmem:[%s14954_s2 + $0x530] ss:$8 sps:$4 sm:$0xff]  }
 0x12c   :  { %v9989_v42 = vld.sshfl [vmem:[%s14953_s1 + $0x54] sm:$0x11 pattern:$0x75316420]  ;;  %p11190_p3 = por %p11189_p2, %p11188_p1 }
 0x12d   :  { %v9997_v43 = vld.sshfl [vmem:[%s14953_s1 + $0x56] sm:$0x11 pattern:$0x75316420]  ;;  %v4195_v16 = vrot.slane %v9989_v42, %v11295_v14 }
 0x12e   :  { %3688 = vmatpush1.bf16.xpose.msra.mxu0 %v10891_v40  ;;  %3779 = vmatpush1.bf16.xpose.msra.mxu1 %v10892_v41  ;;  %v10917_v40 = vld [vmem:[%s14954_s2 + $0x544] ss:$8 sps:$4 sm:$0xff]   ;;  %v4286_v17 = vrot.slane %v9997_v43, %v11295_v14  ;;  %p11191_p4 = pnand %p11190_p3, %p11184_p0 }
 0x12f   :  { %9962 = vmatprep.subr.msk.bf16.mxu0 %vm399_vm0, %v10893_v46  ;;  %9970 = vmatprep.subr.msk.bf16.mxu1 %vm399_vm0, %v10895_v47  ;;  %v10919_v41 = vld [vmem:[%s14954_s2 + $0x564] ss:$8 sps:$4 sm:$0xff]   ;;  %v4188_v46 = vcombine.high %v9989_v42, %v9989_v42  ;;  %v4279_v47 = vcombine.high %v9997_v43, %v9997_v43  ;;  %v10021_v42 = vld.sshfl [vmem:[%s14953_s1 + $0x5c] sm:$0x11 pattern:$0x75316420] }
 0x130   :  { %v10029_v43 = vld.sshfl [vmem:[%s14953_s1 + $0x5e] sm:$0x11 pattern:$0x75316420] }
 0x135   :  { %3718 = vmatmul.mubr.bf16.vlgmr.msra.gmra.mrb[72].mxu0 %v3649_v52  ;;  %3809 = vmatmul.mubr.bf16.vlgmr.msra.gmra.mrb[72].mxu1 %v3740_v53  ;;  %v10923_v52 = vld [vmem:[%s14954_s2 + $0x554] ss:$8 sps:$4 sm:$0xff]  }
 0x136   :  { %3868 = vmatpush1.bf16.xpose.msra.mxu0 %v10897_v54  ;;  %3959 = vmatpush1.bf16.xpose.msra.mxu1 %v10898_v55  ;;  %v10925_v53 = vld [vmem:[%s14954_s2 + $0x574] ss:$8 sps:$4 sm:$0xff]   ;;  %v4202_v54 = vrot.slane %v4188_v46, %v11295_v14  ;;  %v4293_v55 = vrot.slane %v4279_v47, %v11295_v14  ;;  %v4552_v46 = vcombine.high %v10021_v42, %v10021_v42 }
 0x137   :  { %9963 = vmatprep.subr.msk.bf16.mxu0 %vm399_vm0, %v10899_v56  ;;  %9971 = vmatprep.subr.msk.bf16.mxu1 %vm399_vm0, %v10901_v57  ;;  %v4643_v47 = vcombine.high %v10029_v43, %v10029_v43 }
 0x138   :  { %v12082_v62 = vpop.f32.mrb[20].mxu0  ;;  %v12084_v63 = vpop.f32.mrb[20].mxu1  ;;  %9964 = vmatprep.mubr.msk.bf16.mxu0 %vm399_vm0, %v3838_v60  ;;  %9972 = vmatprep.mubr.msk.bf16.mxu1 %vm399_vm0, %v3929_v61 }
 0x139   :  { %v1355_v0 = vpop.f32.mrb[21].mxu0  ;;  %v1446_v1 = vpop.f32.mrb[21].mxu1 }
 0x13a   :  { %v1356_v2 = vpop.f32.mrb[22].mxu0  ;;  %v1447_v3 = vpop.f32.mrb[22].mxu1 }
 0x13b   :  { %v1357_v9 = vpop.f32.mrb[23].mxu0  ;;  %v1448_v10 = vpop.f32.mrb[23].mxu1  ;;  %v10927_v2 = vld [vmem:[%s14954_s2 + $0x550] ss:$8 sps:$4 sm:$0xff]  }
 0x13c   :  { %v10928_v3 = vld [vmem:[%s14954_s2 + $0x570] ss:$8 sps:$4 sm:$0xff]   ;;  %v10929_v9 = vld [vmem:[%s14954_s2 + $0x584] ss:$8 sps:$4 sm:$0xff]  }
 0x13d   :  { %v10931_v10 = vld [vmem:[%s14954_s2 + $0x5a4] ss:$8 sps:$4 sm:$0xff]  }
 0x13e   :  { %3870 = vmatpush1.bf16.xpose.msra.mxu0 %v10903_v4  ;;  %3961 = vmatpush1.bf16.xpose.msra.mxu1 %v10904_v5 }
 0x13f   :  { %9978 = vmatprep.subr.msk.bf16.mxu0 %vm399_vm0, %v10905_v11  ;;  %9986 = vmatprep.subr.msk.bf16.mxu1 %vm399_vm0, %v10907_v12  ;;  %v10005_v11 = vld.sshfl [vmem:[%s14953_s1 + $0x58] sm:$0x11 pattern:$0x75316420] }
 0x140   :  { %v10013_v12 = vld.sshfl [vmem:[%s14953_s1 + $0x5a] sm:$0x11 pattern:$0x75316420]  ;;  %v4370_v13 = vcombine.high %v10005_v11, %v10005_v11 }
 0x141   :  { %v4461_v15 = vcombine.high %v10013_v12, %v10013_v12 }
 0x145   :  { %3900 = vmatmul.mubr.bf16.vlgmr.msra.gmra.mrb[76].mxu0 %v3831_v18  ;;  %3991 = vmatmul.mubr.bf16.vlgmr.msra.gmra.mrb[76].mxu1 %v3922_v19  ;;  %v10933_v18 = vld [vmem:[%s14954_s2 + $0x580] ss:$8 sps:$4 sm:$0xff]  }
 0x146   :  { %4050 = vmatpush1.bf16.xpose.msra.mxu0 %v10909_v22  ;;  %4141 = vmatpush1.bf16.xpose.msra.mxu1 %v10910_v23  ;;  %v10934_v19 = vld [vmem:[%s14954_s2 + $0x5a0] ss:$8 sps:$4 sm:$0xff]   ;;  %v10935_v22 = vld [vmem:[%s14954_s2 + $0x594] ss:$8 sps:$4 sm:$0xff]  }
 0x147   :  { %9979 = vmatprep.subr.msk.bf16.mxu0 %vm399_vm0, %v10911_v24  ;;  %9987 = vmatprep.subr.msk.bf16.mxu1 %vm399_vm0, %v10913_v25  ;;  %v10937_v23 = vld [vmem:[%s14954_s2 + $0x5b4] ss:$8 sps:$4 sm:$0xff]   ;;  %v4384_v24 = vrot.slane %v4370_v13, %v11295_v14  ;;  %v4475_v25 = vrot.slane %v4461_v15, %v11295_v14  ;;  %v10037_v13 = vld.sshfl [vmem:[%s14953_s1 + $0x60] sm:$0x11 pattern:$0x75316420] }
 0x148   :  { %v12126_v28 = vpop.f32.mrb[24].mxu0  ;;  %v12128_v29 = vpop.f32.mrb[24].mxu1  ;;  %9980 = vmatprep.mubr.msk.bf16.mxu0 %vm399_vm0, %v4020_v26  ;;  %9988 = vmatprep.mubr.msk.bf16.mxu1 %vm399_vm0, %v4111_v27  ;;  %v10045_v15 = vld.sshfl [vmem:[%s14953_s1 + $0x62] sm:$0x11 pattern:$0x75316420] }
 0x149   :  { %v1537_v30 = vpop.f32.mrb[25].mxu0  ;;  %v1628_v31 = vpop.f32.mrb[25].mxu1 }
 0x14a   :  { %v1538_v32 = vpop.f32.mrb[26].mxu0  ;;  %v1629_v33 = vpop.f32.mrb[26].mxu1 }
 0x14b   :  { %v1539_v38 = vpop.f32.mrb[27].mxu0  ;;  %v1630_v39 = vpop.f32.mrb[27].mxu1 }
 0x14e   :  { %4052 = vmatpush1.bf16.xpose.msra.mxu0 %v10915_v36  ;;  %4143 = vmatpush1.bf16.xpose.msra.mxu1 %v10916_v37  ;;  %v10939_v36 = vld [vmem:[%s14954_s2 + $0x590] ss:$8 sps:$4 sm:$0xff]  }
 0x14f   :  { %9994 = vmatprep.subr.msk.bf16.mxu0 %vm399_vm0, %v10917_v40  ;;  %10002 = vmatprep.subr.msk.bf16.mxu1 %vm399_vm0, %v10919_v41  ;;  %v10940_v37 = vld [vmem:[%s14954_s2 + $0x5b0] ss:$8 sps:$4 sm:$0xff]   ;;  %v10941_v40 = vld [vmem:[%s14954_s2 + $0x5c4] ss:$8 sps:$4 sm:$0xff]  }
 0x150   :  { %v10943_v41 = vld [vmem:[%s14954_s2 + $0x5e4] ss:$8 sps:$4 sm:$0xff]  }
 0x155   :  { %4082 = vmatmul.mubr.bf16.vlgmr.msra.gmra.mrb[80].mxu0 %v4013_v48  ;;  %4173 = vmatmul.mubr.bf16.vlgmr.msra.gmra.mrb[80].mxu1 %v4104_v49  ;;  %v4377_v48 = vrot.slane %v10005_v11, %v11295_v14  ;;  %v4468_v49 = vrot.slane %v10013_v12, %v11295_v14  ;;  %v10953_v11 = vld [vmem:[%s14954_s2 + $0x604] ss:$8 sps:$4 sm:$0xff]  }
 0x156   :  { %4232 = vmatpush1.bf16.xpose.msra.mxu0 %v10921_v50  ;;  %4323 = vmatpush1.bf16.xpose.msra.mxu1 %v10922_v51  ;;  %v10945_v50 = vld [vmem:[%s14954_s2 + $0x5c0] ss:$8 sps:$4 sm:$0xff]   ;;  %v10955_v12 = vld [vmem:[%s14954_s2 + $0x624] ss:$8 sps:$4 sm:$0xff]  }
 0x157   :  { %9995 = vmatprep.subr.msk.bf16.mxu0 %vm399_vm0, %v10923_v52  ;;  %10003 = vmatprep.subr.msk.bf16.mxu1 %vm399_vm0, %v10925_v53  ;;  %v10946_v51 = vld [vmem:[%s14954_s2 + $0x5e0] ss:$8 sps:$4 sm:$0xff]   ;;  %v10947_v52 = vld [vmem:[%s14954_s2 + $0x5d4] ss:$8 sps:$4 sm:$0xff]  }
 0x158   :  { %v12170_v56 = vpop.f32.mrb[28].mxu0  ;;  %v12172_v57 = vpop.f32.mrb[28].mxu1  ;;  %9996 = vmatprep.mubr.msk.bf16.mxu0 %vm399_vm0, %v4202_v54  ;;  %10004 = vmatprep.mubr.msk.bf16.mxu1 %vm399_vm0, %v4293_v55  ;;  %v10949_v53 = vld [vmem:[%s14954_s2 + $0x5f4] ss:$8 sps:$4 sm:$0xff]   ;;  %v4566_v54 = vrot.slane %v4552_v46, %v11295_v14  ;;  %v4657_v55 = vrot.slane %v4643_v47, %v11295_v14  ;;  %v10965_v46 = vld [vmem:[%s14954_s2 + $0x644] ss:$8 sps:$4 sm:$0xff]  }
 0x159   :  { %v1719_v60 = vpop.f32.mrb[29].mxu0  ;;  %v1810_v61 = vpop.f32.mrb[29].mxu1  ;;  %v10967_v47 = vld [vmem:[%s14954_s2 + $0x664] ss:$8 sps:$4 sm:$0xff]  }
 0x15a   :  { %v1720_v0 = vpop.f32.mrb[30].mxu0  ;;  %v1811_v1 = vpop.f32.mrb[30].mxu1 }
 0x15b   :  { %v1721_v4 = vpop.f32.mrb[31].mxu0  ;;  %v1812_v5 = vpop.f32.mrb[31].mxu1 }
 0x15c   :  { %v10951_v4 = vld [vmem:[%s14954_s2 + $0x5d0] ss:$8 sps:$4 sm:$0xff]  }
 0x15d   :  { %v10952_v5 = vld [vmem:[%s14954_s2 + $0x5f0] ss:$8 sps:$4 sm:$0xff]  }
 0x15e   :  { %4234 = vmatpush1.bf16.xpose.msra.mxu0 %v10927_v2  ;;  %4325 = vmatpush1.bf16.xpose.msra.mxu1 %v10928_v3 }
 0x15f   :  { %10010 = vmatprep.subr.msk.bf16.mxu0 %vm399_vm0, %v10929_v9  ;;  %10018 = vmatprep.subr.msk.bf16.mxu1 %vm399_vm0, %v10931_v10 }
 0x165   :  { %4264 = vmatmul.mubr.bf16.vlgmr.msra.gmra.mrb[84].mxu0 %v4195_v16  ;;  %4355 = vmatmul.mubr.bf16.vlgmr.msra.gmra.mrb[84].mxu1 %v4286_v17  ;;  %v4734_v16 = vcombine.high %v10037_v13, %v10037_v13  ;;  %v4825_v17 = vcombine.high %v10045_v15, %v10045_v15 }
 0x166   :  { %4414 = vmatpush1.bf16.xpose.msra.mxu0 %v10933_v18  ;;  %4505 = vmatpush1.bf16.xpose.msra.mxu1 %v10934_v19  ;;  %v4559_v18 = vrot.slane %v10021_v42, %v11295_v14  ;;  %v4650_v19 = vrot.slane %v10029_v43, %v11295_v14 }
 0x167   :  { %10011 = vmatprep.subr.msk.bf16.mxu0 %vm399_vm0, %v10935_v22  ;;  %10019 = vmatprep.subr.msk.bf16.mxu1 %vm399_vm0, %v10937_v23  ;;  %v10957_v22 = vld [vmem:[%s14954_s2 + $0x600] ss:$8 sps:$4 sm:$0xff]  }
 0x168   :  { %v12214_v26 = vpop.f32.mrb[32].mxu0  ;;  %v12216_v27 = vpop.f32.mrb[32].mxu1  ;;  %10012 = vmatprep.mubr.msk.bf16.mxu0 %vm399_vm0, %v4384_v24  ;;  %10020 = vmatprep.mubr.msk.bf16.mxu1 %vm399_vm0, %v4475_v25  ;;  %v10958_v23 = vld [vmem:[%s14954_s2 + $0x620] ss:$8 sps:$4 sm:$0xff]   ;;  %v10959_v24 = vld [vmem:[%s14954_s2 + $0x614] ss:$8 sps:$4 sm:$0xff]  }
 0x169   :  { %v1901_v30 = vpop.f32.mrb[33].mxu0  ;;  %v1992_v31 = vpop.f32.mrb[33].mxu1  ;;  %v10961_v25 = vld [vmem:[%s14954_s2 + $0x634] ss:$8 sps:$4 sm:$0xff]  }
 0x16a   :  { %v1902_v32 = vpop.f32.mrb[34].mxu0  ;;  %v1993_v33 = vpop.f32.mrb[34].mxu1  ;;  %v4748_v30 = vrot.slane %v4734_v16, %v11295_v14  ;;  %v4839_v31 = vrot.slane %v4825_v17, %v11295_v14 }
 0x16b   :  { %v1903_v38 = vpop.f32.mrb[35].mxu0  ;;  %v1994_v39 = vpop.f32.mrb[35].mxu1 }
 0x16e   :  { %4416 = vmatpush1.bf16.xpose.msra.mxu0 %v10939_v36  ;;  %4507 = vmatpush1.bf16.xpose.msra.mxu1 %v10940_v37 }
 0x16f   :  { %10026 = vmatprep.subr.msk.bf16.mxu0 %vm399_vm0, %v10941_v40  ;;  %10034 = vmatprep.subr.msk.bf16.mxu1 %vm399_vm0, %v10943_v41  ;;  %v10963_v40 = vld [vmem:[%s14954_s2 + $0x610] ss:$8 sps:$4 sm:$0xff]  }
 0x170   :  { %v10964_v41 = vld [vmem:[%s14954_s2 + $0x630] ss:$8 sps:$4 sm:$0xff]  }
 0x175   :  { %4446 = vmatmul.mubr.bf16.vlgmr.msra.gmra.mrb[88].mxu0 %v4377_v48  ;;  %4537 = vmatmul.mubr.bf16.vlgmr.msra.gmra.mrb[88].mxu1 %v4468_v49  ;;  %v10053_v48 = vld.sshfl [vmem:[%s14953_s1 + $0x64] sm:$0x11 pattern:$0x75316420] }
 0x176   :  { %4596 = vmatpush1.bf16.xpose.msra.mxu0 %v10945_v50  ;;  %4687 = vmatpush1.bf16.xpose.msra.mxu1 %v10946_v51  ;;  %v10061_v49 = vld.sshfl [vmem:[%s14953_s1 + $0x66] sm:$0x11 pattern:$0x75316420]  ;;  %v4916_v50 = vcombine.high %v10053_v48, %v10053_v48 }
 0x177   :  { %10027 = vmatprep.subr.msk.bf16.mxu0 %vm399_vm0, %v10947_v52  ;;  %10035 = vmatprep.subr.msk.bf16.mxu1 %vm399_vm0, %v10949_v53  ;;  %v5007_v51 = vcombine.high %v10061_v49, %v10061_v49  ;;  %v4741_v52 = vrot.slane %v10037_v13, %v11295_v14  ;;  %v4832_v53 = vrot.slane %v10045_v15, %v11295_v14  ;;  %v10975_v13 = vld [vmem:[%s14954_s2 + $0x650] ss:$8 sps:$4 sm:$0xff]  }
 0x178   :  { %v12258_v60 = vpop.f32.mrb[36].mxu0  ;;  %v12260_v61 = vpop.f32.mrb[36].mxu1  ;;  %10028 = vmatprep.mubr.msk.bf16.mxu0 %vm399_vm0, %v4566_v54  ;;  %10036 = vmatprep.mubr.msk.bf16.mxu1 %vm399_vm0, %v4657_v55  ;;  %v10969_v54 = vld [vmem:[%s14954_s2 + $0x640] ss:$8 sps:$4 sm:$0xff]   ;;  %v10976_v15 = vld [vmem:[%s14954_s2 + $0x670] ss:$8 sps:$4 sm:$0xff]  }
 0x179   :  { %v2083_v0 = vpop.f32.mrb[37].mxu0  ;;  %v2174_v1 = vpop.f32.mrb[37].mxu1  ;;  %v10970_v55 = vld [vmem:[%s14954_s2 + $0x660] ss:$8 sps:$4 sm:$0xff]  }
 0x17a   :  { %v2084_v2 = vpop.f32.mrb[38].mxu0  ;;  %v2175_v3 = vpop.f32.mrb[38].mxu1  ;;  %v10971_v0 = vld [vmem:[%s14954_s2 + $0x654] ss:$8 sps:$4 sm:$0xff]  }
 0x17b   :  { %v2085_v9 = vpop.f32.mrb[39].mxu0  ;;  %v2176_v10 = vpop.f32.mrb[39].mxu1  ;;  %v10973_v1 = vld [vmem:[%s14954_s2 + $0x674] ss:$8 sps:$4 sm:$0xff]   ;;  %v4930_v2 = vrot.slane %v4916_v50, %v11295_v14  ;;  %v5021_v3 = vrot.slane %v5007_v51, %v11295_v14  ;;  %v10987_v50 = vld [vmem:[%s14954_s2 + $0x690] ss:$8 sps:$4 sm:$0xff]  }
 0x17c   :  { %v10988_v51 = vld [vmem:[%s14954_s2 + $0x6b0] ss:$8 sps:$4 sm:$0xff]  }
 0x17e   :  { %4598 = vmatpush1.bf16.xpose.msra.mxu0 %v10951_v4  ;;  %4689 = vmatpush1.bf16.xpose.msra.mxu1 %v10952_v5 }
 0x17f   :  { %10042 = vmatprep.subr.msk.bf16.mxu0 %vm399_vm0, %v10953_v11  ;;  %10050 = vmatprep.subr.msk.bf16.mxu1 %vm399_vm0, %v10955_v12 }
 0x185   :  { %4628 = vmatmul.mubr.bf16.vlgmr.msra.gmra.mrb[92].mxu0 %v4559_v18  ;;  %4719 = vmatmul.mubr.bf16.vlgmr.msra.gmra.mrb[92].mxu1 %v4650_v19  ;;  %v10977_v18 = vld [vmem:[%s14954_s2 + $0x684] ss:$8 sps:$4 sm:$0xff]  }
 0x186   :  { %4778 = vmatpush1.bf16.xpose.msra.mxu0 %v10957_v22  ;;  %4869 = vmatpush1.bf16.xpose.msra.mxu1 %v10958_v23  ;;  %v10979_v19 = vld [vmem:[%s14954_s2 + $0x6a4] ss:$8 sps:$4 sm:$0xff]   ;;  %v10069_v22 = vld.sshfl [vmem:[%s14953_s1 + $0x68] sm:$0x11 pattern:$0x75316420] }
 0x187   :  { %10043 = vmatprep.subr.msk.bf16.mxu0 %vm399_vm0, %v10959_v24  ;;  %10051 = vmatprep.subr.msk.bf16.mxu1 %vm399_vm0, %v10961_v25  ;;  %v10077_v23 = vld.sshfl [vmem:[%s14953_s1 + $0x6a] sm:$0x11 pattern:$0x75316420]  ;;  %v5098_v24 = vcombine.high %v10069_v22, %v10069_v22 }
 0x188   :  { %v12302_v32 = vpop.f32.mrb[40].mxu0  ;;  %v12304_v33 = vpop.f32.mrb[40].mxu1  ;;  %10044 = vmatprep.mubr.msk.bf16.mxu0 %vm399_vm0, %v4748_v30  ;;  %10052 = vmatprep.mubr.msk.bf16.mxu1 %vm399_vm0, %v4839_v31  ;;  %v5189_v25 = vcombine.high %v10077_v23, %v10077_v23  ;;  %v4923_v30 = vrot.slane %v10053_v48, %v11295_v14  ;;  %v5014_v31 = vrot.slane %v10061_v49, %v11295_v14 }
 0x189   :  { %v2265_v36 = vpop.f32.mrb[41].mxu0  ;;  %v2356_v37 = vpop.f32.mrb[41].mxu1 }
 0x18a   :  { %v2266_v38 = vpop.f32.mrb[42].mxu0  ;;  %v2357_v39 = vpop.f32.mrb[42].mxu1  ;;  %v10981_v36 = vld [vmem:[%s14954_s2 + $0x680] ss:$8 sps:$4 sm:$0xff]  }
 0x18b   :  { %v2267_v42 = vpop.f32.mrb[43].mxu0  ;;  %v2358_v43 = vpop.f32.mrb[43].mxu1  ;;  %v10982_v37 = vld [vmem:[%s14954_s2 + $0x6a0] ss:$8 sps:$4 sm:$0xff]   ;;  %v10983_v38 = vld [vmem:[%s14954_s2 + $0x694] ss:$8 sps:$4 sm:$0xff]  }
 0x18c   :  { %v10985_v39 = vld [vmem:[%s14954_s2 + $0x6b4] ss:$8 sps:$4 sm:$0xff]  }
 0x18e   :  { %4780 = vmatpush1.bf16.xpose.msra.mxu0 %v10963_v40  ;;  %4871 = vmatpush1.bf16.xpose.msra.mxu1 %v10964_v41  ;;  %v5112_v40 = vrot.slane %v5098_v24, %v11295_v14  ;;  %v5203_v41 = vrot.slane %v5189_v25, %v11295_v14 }
 0x18f   :  { %10058 = vmatprep.subr.msk.bf16.mxu0 %vm399_vm0, %v10965_v46  ;;  %10066 = vmatprep.subr.msk.bf16.mxu1 %vm399_vm0, %v10967_v47 }
 0x195   :  { %4810 = vmatmul.mubr.bf16.vlgmr.msra.gmra.mrb[96].mxu0 %v4741_v52  ;;  %4901 = vmatmul.mubr.bf16.vlgmr.msra.gmra.mrb[96].mxu1 %v4832_v53 }
 0x196   :  { %4960 = vmatpush1.bf16.xpose.msra.mxu0 %v10969_v54  ;;  %5051 = vmatpush1.bf16.xpose.msra.mxu1 %v10970_v55  ;;  %v10989_v54 = vld [vmem:[%s14954_s2 + $0x6c4] ss:$8 sps:$4 sm:$0xff]  }
 0x197   :  { %10059 = vmatprep.subr.msk.bf16.mxu0 %vm399_vm0, %v10971_v0  ;;  %10067 = vmatprep.subr.msk.bf16.mxu1 %vm399_vm0, %v10973_v1  ;;  %v10991_v55 = vld [vmem:[%s14954_s2 + $0x6e4] ss:$8 sps:$4 sm:$0xff]  }
 0x198   :  { %v12346_v4 = vpop.f32.mrb[44].mxu0  ;;  %v12348_v5 = vpop.f32.mrb[44].mxu1  ;;  %10060 = vmatprep.mubr.msk.bf16.mxu0 %vm399_vm0, %v4930_v2  ;;  %10068 = vmatprep.mubr.msk.bf16.mxu1 %vm399_vm0, %v5021_v3  ;;  %v10085_v0 = vld.sshfl [vmem:[%s14953_s1 + $0x6c] sm:$0x11 pattern:$0x75316420] }
 0x199   :  { %v2447_v9 = vpop.f32.mrb[45].mxu0  ;;  %v2538_v10 = vpop.f32.mrb[45].mxu1  ;;  %v10093_v1 = vld.sshfl [vmem:[%s14953_s1 + $0x6e] sm:$0x11 pattern:$0x75316420]  ;;  %v5280_v2 = vcombine.high %v10085_v0, %v10085_v0 }
 0x19a   :  { %v2448_v11 = vpop.f32.mrb[46].mxu0  ;;  %v2539_v12 = vpop.f32.mrb[46].mxu1  ;;  %v5371_v3 = vcombine.high %v10093_v1, %v10093_v1  ;;  %v5105_v9 = vrot.slane %v10069_v22, %v11295_v14  ;;  %v5196_v10 = vrot.slane %v10077_v23, %v11295_v14 }
 0x19b   :  { %v2449_v16 = vpop.f32.mrb[47].mxu0  ;;  %v2540_v17 = vpop.f32.mrb[47].mxu1  ;;  %v10993_v11 = vld [vmem:[%s14954_s2 + $0x6c0] ss:$8 sps:$4 sm:$0xff]  }
 0x19c   :  { %v10994_v12 = vld [vmem:[%s14954_s2 + $0x6e0] ss:$8 sps:$4 sm:$0xff]   ;;  %v5294_v16 = vrot.slane %v5280_v2, %v11295_v14  ;;  %v5385_v17 = vrot.slane %v5371_v3, %v11295_v14 }
 0x19e   :  { %4962 = vmatpush1.bf16.xpose.msra.mxu0 %v10975_v13  ;;  %5053 = vmatpush1.bf16.xpose.msra.mxu1 %v10976_v15  ;;  %v10995_v13 = vld [vmem:[%s14954_s2 + $0x6d4] ss:$8 sps:$4 sm:$0xff]  }
 0x19f   :  { %10074 = vmatprep.subr.msk.bf16.mxu0 %vm399_vm0, %v10977_v18  ;;  %10082 = vmatprep.subr.msk.bf16.mxu1 %vm399_vm0, %v10979_v19  ;;  %v10997_v15 = vld [vmem:[%s14954_s2 + $0x6f4] ss:$8 sps:$4 sm:$0xff]  }
 0x1a5   :  { %4992 = vmatmul.mubr.bf16.vlgmr.msra.gmra.mrb[100].mxu0 %v4923_v30  ;;  %5083 = vmatmul.mubr.bf16.vlgmr.msra.gmra.mrb[100].mxu1 %v5014_v31  ;;  %v10999_v30 = vld [vmem:[%s14954_s2 + $0x6d0] ss:$8 sps:$4 sm:$0xff]  }
 0x1a6   :  { %5142 = vmatpush1.bf16.xpose.msra.mxu0 %v10981_v36  ;;  %5233 = vmatpush1.bf16.xpose.msra.mxu1 %v10982_v37  ;;  %v11000_v31 = vld [vmem:[%s14954_s2 + $0x6f0] ss:$8 sps:$4 sm:$0xff]  }
 0x1a7   :  { %10075 = vmatprep.subr.msk.bf16.mxu0 %vm399_vm0, %v10983_v38  ;;  %10083 = vmatprep.subr.msk.bf16.mxu1 %vm399_vm0, %v10985_v39  ;;  %v11001_v38 = vld [vmem:[%s14954_s2 + $0x704] ss:$8 sps:$4 sm:$0xff]  }
 0x1a8   :  { %v12390_v42 = vpop.f32.mrb[48].mxu0  ;;  %v12392_v43 = vpop.f32.mrb[48].mxu1  ;;  %10076 = vmatprep.mubr.msk.bf16.mxu0 %vm399_vm0, %v5112_v40  ;;  %10084 = vmatprep.mubr.msk.bf16.mxu1 %vm399_vm0, %v5203_v41  ;;  %v11003_v39 = vld [vmem:[%s14954_s2 + $0x724] ss:$8 sps:$4 sm:$0xff]  }
 0x1a9   :  { %v2629_v46 = vpop.f32.mrb[49].mxu0  ;;  %v2720_v47 = vpop.f32.mrb[49].mxu1  ;;  %v10101_v40 = vld.sshfl [vmem:[%s14953_s1 + $0x70] sm:$0x11 pattern:$0x75316420] }
 0x1aa   :  { %v2630_v48 = vpop.f32.mrb[50].mxu0  ;;  %v2721_v49 = vpop.f32.mrb[50].mxu1  ;;  %v10109_v41 = vld.sshfl [vmem:[%s14953_s1 + $0x72] sm:$0x11 pattern:$0x75316420]  ;;  %v5462_v46 = vcombine.high %v10101_v40, %v10101_v40 }
 0x1ab   :  { %v2631_v52 = vpop.f32.mrb[51].mxu0  ;;  %v2722_v53 = vpop.f32.mrb[51].mxu1  ;;  %v5553_v47 = vcombine.high %v10109_v41, %v10109_v41  ;;  %v5287_v48 = vrot.slane %v10085_v0, %v11295_v14  ;;  %v5378_v49 = vrot.slane %v10093_v1, %v11295_v14 }
 0x1ac   :  { %v11007_v52 = vld [vmem:[%s14954_s2 + $0x714] ss:$8 sps:$4 sm:$0xff]  }
 0x1ad   :  { %v11009_v53 = vld [vmem:[%s14954_s2 + $0x734] ss:$8 sps:$4 sm:$0xff]  }
 0x1ae   :  { %5144 = vmatpush1.bf16.xpose.msra.mxu0 %v10987_v50  ;;  %5235 = vmatpush1.bf16.xpose.msra.mxu1 %v10988_v51  ;;  %v11005_v50 = vld [vmem:[%s14954_s2 + $0x700] ss:$8 sps:$4 sm:$0xff]  }
 0x1af   :  { %10090 = vmatprep.subr.msk.bf16.mxu0 %vm399_vm0, %v10989_v54  ;;  %10098 = vmatprep.subr.msk.bf16.mxu1 %vm399_vm0, %v10991_v55  ;;  %v11006_v51 = vld [vmem:[%s14954_s2 + $0x720] ss:$8 sps:$4 sm:$0xff]   ;;  %v5476_v54 = vrot.slane %v5462_v46, %v11295_v14  ;;  %v5567_v55 = vrot.slane %v5553_v47, %v11295_v14 }
 0x1b5   :  { %5174 = vmatmul.mubr.bf16.vlgmr.msra.gmra.mrb[104].mxu0 %v5105_v9  ;;  %5265 = vmatmul.mubr.bf16.vlgmr.msra.gmra.mrb[104].mxu1 %v5196_v10 }
 0x1b6   :  { %5324 = vmatpush1.bf16.xpose.msra.mxu0 %v10993_v11  ;;  %5415 = vmatpush1.bf16.xpose.msra.mxu1 %v10994_v12  ;;  %v11011_v11 = vld [vmem:[%s14954_s2 + $0x710] ss:$8 sps:$4 sm:$0xff]  }
 0x1b7   :  { %10091 = vmatprep.subr.msk.bf16.mxu0 %vm399_vm0, %v10995_v13  ;;  %10099 = vmatprep.subr.msk.bf16.mxu1 %vm399_vm0, %v10997_v15  ;;  %v11012_v12 = vld [vmem:[%s14954_s2 + $0x730] ss:$8 sps:$4 sm:$0xff]  }
 0x1b8   :  { %v12434_v18 = vpop.f32.mrb[52].mxu0  ;;  %v12436_v19 = vpop.f32.mrb[52].mxu1  ;;  %10092 = vmatprep.mubr.msk.bf16.mxu0 %vm399_vm0, %v5294_v16  ;;  %10100 = vmatprep.mubr.msk.bf16.mxu1 %vm399_vm0, %v5385_v17  ;;  %v11013_v16 = vld [vmem:[%s14954_s2 + $0x744] ss:$8 sps:$4 sm:$0xff]  }
 0x1b9   :  { %v2811_v22 = vpop.f32.mrb[53].mxu0  ;;  %v2902_v23 = vpop.f32.mrb[53].mxu1  ;;  %v11015_v17 = vld [vmem:[%s14954_s2 + $0x764] ss:$8 sps:$4 sm:$0xff]  }
 0x1ba   :  { %v2812_v24 = vpop.f32.mrb[54].mxu0  ;;  %v2903_v25 = vpop.f32.mrb[54].mxu1  ;;  %v10117_v22 = vld.sshfl [vmem:[%s14953_s1 + $0x74] sm:$0x11 pattern:$0x75316420] }
 0x1bb   :  { %v2813_v36 = vpop.f32.mrb[55].mxu0  ;;  %v2904_v37 = vpop.f32.mrb[55].mxu1  ;;  %v10125_v23 = vld.sshfl [vmem:[%s14953_s1 + $0x76] sm:$0x11 pattern:$0x75316420]  ;;  %v5644_v24 = vcombine.high %v10117_v22, %v10117_v22 }
 0x1bc   :  { %v5735_v25 = vcombine.high %v10125_v23, %v10125_v23  ;;  %v11017_v36 = vld [vmem:[%s14954_s2 + $0x740] ss:$8 sps:$4 sm:$0xff]  }
 0x1bd   :  { %v11018_v37 = vld [vmem:[%s14954_s2 + $0x760] ss:$8 sps:$4 sm:$0xff]  }
 0x1be   :  { %5326 = vmatpush1.bf16.xpose.msra.mxu0 %v10999_v30  ;;  %5417 = vmatpush1.bf16.xpose.msra.mxu1 %v11000_v31  ;;  %v5469_v30 = vrot.slane %v10101_v40, %v11295_v14  ;;  %v5560_v31 = vrot.slane %v10109_v41, %v11295_v14  ;;  %v5658_v40 = vrot.slane %v5644_v24, %v11295_v14  ;;  %v11031_v24 = vld [vmem:[%s14954_s2 + $0x794] ss:$8 sps:$4 sm:$0xff]  }
 0x1bf   :  { %10106 = vmatprep.subr.msk.bf16.mxu0 %vm399_vm0, %v11001_v38  ;;  %10114 = vmatprep.subr.msk.bf16.mxu1 %vm399_vm0, %v11003_v39  ;;  %v11019_v38 = vld [vmem:[%s14954_s2 + $0x754] ss:$8 sps:$4 sm:$0xff]   ;;  %v5749_v41 = vrot.slane %v5735_v25, %v11295_v14 }
 0x1c0   :  { %v11021_v39 = vld [vmem:[%s14954_s2 + $0x774] ss:$8 sps:$4 sm:$0xff]  }
 0x1c1   :  { %v11033_v25 = vld [vmem:[%s14954_s2 + $0x7b4] ss:$8 sps:$4 sm:$0xff]  }
 0x1c5   :  { %5356 = vmatmul.mubr.bf16.vlgmr.msra.gmra.mrb[108].mxu0 %v5287_v48  ;;  %5447 = vmatmul.mubr.bf16.vlgmr.msra.gmra.mrb[108].mxu1 %v5378_v49 }
 0x1c6   :  { %5506 = vmatpush1.bf16.xpose.msra.mxu0 %v11005_v50  ;;  %5597 = vmatpush1.bf16.xpose.msra.mxu1 %v11006_v51 }
 0x1c7   :  { %10107 = vmatprep.subr.msk.bf16.mxu0 %vm399_vm0, %v11007_v52  ;;  %10115 = vmatprep.subr.msk.bf16.mxu1 %vm399_vm0, %v11009_v53  ;;  %v11023_v52 = vld [vmem:[%s14954_s2 + $0x750] ss:$8 sps:$4 sm:$0xff]  }
 0x1c8   :  { %v12478_v0 = vpop.f32.mrb[56].mxu0  ;;  %v12480_v1 = vpop.f32.mrb[56].mxu1  ;;  %10108 = vmatprep.mubr.msk.bf16.mxu0 %vm399_vm0, %v5476_v54  ;;  %10116 = vmatprep.mubr.msk.bf16.mxu1 %vm399_vm0, %v5567_v55  ;;  %v11024_v53 = vld [vmem:[%s14954_s2 + $0x770] ss:$8 sps:$4 sm:$0xff]  }
 0x1c9   :  { %v2993_v2 = vpop.f32.mrb[57].mxu0  ;;  %v3084_v3 = vpop.f32.mrb[57].mxu1 }
 0x1ca   :  { %v2994_v9 = vpop.f32.mrb[58].mxu0  ;;  %v3085_v10 = vpop.f32.mrb[58].mxu1  ;;  %v11025_v2 = vld [vmem:[%s14954_s2 + $0x784] ss:$8 sps:$4 sm:$0xff]  }
 0x1cb   :  { %v2995_v13 = vpop.f32.mrb[59].mxu0  ;;  %v3086_v15 = vpop.f32.mrb[59].mxu1  ;;  %v11027_v3 = vld [vmem:[%s14954_s2 + $0x7a4] ss:$8 sps:$4 sm:$0xff]  }
 0x1cc   :  { %v10133_v9 = vld.sshfl [vmem:[%s14953_s1 + $0x78] sm:$0x11 pattern:$0x75316420]  ;;  %v5651_v13 = vrot.slane %v10117_v22, %v11295_v14  ;;  %v5742_v15 = vrot.slane %v10125_v23, %v11295_v14 }
 0x1cd   :  { %v10141_v10 = vld.sshfl [vmem:[%s14953_s1 + $0x7a] sm:$0x11 pattern:$0x75316420] }
 0x1ce   :  { %5508 = vmatpush1.bf16.xpose.msra.mxu0 %v11011_v11  ;;  %5599 = vmatpush1.bf16.xpose.msra.mxu1 %v11012_v12  ;;  %v5826_v11 = vcombine.high %v10133_v9, %v10133_v9  ;;  %v5917_v12 = vcombine.high %v10141_v10, %v10141_v10 }
 0x1cf   :  { %10122 = vmatprep.subr.msk.bf16.mxu0 %vm399_vm0, %v11013_v16  ;;  %10130 = vmatprep.subr.msk.bf16.mxu1 %vm399_vm0, %v11015_v17  ;;  %v11029_v16 = vld [vmem:[%s14954_s2 + $0x780] ss:$8 sps:$4 sm:$0xff]  }
 0x1d0   :  { %v11030_v17 = vld [vmem:[%s14954_s2 + $0x7a0] ss:$8 sps:$4 sm:$0xff]   ;;  %v5840_v22 = vrot.slane %v5826_v11, %v11295_v14  ;;  %v5931_v23 = vrot.slane %v5917_v12, %v11295_v14 }
 0x1d1   :  { %v11041_v11 = vld [vmem:[%s14954_s2 + $0x7c0] ss:$8 sps:$4 sm:$0xff]  }
 0x1d2   :  { %v11042_v12 = vld [vmem:[%s14954_s2 + $0x7e0] ss:$8 sps:$4 sm:$0xff]  }
 0x1d5   :  { %5538 = vmatmul.mubr.bf16.vlgmr.msra.gmra.mrb[112].mxu0 %v5469_v30  ;;  %5629 = vmatmul.mubr.bf16.vlgmr.msra.gmra.mrb[112].mxu1 %v5560_v31 }
 0x1d6   :  { %5688 = vmatpush1.bf16.xpose.msra.mxu0 %v11017_v36  ;;  %5779 = vmatpush1.bf16.xpose.msra.mxu1 %v11018_v37 }
 0x1d7   :  { %10123 = vmatprep.subr.msk.bf16.mxu0 %vm399_vm0, %v11019_v38  ;;  %10131 = vmatprep.subr.msk.bf16.mxu1 %vm399_vm0, %v11021_v39 }
 0x1d8   :  { %v12522_v46 = vpop.f32.mrb[60].mxu0  ;;  %v12524_v47 = vpop.f32.mrb[60].mxu1  ;;  %10124 = vmatprep.mubr.msk.bf16.mxu0 %vm399_vm0, %v5658_v40  ;;  %10132 = vmatprep.mubr.msk.bf16.mxu1 %vm399_vm0, %v5749_v41  ;;  %v11035_v40 = vld [vmem:[%s14954_s2 + $0x790] ss:$8 sps:$4 sm:$0xff]  }
 0x1d9   :  { %v3175_v48 = vpop.f32.mrb[61].mxu0  ;;  %v3266_v49 = vpop.f32.mrb[61].mxu1  ;;  %v11036_v41 = vld [vmem:[%s14954_s2 + $0x7b0] ss:$8 sps:$4 sm:$0xff]  }
 0x1da   :  { %v3176_v50 = vpop.f32.mrb[62].mxu0  ;;  %v3267_v51 = vpop.f32.mrb[62].mxu1 }
 0x1db   :  { %v3177_v54 = vpop.f32.mrb[63].mxu0  ;;  %v3268_v55 = vpop.f32.mrb[63].mxu1  ;;  %v11037_v50 = vld [vmem:[%s14954_s2 + $0x7c4] ss:$8 sps:$4 sm:$0xff]  }
 0x1dc   :  { %v11039_v51 = vld [vmem:[%s14954_s2 + $0x7e4] ss:$8 sps:$4 sm:$0xff]  }
 0x1de   :  { %5690 = vmatpush1.bf16.xpose.msra.mxu0 %v11023_v52  ;;  %5781 = vmatpush1.bf16.xpose.msra.mxu1 %v11024_v53  ;;  %v10149_v52 = vld.sshfl [vmem:[%s14953_s1 + $0x7c] sm:$0x11 pattern:$0x75316420] }
 0x1df   :  { %10138 = vmatprep.subr.msk.bf16.mxu0 %vm399_vm0, %v11025_v2  ;;  %10146 = vmatprep.subr.msk.bf16.mxu1 %vm399_vm0, %v11027_v3  ;;  %v10157_v53 = vld.sshfl [vmem:[%s14953_s1 + $0x7e] sm:$0x11 pattern:$0x75316420]  ;;  %v6008_v54 = vcombine.high %v10149_v52, %v10149_v52  ;;  %v5833_v2 = vrot.slane %v10133_v9, %v11295_v14  ;;  %v5924_v3 = vrot.slane %v10141_v10, %v11295_v14  ;;  %s11210_s1 = smov 64  }
 0x1e0   :  { %v6099_v55 = vcombine.high %v10157_v53, %v10157_v53 }
 0x1e1   :  { %v6022_v9 = vrot.slane %v6008_v54, %v11295_v14 }
 0x1e2   :  { %v6113_v10 = vrot.slane %v6099_v55, %v11295_v14 }
 0x1e5   :  { %5720 = vmatmul.mubr.bf16.vlgmr.msra.gmra.mrb[116].mxu0 %v5651_v13  ;;  %5811 = vmatmul.mubr.bf16.vlgmr.msra.gmra.mrb[116].mxu1 %v5742_v15  ;;  %v11043_v13 = vld [vmem:[%s14954_s2 + $0x7d4] ss:$8 sps:$4 sm:$0xff]  }
 0x1e6   :  { %5870 = vmatpush1.bf16.xpose.msra.mxu0 %v11029_v16  ;;  %5961 = vmatpush1.bf16.xpose.msra.mxu1 %v11030_v17  ;;  %v11045_v15 = vld [vmem:[%s14954_s2 + $0x7f4] ss:$8 sps:$4 sm:$0xff]  }
 0x1e7   :  { %10139 = vmatprep.subr.msk.bf16.mxu0 %vm399_vm0, %v11031_v24  ;;  %10147 = vmatprep.subr.msk.bf16.mxu1 %vm399_vm0, %v11033_v25 }
 0x1e8   :  { %v12566_v30 = vpop.f32.mrb[64].mxu0  ;;  %v12568_v31 = vpop.f32.mrb[64].mxu1  ;;  %10140 = vmatprep.mubr.msk.bf16.mxu0 %vm399_vm0, %v5840_v22  ;;  %10148 = vmatprep.mubr.msk.bf16.mxu1 %vm399_vm0, %v5931_v23 }
 0x1e9   :  { %v3357_v36 = vpop.f32.mrb[65].mxu0  ;;  %v3448_v37 = vpop.f32.mrb[65].mxu1 }
 0x1ea   :  { %v3358_v38 = vpop.f32.mrb[66].mxu0  ;;  %v3449_v39 = vpop.f32.mrb[66].mxu1  ;;  %v11047_v36 = vld [vmem:[%s14954_s2 + $0x7d0] ss:$8 sps:$4 sm:$0xff]  }
 0x1eb   :  { %v3359_v48 = vpop.f32.mrb[67].mxu0  ;;  %v3450_v49 = vpop.f32.mrb[67].mxu1  ;;  %v11048_v37 = vld [vmem:[%s14954_s2 + $0x7f0] ss:$8 sps:$4 sm:$0xff]   ;;  %s10535_s2 = spop %10534 }
 0x1ee   :  { %5872 = vmatpush1.bf16.xpose.msra.mxu0 %v11035_v40  ;;  %5963 = vmatpush1.bf16.xpose.msra.mxu1 %v11036_v41  ;;  %v6015_v40 = vrot.slane %v10149_v52, %v11295_v14  ;;  %v6106_v41 = vrot.slane %v10157_v53, %v11295_v14 }
 0x1ef   :  { %10154 = vmatprep.subr.msk.bf16.mxu0 %vm399_vm0, %v11037_v50  ;;  %10162 = vmatprep.subr.msk.bf16.mxu1 %vm399_vm0, %v11039_v51 }
 0x1f5   :  { %5902 = vmatmul.mubr.bf16.vlgmr.msra.gmra.mrb[120].mxu0 %v5833_v2  ;;  %5993 = vmatmul.mubr.bf16.vlgmr.msra.gmra.mrb[120].mxu1 %v5924_v3 }
 0x1f6   :  { %6052 = vmatpush1.bf16.xpose.msra.mxu0 %v11041_v11  ;;  %6143 = vmatpush1.bf16.xpose.msra.mxu1 %v11042_v12  ;;  %v12628_v11 = vstv %s10535_s2  ;;  %s11211_s2 = smov 32  }
 0x1f7   :  { %10155 = vmatprep.subr.msk.bf16.mxu0 %vm399_vm0, %v11043_v13  ;;  %10163 = vmatprep.subr.msk.bf16.mxu1 %vm399_vm0, %v11045_v15  ;;  %v6183_v13 = vmul.f32 %v12628_v11, %v11862_v58  ;;  %v10167_v58 = vld [vmem:[%s14955_s3 + $0x2] ss:$0 sm:$0xff] }
 0x1f8   :  { %v12610_v16 = vpop.f32.mrb[68].mxu0  ;;  %v12612_v17 = vpop.f32.mrb[68].mxu1  ;;  %10156 = vmatprep.mubr.msk.bf16.mxu0 %vm399_vm0, %v6022_v9  ;;  %10164 = vmatprep.mubr.msk.bf16.mxu1 %vm399_vm0, %v6113_v10  ;;  %v10165_v10 = vld [vmem:[%s14955_s3] ss:$0 sm:$0xff] }
 0x1f9   :  { %v3539_v24 = vpop.f32.mrb[69].mxu0  ;;  %v3630_v25 = vpop.f32.mrb[69].mxu1 }
 0x1fa   :  { %v3540_v22 = vpop.f32.mrb[70].mxu0  ;;  %v3631_v23 = vpop.f32.mrb[70].mxu1  ;;  %v6184_v24 = vmul.f32 %v12628_v11, %v11864_v59  ;;  %v6186_v59 = vmul.f32 %v12628_v11, %v11908_v21 }
 0x1fb   :  { %v3541_v38 = vpop.f32.mrb[71].mxu0  ;;  %v3632_v39 = vpop.f32.mrb[71].mxu1  ;;  %v10166_v23 = vld [vmem:[%s14955_s3 + $0x1] ss:$0 sm:$0xff] }
 0x1fc   :  { %v12651_v38 = vadd.f32 %v10166_v23, %v6184_v24  ;;  %v6189_v23 = vmul.f32 %v12628_v11, %v11994_v6 }
 0x1fe   :  { %6054 = vmatpush1.bf16.xpose.msra.mxu0 %v11047_v36  ;;  %6145 = vmatpush1.bf16.xpose.msra.mxu1 %v11048_v37  ;;  %v6185_v36 = vmul.f32 %v12628_v11, %v11906_v20  ;;  %v12646_v37 = vadd.f32 %v10165_v10, %v6183_v13  ;;  %15025 = vst [vmem:[#allocation7_spill] sm:$0xff] %v12651_v38  ;;  %v10168_v20 = vld [vmem:[%s14955_s3 + $0x3] ss:$0 sm:$0xff] }
 0x1ff   :  { %v6188_v13 = vmul.f32 %v12628_v11, %v11952_v45 }
 0x200   :  { %v12653_v39 = vadd.f32 %v10167_v58, %v6185_v36  ;;  %v6760_v21 = vsel %vm6759_vm1, %v12646_v37, 0.0 }
 0x202   :  { %15026 = vst [vmem:[#allocation8_spill] sm:$0xff] %v12653_v39 }
 0x205   :  { %6084 = vmatmul.mubr.bf16.vlgmr.msra.gmra.mrb[124].mxu0 %v6015_v40  ;;  %6175 = vmatmul.mubr.bf16.vlgmr.msra.gmra.mrb[124].mxu1 %v6106_v41  ;;  %v6893_v40 = vmul.f32 %v12646_v37, %v12646_v37  ;;  %v6894_v41 = vmul.f32 %v12651_v38, %v12651_v38 }
 0x208   :  { %v12624_v48 = vpop.f32.mrb[72].mxu0  ;;  %v12626_v49 = vpop.f32.mrb[72].mxu1 }
 0x209   :  { %v3721_v50 = vpop.f32.mrb[73].mxu0  ;;  %v3812_v51 = vpop.f32.mrb[73].mxu1 }
 0x20a   :  { %v3722_v54 = vpop.f32.mrb[74].mxu0  ;;  %v3813_v55 = vpop.f32.mrb[74].mxu1  ;;  %v6187_v50 = vmul.f32 %v12628_v11, %v11950_v44  ;;  %v10169_v51 = vld [vmem:[%s14955_s3 + $0x4] ss:$0 sm:$0xff]  ;;  %v6763_v44 = vsel %vm6759_vm1, %v12653_v39, 0.0 }
 0x20b   :  { %v3723_v2 = vpop.f32.mrb[75].mxu0  ;;  %v3814_v3 = vpop.f32.mrb[75].mxu1  ;;  %v6761_v54 = vsel %vm6759_vm1, %v12651_v38, 0.0  ;;  %v6895_v55 = vmul.f32 %v12653_v39, %v12653_v39 }
 0x20c   :  { %v12675_v2 = vadd.f32 %v10168_v20, %v6186_v59  ;;  %v6957_v3 = vsel %vm6759_vm1, %v6893_v40, 0.0  ;;  %v10171_v40 = vld [vmem:[%s14955_s3 + $0x6] ss:$0 sm:$0xff] }
 0x218   :  { %v12630_v12 = vpop.f32.mrb[76].mxu0  ;;  %v12632_v52 = vpop.f32.mrb[76].mxu1 }
 0x219   :  { %v3903_v14 = vpop.f32.mrb[77].mxu0  ;;  %v3994_v53 = vpop.f32.mrb[77].mxu1 }
 0x21a   :  { %v3904_v15 = vpop.f32.mrb[78].mxu0  ;;  %v3995_v9 = vpop.f32.mrb[78].mxu1  ;;  %v6958_v14 = vsel %vm6759_vm1, %v6894_v41, 0.0  ;;  %v12681_v53 = vadd.f32 %v10169_v51, %v6187_v50  ;;  %v6765_v50 = vsel %vm6759_vm1, %v12675_v2, 0.0 }
 0x21b   :  { %v3905_v25 = vpop.f32.mrb[79].mxu0  ;;  %v3996_v22 = vpop.f32.mrb[79].mxu1  ;;  %v6762_v15 = vadd.f32 %v6761_v54, %v6760_v21  ;;  %v10170_v9 = vld [vmem:[%s14955_s3 + $0x5] ss:$0 sm:$0xff]  ;;  %v6959_v45 = vadd.f32 %v6958_v14, %v6957_v3 }
 0x21c   :  { %v6960_v25 = vsel %vm6759_vm1, %v6895_v55, 0.0  ;;  %v6896_v22 = vmul.f32 %v12675_v2, %v12675_v2  ;;  %v6897_v51 = vmul.f32 %v12681_v53, %v12681_v53  ;;  %v12704_v21 = vadd.f32 %v10170_v9, %v6188_v13 }
 0x21d   :  { %v6764_v59 = vadd.f32 %v6763_v44, %v6762_v15  ;;  %v6961_v55 = vadd.f32 %v6960_v25, %v6959_v45  ;;  %v6767_v14 = vsel %vm6759_vm1, %v12681_v53, 0.0  ;;  %v12709_v44 = vadd.f32 %v10171_v40, %v6189_v23  ;;  %v10173_v23 = vld [vmem:[%s14955_s3 + $0x8] ss:$0 sm:$0xff] }
 0x21e   :  { %15027 = vst [vmem:[#allocation9_spill] sm:$0xff] %v12704_v21  ;;  %v6962_v3 = vsel %vm6759_vm1, %v6896_v22, 0.0  ;;  %v6190_v15 = vmul.f32 %v12628_v11, %v11996_v7  ;;  %v6964_v13 = vsel %vm6759_vm1, %v6897_v51, 0.0  ;;  %v6898_v9 = vmul.f32 %v12704_v21, %v12704_v21 }
 0x21f   :  { %15028 = vst [vmem:[#allocation10_spill] sm:$0xff] %v12709_v44  ;;  %v6191_v25 = vmul.f32 %v12628_v11, %v12038_v34  ;;  %v6963_v22 = vadd.f32 %v6962_v3, %v6961_v55  ;;  %v6769_v7 = vsel %vm6759_vm1, %v12704_v21, 0.0  ;;  %v6771_v34 = vsel %vm6759_vm1, %v12709_v44, 0.0 }
 0x220   :  { %v6192_v51 = vmul.f32 %v12628_v11, %v12040_v35  ;;  %v6200_v21 = vmul.f32 %v12628_v11, %v12216_v27  ;;  %v10183_v27 = vld [vmem:[%s14955_s3 + $0x12] ss:$0 sm:$0xff] }
 0x228   :  { %v12688_v10 = vpop.f32.mrb[80].mxu0  ;;  %v12690_v24 = vpop.f32.mrb[80].mxu1 }
 0x229   :  { %v4085_v36 = vpop.f32.mrb[81].mxu0  ;;  %v4176_v58 = vpop.f32.mrb[81].mxu1 }
 0x22a   :  { %v4086_v20 = vpop.f32.mrb[82].mxu0  ;;  %v4177_v41 = vpop.f32.mrb[82].mxu1  ;;  %v6766_v36 = vadd.f32 %v6765_v50, %v6764_v59  ;;  %v10172_v58 = vld [vmem:[%s14955_s3 + $0x7] ss:$0 sm:$0xff]  ;;  %v6899_v59 = vmul.f32 %v12709_v44, %v12709_v44  ;;  %v12733_v50 = vadd.f32 %v10173_v23, %v6191_v25 }
 0x22b   :  { %v4087_v54 = vpop.f32.mrb[83].mxu0  ;;  %v4178_v6 = vpop.f32.mrb[83].mxu1  ;;  %v12728_v40 = vadd.f32 %v10172_v58, %v6190_v15  ;;  %v6965_v20 = vadd.f32 %v6964_v13, %v6963_v22  ;;  %v6966_v41 = vsel %vm6759_vm1, %v6898_v9, 0.0  ;;  %v10175_v58 = vld [vmem:[%s14955_s3 + $0xa] ss:$0 sm:$0xff] }
 0x22c   :  { %v6768_v45 = vadd.f32 %v6767_v14, %v6766_v36  ;;  %v10174_v6 = vld [vmem:[%s14955_s3 + $0x9] ss:$0 sm:$0xff]  ;;  %v6968_v55 = vsel %vm6759_vm1, %v6899_v59, 0.0  ;;  %v6193_v14 = vmul.f32 %v12628_v11, %v12082_v62  ;;  %v6901_v13 = vmul.f32 %v12733_v50, %v12733_v50 }
 0x22d   :  { %v6900_v3 = vmul.f32 %v12728_v40, %v12728_v40  ;;  %v6967_v15 = vadd.f32 %v6966_v41, %v6965_v20  ;;  %v6773_v35 = vsel %vm6759_vm1, %v12728_v40, 0.0  ;;  %v12752_v9 = vadd.f32 %v10174_v6, %v6192_v51  ;;  %v10176_v51 = vld [vmem:[%s14955_s3 + $0xb] ss:$0 sm:$0xff] }
 0x22e   :  { %v6770_v54 = vadd.f32 %v6769_v7, %v6768_v45  ;;  %v6775_v23 = vsel %vm6759_vm1, %v12733_v50, 0.0  ;;  %v12761_v7 = vadd.f32 %v10175_v58, %v6193_v14  ;;  %v6194_v59 = vmul.f32 %v12628_v11, %v12084_v63 }
 0x22f   :  { %v6969_v25 = vadd.f32 %v6968_v55, %v6967_v15  ;;  %v6970_v62 = vsel %vm6759_vm1, %v6900_v3, 0.0  ;;  %v6972_v55 = vsel %vm6759_vm1, %v6901_v13, 0.0  ;;  %v6902_v3 = vmul.f32 %v12752_v9, %v12752_v9 }
 0x230   :  { %v6772_v36 = vadd.f32 %v6771_v34, %v6770_v54  ;;  %v6195_v14 = vmul.f32 %v12628_v11, %v12126_v28  ;;  %v6903_v13 = vmul.f32 %v12761_v7, %v12761_v7  ;;  %v6779_v28 = vsel %vm6759_vm1, %v12761_v7, 0.0 }
 0x231   :  { %v6971_v63 = vadd.f32 %v6970_v62, %v6969_v25  ;;  %v6196_v62 = vmul.f32 %v12628_v11, %v12128_v29 }
 0x232   :  { %v6774_v34 = vadd.f32 %v6773_v35, %v6772_v36  ;;  %v10177_v36 = vld [vmem:[%s14955_s3 + $0xc] ss:$0 sm:$0xff]  ;;  %v6777_v35 = vsel %vm6759_vm1, %v12752_v9, 0.0 }
 0x233   :  { %v12785_v25 = vadd.f32 %v10177_v36, %v6195_v14  ;;  %v10179_v14 = vld [vmem:[%s14955_s3 + $0xe] ss:$0 sm:$0xff] }
 0x238   :  { %v12754_v22 = vpop.f32.mrb[84].mxu0  ;;  %v12756_v45 = vpop.f32.mrb[84].mxu1 }
 0x239   :  { %v4267_v20 = vpop.f32.mrb[85].mxu0  ;;  %v4358_v41 = vpop.f32.mrb[85].mxu1 }
 0x23a   :  { %v4268_v54 = vpop.f32.mrb[86].mxu0  ;;  %v4359_v6 = vpop.f32.mrb[86].mxu1  ;;  %v6776_v20 = vadd.f32 %v6775_v23, %v6774_v34  ;;  %v12780_v41 = vadd.f32 %v10176_v51, %v6194_v59  ;;  %v10178_v34 = vld [vmem:[%s14955_s3 + $0xd] ss:$0 sm:$0xff]  ;;  %v6197_v51 = vmul.f32 %v12628_v11, %v12170_v56  ;;  %v6783_v56 = vsel %vm6759_vm1, %v12785_v25, 0.0 }
 0x23b   :  { %v4269_v15 = vpop.f32.mrb[87].mxu0  ;;  %v4360_v58 = vpop.f32.mrb[87].mxu1  ;;  %v6973_v54 = vadd.f32 %v6972_v55, %v6971_v63  ;;  %v6974_v6 = vsel %vm6759_vm1, %v6902_v3, 0.0  ;;  %v12804_v63 = vadd.f32 %v10178_v34, %v6196_v62 }
 0x23c   :  { %v6778_v23 = vadd.f32 %v6777_v35, %v6776_v20  ;;  %v6976_v15 = vsel %vm6759_vm1, %v6903_v13, 0.0  ;;  %v6904_v59 = vmul.f32 %v12780_v41, %v12780_v41  ;;  %v6781_v29 = vsel %vm6759_vm1, %v12780_v41, 0.0 }
 0x23d   :  { %v6975_v55 = vadd.f32 %v6974_v6, %v6973_v54  ;;  %v6905_v58 = vmul.f32 %v12785_v25, %v12785_v25  ;;  %15029 = vst [vmem:[#allocation11_spill] sm:$0xff] %v12804_v63  ;;  %v12809_v35 = vadd.f32 %v10179_v14, %v6197_v51  ;;  %v6198_v13 = vmul.f32 %v12628_v11, %v12172_v57  ;;  %v10180_v6 = vld [vmem:[%s14955_s3 + $0xf] ss:$0 sm:$0xff] }
 0x23e   :  { %v6780_v3 = vadd.f32 %v6779_v28, %v6778_v23  ;;  %v6978_v36 = vsel %vm6759_vm1, %v6904_v59, 0.0  ;;  %v6906_v62 = vmul.f32 %v12804_v63, %v12804_v63  ;;  %v6199_v23 = vmul.f32 %v12628_v11, %v12214_v26  ;;  %v10181_v59 = vld [vmem:[%s14955_s3 + $0x10] ss:$0 sm:$0xff] }
 0x23f   :  { %v6977_v20 = vadd.f32 %v6976_v15, %v6975_v55  ;;  %v6980_v28 = vsel %vm6759_vm1, %v6905_v58, 0.0  ;;  %v6785_v55 = vsel %vm6759_vm1, %v12804_v63, 0.0  ;;  %v12832_v14 = vadd.f32 %v10180_v6, %v6198_v13  ;;  %v10182_v13 = vld [vmem:[%s14955_s3 + $0x11] ss:$0 sm:$0xff] }
 0x240   :  { %v6782_v54 = vadd.f32 %v6781_v29, %v6780_v3  ;;  %v6907_v3 = vmul.f32 %v12809_v35, %v12809_v35  ;;  %v12837_v44 = vadd.f32 %v10181_v59, %v6199_v23 }
 0x241   :  { %v6979_v34 = vadd.f32 %v6978_v36, %v6977_v20 }
 0x242   :  { %v6784_v15 = vadd.f32 %v6783_v56, %v6782_v54  ;;  %v6982_v56 = vsel %vm6759_vm1, %v6906_v62, 0.0  ;;  %v6787_v54 = vsel %vm6759_vm1, %v12809_v35, 0.0  ;;  %v6984_v6 = vsel %vm6759_vm1, %v6907_v3, 0.0 }
 0x243   :  { %v6981_v58 = vadd.f32 %v6980_v28, %v6979_v34  ;;  %v6908_v28 = vmul.f32 %v12832_v14, %v12832_v14  ;;  %v6201_v62 = vmul.f32 %v12628_v11, %v12258_v60  ;;  %v6791_v60 = vsel %vm6759_vm1, %v12837_v44, 0.0 }
 0x244   :  { %v6786_v63 = vadd.f32 %v6785_v55, %v6784_v15  ;;  %v12856_v15 = vadd.f32 %v10182_v13, %v6200_v21 }
 0x245   :  { %v6983_v23 = vadd.f32 %v6982_v56, %v6981_v58  ;;  %v6986_v55 = vsel %vm6759_vm1, %v6908_v28, 0.0  ;;  %v12861_v3 = vadd.f32 %v10183_v27, %v6201_v62 }
 0x246   :  { %v6788_v34 = vadd.f32 %v6787_v54, %v6786_v63  ;;  %v6202_v63 = vmul.f32 %v12628_v11, %v12260_v61  ;;  %v6910_v21 = vmul.f32 %v12856_v15, %v12856_v15  ;;  %v10185_v54 = vld [vmem:[%s14955_s3 + $0x14] ss:$0 sm:$0xff]  ;;  %v6793_v61 = vsel %vm6759_vm1, %v12856_v15, 0.0 }
 0x247   :  { %v6985_v59 = vadd.f32 %v6984_v6, %v6983_v23  ;;  %v6911_v13 = vmul.f32 %v12861_v3, %v12861_v3 }
 0x248   :  { %v12824_v57 = vpop.f32.mrb[88].mxu0  ;;  %v12826_v51 = vpop.f32.mrb[88].mxu1  ;;  %v6990_v62 = vsel %vm6759_vm1, %v6910_v21, 0.0  ;;  %v10187_v21 = vld [vmem:[%s14955_s3 + $0x16] ss:$0 sm:$0xff] }
 0x249   :  { %v4449_v29 = vpop.f32.mrb[89].mxu0  ;;  %v4540_v26 = vpop.f32.mrb[89].mxu1 }
 0x24a   :  { %v4450_v20 = vpop.f32.mrb[90].mxu0  ;;  %v4541_v36 = vpop.f32.mrb[90].mxu1  ;;  %v10184_v26 = vld [vmem:[%s14955_s3 + $0x13] ss:$0 sm:$0xff] }
 0x24b   :  { %v4451_v39 = vpop.f32.mrb[91].mxu0  ;;  %v4542_v38 = vpop.f32.mrb[91].mxu1  ;;  %v6203_v20 = vmul.f32 %v12628_v11, %v12302_v32  ;;  %v6987_v36 = vadd.f32 %v6986_v55, %v6985_v59  ;;  %v12880_v6 = vadd.f32 %v10184_v26, %v6202_v63  ;;  %v6795_v32 = vsel %vm6759_vm1, %v12861_v3, 0.0 }
 0x24c   :  { %v6789_v38 = vsel %vm6759_vm1, %v12832_v14, 0.0  ;;  %v6909_v39 = vmul.f32 %v12837_v44, %v12837_v44  ;;  %v6992_v55 = vsel %vm6759_vm1, %v6911_v13, 0.0  ;;  %v6205_v63 = vmul.f32 %v12628_v11, %v12346_v4 }
 0x24d   :  { %v6790_v29 = vadd.f32 %v6789_v38, %v6788_v34  ;;  %v12885_v23 = vadd.f32 %v10185_v54, %v6203_v20  ;;  %v6204_v34 = vmul.f32 %v12628_v11, %v12304_v33  ;;  %v10186_v38 = vld [vmem:[%s14955_s3 + $0x15] ss:$0 sm:$0xff] }
 0x24e   :  { %v6988_v58 = vsel %vm6759_vm1, %v6909_v39, 0.0 }
 0x24f   :  { %v6792_v56 = vadd.f32 %v6791_v60, %v6790_v29  ;;  %v6989_v28 = vadd.f32 %v6988_v58, %v6987_v36  ;;  %v6912_v60 = vmul.f32 %v12880_v6, %v12880_v6  ;;  %v6913_v54 = vmul.f32 %v12885_v23, %v12885_v23 }
 0x251   :  { %v6794_v27 = vadd.f32 %v6793_v61, %v6792_v56  ;;  %v6991_v33 = vadd.f32 %v6990_v62, %v6989_v28  ;;  %v6797_v56 = vsel %vm6759_vm1, %v12880_v6, 0.0  ;;  %v12908_v61 = vadd.f32 %v10186_v38, %v6204_v34 }
 0x252   :  { %v6994_v28 = vsel %vm6759_vm1, %v6912_v60, 0.0  ;;  %v6799_v62 = vsel %vm6759_vm1, %v12885_v23, 0.0  ;;  %v6996_v34 = vsel %vm6759_vm1, %v6913_v54, 0.0 }
 0x253   :  { %v6796_v58 = vadd.f32 %v6795_v32, %v6794_v27  ;;  %v12913_v32 = vadd.f32 %v10187_v21, %v6205_v63  ;;  %v6206_v27 = vmul.f32 %v12628_v11, %v12348_v5  ;;  %v6914_v38 = vmul.f32 %v12908_v61, %v12908_v61  ;;  %v10189_v63 = vld [vmem:[%s14955_s3 + $0x18] ss:$0 sm:$0xff] }
 0x254   :  { %v6801_v5 = vsel %vm6759_vm1, %v12908_v61, 0.0 }
 0x258   :  { %v12892_v39 = vpop.f32.mrb[92].mxu0  ;;  %v12894_v59 = vpop.f32.mrb[92].mxu1 }
 0x259   :  { %v4631_v29 = vpop.f32.mrb[93].mxu0  ;;  %v4722_v26 = vpop.f32.mrb[93].mxu1 }
 0x25a   :  { %v4632_v20 = vpop.f32.mrb[94].mxu0  ;;  %v4723_v36 = vpop.f32.mrb[94].mxu1  ;;  %v6993_v29 = vadd.f32 %v6992_v55, %v6991_v33  ;;  %v6798_v26 = vadd.f32 %v6797_v56, %v6796_v58  ;;  %v6207_v55 = vmul.f32 %v12628_v11, %v12390_v42  ;;  %v6915_v58 = vmul.f32 %v12913_v32, %v12913_v32 }
 0x25b   :  { %v4633_v13 = vpop.f32.mrb[95].mxu0  ;;  %v4724_v4 = vpop.f32.mrb[95].mxu1  ;;  %v10188_v20 = vld [vmem:[%s14955_s3 + $0x17] ss:$0 sm:$0xff]  ;;  %v6998_v56 = vsel %vm6759_vm1, %v6914_v38, 0.0  ;;  %v6803_v42 = vsel %vm6759_vm1, %v12913_v32, 0.0 }
 0x25c   :  { %v6995_v60 = vadd.f32 %v6994_v28, %v6993_v29  ;;  %v6800_v33 = vadd.f32 %v6799_v62, %v6798_v26  ;;  %v12932_v21 = vadd.f32 %v10188_v20, %v6206_v27  ;;  %v12937_v54 = vadd.f32 %v10189_v63, %v6207_v55  ;;  %v10190_v29 = vld [vmem:[%s14955_s3 + $0x19] ss:$0 sm:$0xff] }
 0x25d   :  { %v6208_v13 = vmul.f32 %v12628_v11, %v12392_v43  ;;  %v7000_v28 = vsel %vm6759_vm1, %v6915_v58, 0.0  ;;  %v6209_v27 = vmul.f32 %v12628_v11, %v12434_v18 }
 0x25e   :  { %v6997_v36 = vadd.f32 %v6996_v34, %v6995_v60  ;;  %15030 = vst [vmem:[#allocation12_spill] sm:$0xff] %v12937_v54  ;;  %v6802_v4 = vadd.f32 %v6801_v5, %v6800_v33  ;;  %v6916_v62 = vmul.f32 %v12932_v21, %v12932_v21  ;;  %v10191_v34 = vld [vmem:[%s14955_s3 + $0x1a] ss:$0 sm:$0xff]  ;;  %v6805_v43 = vsel %vm6759_vm1, %v12932_v21, 0.0 }
 0x25f   :  { %v6917_v38 = vmul.f32 %v12937_v54, %v12937_v54  ;;  %v12956_v55 = vadd.f32 %v10190_v29, %v6208_v13  ;;  %v6807_v5 = vsel %vm6759_vm1, %v12937_v54, 0.0  ;;  %v12965_v58 = vadd.f32 %v10191_v34, %v6209_v27  ;;  %v10192_v13 = vld [vmem:[%s14955_s3 + $0x1b] ss:$0 sm:$0xff] }
 0x260   :  { %v6999_v26 = vadd.f32 %v6998_v56, %v6997_v36  ;;  %v6804_v20 = vadd.f32 %v6803_v42, %v6802_v4  ;;  %v7002_v18 = vsel %vm6759_vm1, %v6916_v62, 0.0  ;;  %v6210_v36 = vmul.f32 %v12628_v11, %v12436_v19 }
 0x261   :  { %15031 = vst [vmem:[#allocation13_spill] sm:$0xff] %v12956_v55  ;;  %15032 = vst [vmem:[#allocation14_spill] sm:$0xff] %v12965_v58  ;;  %v6918_v62 = vmul.f32 %v12956_v55, %v12956_v55  ;;  %v6211_v27 = vmul.f32 %v12628_v11, %v12478_v0  ;;  %v6811_v0 = vsel %vm6759_vm1, %v12965_v58, 0.0 }
 0x262   :  { %v7001_v60 = vadd.f32 %v7000_v28, %v6999_v26  ;;  %v6806_v4 = vadd.f32 %v6805_v43, %v6804_v20  ;;  %v7004_v26 = vsel %vm6759_vm1, %v6917_v38, 0.0  ;;  %v10193_v20 = vld [vmem:[%s14955_s3 + $0x1c] ss:$0 sm:$0xff]  ;;  %v6809_v43 = vsel %vm6759_vm1, %v12956_v55, 0.0 }
 0x263   :  { %v6919_v38 = vmul.f32 %v12965_v58, %v12965_v58 }
 0x264   :  { %v7003_v19 = vadd.f32 %v7002_v18, %v7001_v60  ;;  %v6212_v60 = vmul.f32 %v12628_v11, %v12480_v1 }
 0x268   :  { %v12958_v33 = vpop.f32.mrb[96].mxu0  ;;  %v12960_v63 = vpop.f32.mrb[96].mxu1 }
 0x269   :  { %v4813_v56 = vpop.f32.mrb[97].mxu0  ;;  %v4904_v42 = vpop.f32.mrb[97].mxu1 }
 0x26a   :  { %v4814_v29 = vpop.f32.mrb[98].mxu0  ;;  %v4905_v28 = vpop.f32.mrb[98].mxu1  ;;  %v6808_v56 = vadd.f32 %v6807_v5, %v6806_v4  ;;  %v12984_v42 = vadd.f32 %v10192_v13, %v6210_v36  ;;  %v10194_v5 = vld [vmem:[%s14955_s3 + $0x1d] ss:$0 sm:$0xff]  ;;  %v7008_v4 = vsel %vm6759_vm1, %v6919_v38, 0.0  ;;  %v6213_v13 = vmul.f32 %v12628_v11, %v12522_v46 }
 0x26b   :  { %v4815_v34 = vpop.f32.mrb[99].mxu0  ;;  %v4906_v54 = vpop.f32.mrb[99].mxu1  ;;  %v7005_v29 = vadd.f32 %v7004_v26, %v7003_v19  ;;  %v7006_v28 = vsel %vm6759_vm1, %v6918_v62, 0.0  ;;  %v13008_v19 = vadd.f32 %v10194_v5, %v6212_v60  ;;  %v6214_v38 = vmul.f32 %v12628_v11, %v12524_v47 }
 0x26c   :  { %15033 = vst [vmem:[#allocation15_spill] sm:$0xff] %v12984_v42  ;;  %v12989_v54 = vadd.f32 %v10193_v20, %v6211_v27  ;;  %v6810_v18 = vadd.f32 %v6809_v43, %v6808_v56  ;;  %v6920_v36 = vmul.f32 %v12984_v42, %v12984_v42  ;;  %v10195_v27 = vld [vmem:[%s14955_s3 + $0x1e] ss:$0 sm:$0xff]  ;;  %v6813_v1 = vsel %vm6759_vm1, %v12984_v42, 0.0 }
 0x26d   :  { %v7007_v26 = vadd.f32 %v7006_v28, %v7005_v29  ;;  %15035 = vst [vmem:[#allocation17_spill] sm:$0xff] %v13008_v19  ;;  %v13013_v43 = vadd.f32 %v10195_v27, %v6213_v13  ;;  %v10196_v28 = vld [vmem:[%s14955_s3 + $0x1f] ss:$0 sm:$0xff]  ;;  %v6922_v60 = vmul.f32 %v13008_v19, %v13008_v19 }
 0x26e   :  { %15034 = vst [vmem:[#allocation16_spill] sm:$0xff] %v12989_v54  ;;  %v6812_v62 = vadd.f32 %v6811_v0, %v6810_v18  ;;  %v6921_v34 = vmul.f32 %v12989_v54, %v12989_v54  ;;  %v7010_v20 = vsel %vm6759_vm1, %v6920_v36, 0.0  ;;  %v6815_v46 = vsel %vm6759_vm1, %v12989_v54, 0.0  ;;  %v10197_v36 = vld [vmem:[%s14955_s3 + $0x20] ss:$0 sm:$0xff] }
 0x26f   :  { %v7009_v56 = vadd.f32 %v7008_v4, %v7007_v26  ;;  %v6215_v18 = vmul.f32 %v12628_v11, %v12566_v30  ;;  %v6817_v26 = vsel %vm6759_vm1, %v13008_v19, 0.0  ;;  %v13036_v27 = vadd.f32 %v10196_v28, %v6214_v38  ;;  %v10198_v38 = vld [vmem:[%s14955_s3 + $0x21] ss:$0 sm:$0xff] }
 0x270   :  { %v6814_v29 = vadd.f32 %v6813_v1, %v6812_v62  ;;  %v7012_v0 = vsel %vm6759_vm1, %v6921_v34, 0.0  ;;  %v6923_v62 = vmul.f32 %v13013_v43, %v13013_v43  ;;  %v6216_v19 = vmul.f32 %v12628_v11, %v12568_v31  ;;  %v10199_v31 = vld [vmem:[%s14955_s3 + $0x22] ss:$0 sm:$0xff] }
 0x271   :  { %v7011_v5 = vadd.f32 %v7010_v20, %v7009_v56  ;;  %v13041_v54 = vadd.f32 %v10197_v36, %v6215_v18 }
 0x272   :  { %v6816_v4 = vadd.f32 %v6815_v46, %v6814_v29  ;;  %v7014_v46 = vsel %vm6759_vm1, %v6922_v60, 0.0  ;;  %v6819_v29 = vsel %vm6759_vm1, %v13013_v43, 0.0  ;;  %v7016_v28 = vsel %vm6759_vm1, %v6923_v62, 0.0 }
 0x273   :  { %v7013_v34 = vadd.f32 %v7012_v0, %v7011_v5  ;;  %v6924_v0 = vmul.f32 %v13036_v27, %v13036_v27  ;;  %v6217_v60 = vmul.f32 %v12628_v11, %v12610_v16  ;;  %v6823_v16 = vsel %vm6759_vm1, %v13041_v54, 0.0 }
 0x274   :  { %v6818_v55 = vadd.f32 %v6817_v26, %v6816_v4  ;;  %v13060_v4 = vadd.f32 %v10198_v38, %v6216_v19 }
 0x275   :  { %v7015_v18 = vadd.f32 %v7014_v46, %v7013_v34  ;;  %v7018_v26 = vsel %vm6759_vm1, %v6924_v0, 0.0  ;;  %v13065_v62 = vadd.f32 %v10199_v31, %v6217_v60 }
 0x276   :  { %v6820_v5 = vadd.f32 %v6819_v29, %v6818_v55  ;;  %v6218_v55 = vmul.f32 %v12628_v11, %v12612_v17  ;;  %v6926_v19 = vmul.f32 %v13060_v4, %v13060_v4  ;;  %v10201_v29 = vld [vmem:[%s14955_s3 + $0x24] ss:$0 sm:$0xff]  ;;  %v6825_v17 = vsel %vm6759_vm1, %v13060_v4, 0.0 }
 0x277   :  { %v7017_v36 = vadd.f32 %v7016_v28, %v7015_v18  ;;  %v6927_v38 = vmul.f32 %v13065_v62, %v13065_v62 }
 0x278   :  { %v13028_v47 = vpop.f32.mrb[100].mxu0  ;;  %v13030_v13 = vpop.f32.mrb[100].mxu1  ;;  %v7022_v60 = vsel %vm6759_vm1, %v6926_v19, 0.0  ;;  %v10203_v19 = vld [vmem:[%s14955_s3 + $0x26] ss:$0 sm:$0xff] }
 0x279   :  { %v4995_v1 = vpop.f32.mrb[101].mxu0  ;;  %v5086_v30 = vpop.f32.mrb[101].mxu1 }
 0x27a   :  { %v4996_v56 = vpop.f32.mrb[102].mxu0  ;;  %v5087_v20 = vpop.f32.mrb[102].mxu1  ;;  %v10200_v30 = vld [vmem:[%s14955_s3 + $0x23] ss:$0 sm:$0xff] }
 0x27b   :  { %v4997_v42 = vpop.f32.mrb[103].mxu0  ;;  %v5088_v58 = vpop.f32.mrb[103].mxu1  ;;  %v6219_v56 = vmul.f32 %v12628_v11, %v12624_v48  ;;  %v7019_v20 = vadd.f32 %v7018_v26, %v7017_v36  ;;  %v13084_v28 = vadd.f32 %v10200_v30, %v6218_v55  ;;  %v6827_v48 = vsel %vm6759_vm1, %v13065_v62, 0.0 }
 0x27c   :  { %v6821_v58 = vsel %vm6759_vm1, %v13036_v27, 0.0  ;;  %v6925_v42 = vmul.f32 %v13041_v54, %v13041_v54  ;;  %v7024_v26 = vsel %vm6759_vm1, %v6927_v38, 0.0  ;;  %v6221_v55 = vmul.f32 %v12628_v11, %v12630_v12 }
 0x27d   :  { %v6822_v1 = vadd.f32 %v6821_v58, %v6820_v5  ;;  %v13089_v18 = vadd.f32 %v10201_v29, %v6219_v56  ;;  %v6220_v5 = vmul.f32 %v12628_v11, %v12626_v49  ;;  %v10202_v58 = vld [vmem:[%s14955_s3 + $0x25] ss:$0 sm:$0xff] }
 0x27e   :  { %v7020_v34 = vsel %vm6759_vm1, %v6925_v42, 0.0 }
 0x27f   :  { %v6824_v46 = vadd.f32 %v6823_v16, %v6822_v1  ;;  %v7021_v0 = vadd.f32 %v7020_v34, %v7019_v20  ;;  %v6928_v16 = vmul.f32 %v13084_v28, %v13084_v28  ;;  %v6929_v29 = vmul.f32 %v13089_v18, %v13089_v18 }
 0x281   :  { %v6826_v31 = vadd.f32 %v6825_v17, %v6824_v46  ;;  %v7023_v49 = vadd.f32 %v7022_v60, %v7021_v0  ;;  %v6829_v46 = vsel %vm6759_vm1, %v13084_v28, 0.0  ;;  %v13112_v17 = vadd.f32 %v10202_v58, %v6220_v5 }
 0x282   :  { %v7026_v0 = vsel %vm6759_vm1, %v6928_v16, 0.0  ;;  %v6831_v60 = vsel %vm6759_vm1, %v13089_v18, 0.0  ;;  %v7028_v5 = vsel %vm6759_vm1, %v6929_v29, 0.0 }
 0x283   :  { %v6828_v34 = vadd.f32 %v6827_v48, %v6826_v31  ;;  %v13117_v48 = vadd.f32 %v10203_v19, %v6221_v55  ;;  %v6222_v31 = vmul.f32 %v12628_v11, %v12632_v52  ;;  %v6930_v58 = vmul.f32 %v13112_v17, %v13112_v17  ;;  %v10205_v55 = vld [vmem:[%s14955_s3 + $0x28] ss:$0 sm:$0xff] }
 0x284   :  { %v6833_v52 = vsel %vm6759_vm1, %v13112_v17, 0.0 }
 0x288   :  { %v13096_v42 = vpop.f32.mrb[104].mxu0  ;;  %v13098_v36 = vpop.f32.mrb[104].mxu1 }
 0x289   :  { %v5177_v1 = vpop.f32.mrb[105].mxu0  ;;  %v5268_v30 = vpop.f32.mrb[105].mxu1 }
 0x28a   :  { %v5178_v56 = vpop.f32.mrb[106].mxu0  ;;  %v5269_v20 = vpop.f32.mrb[106].mxu1  ;;  %v7025_v1 = vadd.f32 %v7024_v26, %v7023_v49  ;;  %v6830_v30 = vadd.f32 %v6829_v46, %v6828_v34  ;;  %v6223_v26 = vmul.f32 %v12628_v11, %v12688_v10  ;;  %v6931_v34 = vmul.f32 %v13117_v48, %v13117_v48 }
 0x28b   :  { %v5179_v38 = vpop.f32.mrb[107].mxu0  ;;  %v5270_v12 = vpop.f32.mrb[107].mxu1  ;;  %v10204_v56 = vld [vmem:[%s14955_s3 + $0x27] ss:$0 sm:$0xff]  ;;  %v7030_v46 = vsel %vm6759_vm1, %v6930_v58, 0.0  ;;  %v6835_v10 = vsel %vm6759_vm1, %v13117_v48, 0.0 }
 0x28c   :  { %v7027_v16 = vadd.f32 %v7026_v0, %v7025_v1  ;;  %v6832_v49 = vadd.f32 %v6831_v60, %v6830_v30  ;;  %v13136_v19 = vadd.f32 %v10204_v56, %v6222_v31  ;;  %v13141_v29 = vadd.f32 %v10205_v55, %v6223_v26  ;;  %v10206_v1 = vld [vmem:[%s14955_s3 + $0x29] ss:$0 sm:$0xff] }
 0x28d   :  { %v6224_v38 = vmul.f32 %v12628_v11, %v12690_v24  ;;  %v7032_v0 = vsel %vm6759_vm1, %v6931_v34, 0.0  ;;  %v6225_v31 = vmul.f32 %v12628_v11, %v12754_v22 }
 0x28e   :  { %v7029_v20 = vadd.f32 %v7028_v5, %v7027_v16  ;;  %15036 = vst [vmem:[#allocation18_spill] sm:$0xff] %v13141_v29  ;;  %v6834_v12 = vadd.f32 %v6833_v52, %v6832_v49  ;;  %v6932_v60 = vmul.f32 %v13136_v19, %v13136_v19  ;;  %v10207_v5 = vld [vmem:[%s14955_s3 + $0x2a] ss:$0 sm:$0xff]  ;;  %v6837_v24 = vsel %vm6759_vm1, %v13136_v19, 0.0 }
 0x28f   :  { %v6933_v58 = vmul.f32 %v13141_v29, %v13141_v29  ;;  %v13160_v26 = vadd.f32 %v10206_v1, %v6224_v38  ;;  %v6839_v52 = vsel %vm6759_vm1, %v13141_v29, 0.0  ;;  %v13169_v34 = vadd.f32 %v10207_v5, %v6225_v31  ;;  %v10208_v38 = vld [vmem:[%s14955_s3 + $0x2b] ss:$0 sm:$0xff] }
 0x290   :  { %v7031_v30 = vadd.f32 %v7030_v46, %v7029_v20  ;;  %v6836_v56 = vadd.f32 %v6835_v10, %v6834_v12  ;;  %v7034_v22 = vsel %vm6759_vm1, %v6932_v60, 0.0  ;;  %v6226_v20 = vmul.f32 %v12628_v11, %v12756_v45 }
 0x291   :  { %15037 = vst [vmem:[#allocation19_spill] sm:$0xff] %v13160_v26  ;;  %15038 = vst [vmem:[#allocation20_spill] sm:$0xff] %v13169_v34  ;;  %v6934_v60 = vmul.f32 %v13160_v26, %v13160_v26  ;;  %v6227_v31 = vmul.f32 %v12628_v11, %v12824_v57  ;;  %v6843_v57 = vsel %vm6759_vm1, %v13169_v34, 0.0 }
 0x292   :  { %v7033_v16 = vadd.f32 %v7032_v0, %v7031_v30  ;;  %v6838_v12 = vadd.f32 %v6837_v24, %v6836_v56  ;;  %v7036_v30 = vsel %vm6759_vm1, %v6933_v58, 0.0  ;;  %v10209_v56 = vld [vmem:[%s14955_s3 + $0x2c] ss:$0 sm:$0xff]  ;;  %v6841_v24 = vsel %vm6759_vm1, %v13160_v26, 0.0 }
 0x293   :  { %v6935_v58 = vmul.f32 %v13169_v34, %v13169_v34 }
 0x294   :  { %v7035_v45 = vadd.f32 %v7034_v22, %v7033_v16  ;;  %v6228_v16 = vmul.f32 %v12628_v11, %v12826_v51 }
 0x298   :  { %v13162_v49 = vpop.f32.mrb[108].mxu0  ;;  %v13164_v55 = vpop.f32.mrb[108].mxu1 }
 0x299   :  { %v5359_v46 = vpop.f32.mrb[109].mxu0  ;;  %v5450_v10 = vpop.f32.mrb[109].mxu1 }
 0x29a   :  { %v5360_v1 = vpop.f32.mrb[110].mxu0  ;;  %v5451_v0 = vpop.f32.mrb[110].mxu1  ;;  %v6840_v46 = vadd.f32 %v6839_v52, %v6838_v12  ;;  %v13188_v10 = vadd.f32 %v10208_v38, %v6226_v20  ;;  %v10210_v52 = vld [vmem:[%s14955_s3 + $0x2d] ss:$0 sm:$0xff]  ;;  %v7040_v12 = vsel %vm6759_vm1, %v6935_v58, 0.0  ;;  %v6229_v38 = vmul.f32 %v12628_v11, %v12892_v39 }
 0x29b   :  { %v5361_v5 = vpop.f32.mrb[111].mxu0  ;;  %v5452_v29 = vpop.f32.mrb[111].mxu1  ;;  %v7037_v1 = vadd.f32 %v7036_v30, %v7035_v45  ;;  %v7038_v0 = vsel %vm6759_vm1, %v6934_v60, 0.0  ;;  %v13212_v45 = vadd.f32 %v10210_v52, %v6228_v16  ;;  %v6230_v58 = vmul.f32 %v12628_v11, %v12894_v59 }
 0x29c   :  { %15039 = vst [vmem:[#allocation21_spill] sm:$0xff] %v13188_v10  ;;  %v13193_v29 = vadd.f32 %v10209_v56, %v6227_v31  ;;  %v6842_v22 = vadd.f32 %v6841_v24, %v6840_v46  ;;  %v6936_v20 = vmul.f32 %v13188_v10, %v13188_v10  ;;  %v10211_v31 = vld [vmem:[%s14955_s3 + $0x2e] ss:$0 sm:$0xff]  ;;  %v6845_v51 = vsel %vm6759_vm1, %v13188_v10, 0.0 }
 0x29d   :  { %v7039_v30 = vadd.f32 %v7038_v0, %v7037_v1  ;;  %15041 = vst [vmem:[#allocation23_spill] sm:$0xff] %v13212_v45  ;;  %v13217_v24 = vadd.f32 %v10211_v31, %v6229_v38  ;;  %v10212_v0 = vld [vmem:[%s14955_s3 + $0x2f] ss:$0 sm:$0xff]  ;;  %v6938_v16 = vmul.f32 %v13212_v45, %v13212_v45 }
 0x29e   :  { %15040 = vst [vmem:[#allocation22_spill] sm:$0xff] %v13193_v29  ;;  %v6844_v60 = vadd.f32 %v6843_v57, %v6842_v22  ;;  %v6937_v5 = vmul.f32 %v13193_v29, %v13193_v29  ;;  %v7042_v56 = vsel %vm6759_vm1, %v6936_v20, 0.0  ;;  %v6847_v39 = vsel %vm6759_vm1, %v13193_v29, 0.0  ;;  %v10213_v20 = vld [vmem:[%s14955_s3 + $0x30] ss:$0 sm:$0xff] }
 0x29f   :  { %v7041_v46 = vadd.f32 %v7040_v12, %v7039_v30  ;;  %v6231_v22 = vmul.f32 %v12628_v11, %v12958_v33  ;;  %v6849_v30 = vsel %vm6759_vm1, %v13212_v45, 0.0  ;;  %v13240_v31 = vadd.f32 %v10212_v0, %v6230_v58 }
 0x2a0   :  { %v6846_v1 = vadd.f32 %v6845_v51, %v6844_v60  ;;  %v7044_v57 = vsel %vm6759_vm1, %v6937_v5, 0.0  ;;  %v6939_v60 = vmul.f32 %v13217_v24, %v13217_v24  ;;  %v6232_v0 = vmul.f32 %v12628_v11, %v12960_v63 }
 0x2a1   :  { %v7043_v52 = vadd.f32 %v7042_v56, %v7041_v46  ;;  %v13245_v29 = vadd.f32 %v10213_v20, %v6231_v22  ;;  %v6940_v58 = vmul.f32 %v13240_v31, %v13240_v31  ;;  %v10214_v22 = vld [vmem:[%s14955_s3 + $0x31] ss:$0 sm:$0xff] }
 0x2a2   :  { %v6848_v12 = vadd.f32 %v6847_v39, %v6846_v1  ;;  %v7046_v39 = vsel %vm6759_vm1, %v6938_v16, 0.0  ;;  %v6851_v1 = vsel %vm6759_vm1, %v13217_v24, 0.0  ;;  %v7048_v26 = vsel %vm6759_vm1, %v6939_v60, 0.0 }
 0x2a3   :  { %v7045_v5 = vadd.f32 %v7044_v57, %v7043_v52  ;;  %v6233_v57 = vmul.f32 %v12628_v11, %v13028_v47  ;;  %v7050_v20 = vsel %vm6759_vm1, %v6940_v58, 0.0  ;;  %v6855_v47 = vsel %vm6759_vm1, %v13245_v29, 0.0 }
 0x2a4   :  { %v6850_v45 = vadd.f32 %v6849_v30, %v6848_v12  ;;  %v6941_v12 = vmul.f32 %v13245_v29, %v13245_v29 }
 0x2a5   :  { %v7047_v16 = vadd.f32 %v7046_v39, %v7045_v5  ;;  %v6235_v5 = vmul.f32 %v12628_v11, %v13096_v42  ;;  %v10217_v39 = vld [vmem:[%s14955_s3 + $0x34] ss:$0 sm:$0xff] }
 0x2a6   :  { %v6852_v52 = vadd.f32 %v6851_v1, %v6850_v45  ;;  %v13267_v45 = vadd.f32 %v10214_v22, %v6232_v0 }
 0x2a7   :  { %v7049_v63 = vadd.f32 %v7048_v26, %v7047_v16  ;;  %v13292_v16 = vadd.f32 %v10217_v39, %v6235_v5  ;;  %v10218_v5 = vld [vmem:[%s14955_s3 + $0x35] ss:$0 sm:$0xff] }
 0x2a8   :  { %v13232_v59 = vpop.f32.mrb[112].mxu0  ;;  %v13234_v38 = vpop.f32.mrb[112].mxu1  ;;  %v6942_v1 = vmul.f32 %v13267_v45, %v13267_v45  ;;  %v6857_v42 = vsel %vm6759_vm1, %v13267_v45, 0.0 }
 0x2a9   :  { %v5541_v51 = vpop.f32.mrb[113].mxu0  ;;  %v5632_v33 = vpop.f32.mrb[113].mxu1 }
 0x2aa   :  { %v5542_v46 = vpop.f32.mrb[114].mxu0  ;;  %v5633_v56 = vpop.f32.mrb[114].mxu1  ;;  %v7052_v51 = vsel %vm6759_vm1, %v6941_v12, 0.0  ;;  %v6234_v33 = vmul.f32 %v12628_v11, %v13030_v13 }
 0x2ab   :  { %v5543_v10 = vpop.f32.mrb[115].mxu0  ;;  %v5634_v34 = vpop.f32.mrb[115].mxu1  ;;  %v7051_v46 = vadd.f32 %v7050_v20, %v7049_v63  ;;  %v10216_v56 = vld [vmem:[%s14955_s3 + $0x33] ss:$0 sm:$0xff]  ;;  %v6236_v63 = vmul.f32 %v12628_v11, %v13098_v36  ;;  %v6237_v20 = vmul.f32 %v12628_v11, %v13162_v49  ;;  %v6945_v49 = vmul.f32 %v13292_v16, %v13292_v16 }
 0x2ac   :  { %v10215_v34 = vld [vmem:[%s14955_s3 + $0x32] ss:$0 sm:$0xff]  ;;  %v6853_v10 = vsel %vm6759_vm1, %v13240_v31, 0.0 }
 0x2ad   :  { %v13269_v30 = vadd.f32 %v10215_v34, %v6233_v57  ;;  %v6854_v60 = vadd.f32 %v6853_v10, %v6852_v52  ;;  %v7053_v13 = vadd.f32 %v7052_v51, %v7051_v46  ;;  %v13290_v57 = vadd.f32 %v10216_v56, %v6234_v33  ;;  %v10219_v46 = vld [vmem:[%s14955_s3 + $0x36] ss:$0 sm:$0xff] }
 0x2ae   :  { %v7054_v10 = vsel %vm6759_vm1, %v6942_v1, 0.0 }
 0x2af   :  { %v6856_v26 = vadd.f32 %v6855_v47, %v6854_v60  ;;  %v6943_v58 = vmul.f32 %v13269_v30, %v13269_v30  ;;  %v6859_v0 = vsel %vm6759_vm1, %v13269_v30, 0.0  ;;  %v7055_v51 = vadd.f32 %v7054_v10, %v7053_v13 }
 0x2b0   :  { %v6944_v36 = vmul.f32 %v13290_v57, %v13290_v57  ;;  %v6861_v13 = vsel %vm6759_vm1, %v13290_v57, 0.0 }
 0x2b1   :  { %v6858_v52 = vadd.f32 %v6857_v42, %v6856_v26  ;;  %v7056_v12 = vsel %vm6759_vm1, %v6943_v58, 0.0  ;;  %v6863_v42 = vsel %vm6759_vm1, %v13292_v16, 0.0 }
 0x2b2   :  { %v7057_v58 = vadd.f32 %v7056_v12, %v7055_v51  ;;  %v6239_v12 = vmul.f32 %v12628_v11, %v13232_v59 }
 0x2b3   :  { %v6860_v33 = vadd.f32 %v6859_v0, %v6858_v52  ;;  %v13316_v0 = vadd.f32 %v10218_v5, %v6236_v63  ;;  %v13318_v52 = vadd.f32 %v10219_v46, %v6237_v20  ;;  %v10220_v63 = vld [vmem:[%s14955_s3 + $0x37] ss:$0 sm:$0xff]  ;;  %v10221_v20 = vld [vmem:[%s14955_s3 + $0x38] ss:$0 sm:$0xff] }
 0x2b5   :  { %15042 = vst [vmem:[#allocation24_spill] sm:$0xff] %v13316_v0  ;;  %15043 = vst [vmem:[#allocation25_spill] sm:$0xff] %v13318_v52  ;;  %v6862_v10 = vadd.f32 %v6861_v13, %v6860_v33  ;;  %v6946_v33 = vmul.f32 %v13316_v0, %v13316_v0  ;;  %v6947_v5 = vmul.f32 %v13318_v52, %v13318_v52  ;;  %v6865_v59 = vsel %vm6759_vm1, %v13316_v0, 0.0 }
 0x2b6   :  { %v6867_v46 = vsel %vm6759_vm1, %v13318_v52, 0.0  ;;  %v6240_v13 = vmul.f32 %v12628_v11, %v13234_v38 }
 0x2b8   :  { %v5721_v22 = vpop.f32.mrb[116].mxu0  ;;  %v13294_v34 = vpop.f32.mrb[116].mxu1 }
 0x2b9   :  { %v5723_v47 = vpop.f32.mrb[117].mxu0  ;;  %v5814_v60 = vpop.f32.mrb[117].mxu1 }
 0x2ba   :  { %v5724_v26 = vpop.f32.mrb[118].mxu0  ;;  %v5815_v56 = vpop.f32.mrb[118].mxu1  ;;  %v7058_v47 = vsel %vm6759_vm1, %v6944_v36, 0.0  ;;  %v7060_v60 = vsel %vm6759_vm1, %v6945_v49, 0.0  ;;  %v13342_v49 = vadd.f32 %v10221_v20, %v6239_v12 }
 0x2bb   :  { %v5725_v39 = vpop.f32.mrb[119].mxu0  ;;  %v5816_v1 = vpop.f32.mrb[119].mxu1  ;;  %v6238_v26 = vmul.f32 %v12628_v11, %v13164_v55  ;;  %v7059_v51 = vadd.f32 %v7058_v47, %v7057_v58  ;;  %v6864_v56 = vadd.f32 %v6863_v42, %v6862_v10  ;;  %v7064_v58 = vsel %vm6759_vm1, %v6947_v5, 0.0 }
 0x2bc   :  { %15045 = vst [vmem:[#allocation27_spill] sm:$0xff] %v13342_v49  ;;  %v7062_v1 = vsel %vm6759_vm1, %v6946_v33, 0.0  ;;  %v6241_v42 = vmul.f32 %v12628_v11, %v5721_v22  ;;  %v6871_v20 = vsel %vm6759_vm1, %v13342_v49, 0.0 }
 0x2bd   :  { %v7061_v55 = vadd.f32 %v7060_v60, %v7059_v51  ;;  %v13340_v36 = vadd.f32 %v10220_v63, %v6238_v26  ;;  %v6866_v39 = vadd.f32 %v6865_v59, %v6864_v56  ;;  %v10222_v60 = vld [vmem:[%s14955_s3 + $0x39] ss:$0 sm:$0xff]  ;;  %v10223_v26 = vld [vmem:[%s14955_s3 + $0x3a] ss:$0 sm:$0xff]  ;;  %v6949_v51 = vmul.f32 %v13342_v49, %v13342_v49 }
 0x2be   :  { %v13363_v33 = vadd.f32 %v10222_v60, %v6240_v13  ;;  %v13365_v5 = vadd.f32 %v10223_v26, %v6241_v42  ;;  %v10224_v42 = vld [vmem:[%s14955_s3 + $0x3b] ss:$0 sm:$0xff] }
 0x2bf   :  { %15044 = vst [vmem:[#allocation26_spill] sm:$0xff] %v13340_v36  ;;  %v7063_v10 = vadd.f32 %v7062_v1, %v7061_v55  ;;  %v6868_v47 = vadd.f32 %v6867_v46, %v6866_v39  ;;  %v6948_v12 = vmul.f32 %v13340_v36, %v13340_v36  ;;  %v6869_v22 = vsel %vm6759_vm1, %v13340_v36, 0.0 }
 0x2c0   :  { %v6950_v26 = vmul.f32 %v13363_v33, %v13363_v33 }
 0x2c1   :  { %v7065_v56 = vadd.f32 %v7064_v58, %v7063_v10  ;;  %v6870_v46 = vadd.f32 %v6869_v22, %v6868_v47  ;;  %v7066_v52 = vsel %vm6759_vm1, %v6948_v12, 0.0  ;;  %v7068_v58 = vsel %vm6759_vm1, %v6949_v51, 0.0  ;;  %v10225_v47 = vld [vmem:[%s14955_s3 + $0x3c] ss:$0 sm:$0xff] }
 0x2c2   :  { %v6242_v10 = vmul.f32 %v12628_v11, %v13294_v34  ;;  %v6951_v34 = vmul.f32 %v13365_v5, %v13365_v5 }
 0x2c3   :  { %v7067_v13 = vadd.f32 %v7066_v52, %v7065_v56  ;;  %v6872_v60 = vadd.f32 %v6871_v20, %v6870_v46  ;;  %v6875_v52 = vsel %vm6759_vm1, %v13365_v5, 0.0  ;;  %v10226_v46 = vld [vmem:[%s14955_s3 + $0x3d] ss:$0 sm:$0xff] }
 0x2c4   :  { %v7072_v22 = vsel %vm6759_vm1, %v6951_v34, 0.0 }
 0x2c5   :  { %v7069_v12 = vadd.f32 %v7068_v58, %v7067_v13 }
 0x2c8   :  { %v5903_v38 = vpop.f32.mrb[120].mxu0  ;;  %v5994_v63 = vpop.f32.mrb[120].mxu1 }
 0x2c9   :  { %v5905_v55 = vpop.f32.mrb[121].mxu0  ;;  %v5996_v59 = vpop.f32.mrb[121].mxu1  ;;  %v6243_v36 = vmul.f32 %v12628_v11, %v5903_v38  ;;  %v7070_v38 = vsel %vm6759_vm1, %v6950_v26, 0.0  ;;  %v6244_v20 = vmul.f32 %v12628_v11, %v5994_v63 }
 0x2ca   :  { %v5906_v39 = vpop.f32.mrb[122].mxu0  ;;  %v5997_v1 = vpop.f32.mrb[122].mxu1  ;;  %v7071_v55 = vadd.f32 %v7070_v38, %v7069_v12  ;;  %v10227_v12 = vld [vmem:[%s14955_s3 + $0x3e] ss:$0 sm:$0xff] }
 0x2cb   :  { %v5907_v0 = vpop.f32.mrb[123].mxu0  ;;  %v5998_v49 = vpop.f32.mrb[123].mxu1  ;;  %v13388_v51 = vadd.f32 %v10225_v47, %v6243_v36  ;;  %v13404_v63 = vadd.f32 %v10226_v46, %v6244_v20 }
 0x2cc   :  { %v6873_v0 = vsel %vm6759_vm1, %v13363_v33, 0.0  ;;  %v13386_v49 = vadd.f32 %v10224_v42, %v6242_v10  ;;  %v7073_v1 = vadd.f32 %v7072_v22, %v7071_v55 }
 0x2cd   :  { %15047 = vst [vmem:[#allocation29_spill] sm:$0xff] %v13388_v51  ;;  %v6874_v56 = vadd.f32 %v6873_v0, %v6872_v60  ;;  %v6953_v36 = vmul.f32 %v13388_v51, %v13388_v51  ;;  %v6879_v10 = vsel %vm6759_vm1, %v13388_v51, 0.0  ;;  %15048 = vst [vmem:[#allocation30_spill] sm:$0xff] %v13404_v63 }
 0x2ce   :  { %15046 = vst [vmem:[#allocation28_spill] sm:$0xff] %v13386_v49  ;;  %v6952_v39 = vmul.f32 %v13386_v49, %v13386_v49  ;;  %v6877_v58 = vsel %vm6759_vm1, %v13386_v49, 0.0 }
 0x2cf   :  { %v6876_v59 = vadd.f32 %v6875_v52, %v6874_v56  ;;  %v7076_v42 = vsel %vm6759_vm1, %v6953_v36, 0.0  ;;  %v10228_v52 = vld [vmem:[%s14955_s3 + $0x3f] ss:$0 sm:$0xff]  ;;  %v6954_v56 = vmul.f32 %v13404_v63, %v13404_v63  ;;  %v6881_v36 = vsel %vm6759_vm1, %v13404_v63, 0.0  ;;  %s11212_s3 = smov 96  }
 0x2d0   :  { %v7074_v60 = vsel %vm6759_vm1, %v6952_v39, 0.0 }
 0x2d1   :  { %v6878_v13 = vadd.f32 %v6877_v58, %v6876_v59  ;;  %v7075_v47 = vadd.f32 %v7074_v60, %v7073_v1  ;;  %v7078_v51 = vsel %vm6759_vm1, %v6954_v56, 0.0 }
 0x2d3   :  { %v6880_v26 = vadd.f32 %v6879_v10, %v6878_v13  ;;  %v7077_v59 = vadd.f32 %v7076_v42, %v7075_v47 }
 0x2d5   :  { %v6882_v60 = vadd.f32 %v6881_v36, %v6880_v26  ;;  %v7079_v47 = vadd.f32 %v7078_v51, %v7077_v59 }
 0x2d8   :  { %v6085_v34 = vpop.f32.mrb[124].mxu0  ;;  %v6176_v0 = vpop.f32.mrb[124].mxu1 }
 0x2d9   :  { %v6245_v38 = vmul.f32 %v12628_v11, %v6085_v34  ;;  %v6246_v22 = vmul.f32 %v12628_v11, %v6176_v0  ;;  %v6087_v20 = vpop.f32.mrb[125].mxu0  ;;  %v6178_v55 = vpop.f32.mrb[125].mxu1 }
 0x2da   :  { %v6088_v46 = vpop.f32.mrb[126].mxu0  ;;  %v6179_v39 = vpop.f32.mrb[126].mxu1 }
 0x2db   :  { %v13420_v1 = vadd.f32 %v10227_v12, %v6245_v38  ;;  %v6758_v58 = vadd.f32 %v10228_v52, %v6246_v22  ;;  %v6089_v10 = vpop.f32.mrb[127].mxu0  ;;  %v6180_v13 = vpop.f32.mrb[127].mxu1 }
 0x2dd   :  { %15049 = vst [vmem:[#allocation31_spill] sm:$0xff] %v13420_v1  ;;  %v6883_v34 = vsel %vm6759_vm1, %v13420_v1, 0.0  ;;  %v6955_v11 = vmul.f32 %v13420_v1, %v13420_v1  ;;  %v6956_v42 = vmul.f32 %v6758_v58, %v6758_v58  ;;  %v6885_v12 = vsel %vm6759_vm1, %v6758_v58, 0.0 }
 0x2de   :  { %v6884_v0 = vadd.f32 %v6883_v34, %v6882_v60 }
 0x2df   :  { %v7080_v20 = vsel %vm6759_vm1, %v6955_v11, 0.0  ;;  %v7082_v22 = vsel %vm6759_vm1, %v6956_v42, 0.0  ;;  %v7096_v42 = vld [vmem:[%s14956_s4] sm:$0x1] }
 0x2e0   :  { %v7081_v38 = vadd.f32 %v7080_v20, %v7079_v47  ;;  %v6886_v52 = vadd.f32 %v6885_v12, %v6884_v0  ;;  %v7103_v20 = vsub.s32 0, %v11280_v8  ;;  %v15071_v8 = vld [vmem:[#allocation27_spill] sm:$0xff] }
 0x2e2   :  { %v6887_v26 = vrot.slane %v6886_v52, 4  ;;  %v7083_v55 = vadd.f32 %v7082_v22, %v7081_v38  ;;  %v11050_v22 = vld [vmem:[%s14958_s6] sm:$0xff]  }
 0x2e4   :  { %v6888_v56 = vadd.f32 %v6887_v26, %v6886_v52  ;;  %v7084_v46 = vrot.slane %v7083_v55, 4  ;;  %v11051_v26 = vld [vmem:[%s14958_s6 + $0xc0] sm:$0xff]  }
 0x2e5   :  { %10380 = vmatprep.subr.bf16.mxu1 %v11051_v26 }
 0x2e6   :  { %v6889_v39 = vrot.slane %v6888_v56, 2  ;;  %v7085_v36 = vadd.f32 %v7084_v46, %v7083_v55  ;;  %v11052_v46 = vld [vmem:[%s14958_s6 + $0x80] sm:$0xff]  }
 0x2e7   :  { %10381 = vmatpush3.bf16.msra.mxu1 %v11052_v46 }
 0x2e8   :  { %v6890_v10 = vadd.f32 %v6889_v39, %v6888_v56  ;;  %v7086_v13 = vrot.slane %v7085_v36, 2 }
 0x2ea   :  { %v6891_v1 = vrot.slane %v6890_v10, 1  ;;  %v7087_v63 = vadd.f32 %v7086_v13, %v7085_v36 }
 0x2ec   :  { %v6892_v51 = vadd.f32 %v6891_v1, %v6890_v10  ;;  %v7088_v59 = vrot.slane %v7087_v63, 1  ;;  %v7098_v1 = vld [vmem:[%s14957_s5] sm:$0x1]  ;;  %v11053_v10 = vld [vmem:[%s14958_s6 + $0x48] sm:$0xff]  }
 0x2ee   :  { %v7089_v60 = vadd.f32 %v7088_v59, %v7087_v63  ;;  %v7090_v34 = vmul.f32 0.0078125, %v6892_v51 }
 0x2f0   :  { %v7091_v11 = vmul.f32 0.0078125, %v7089_v60  ;;  %v7092_v49 = vmul.f32 %v7090_v34, %v7090_v34  ;;  %v11055_v60 = vld [vmem:[%s14958_s6 + $0xc8] sm:$0xff]  }
 0x2f1   :  { %10382 = vmatprep.subr.bf16.mxu1 %v11055_v60 }
 0x2f2   :  { %v7093_v47 = vsub.f32 %v7091_v11, %v7092_v49  ;;  %v11049_v49 = vld [vmem:[%s14958_s6 + $0x40] sm:$0xff]   ;;  %v11056_v11 = vld [vmem:[%s14958_s6 + $0x88] sm:$0xff]  }
 0x2f3   :  { %10358 = vmatprep.subr.bf16.mxu0 %v11049_v49  ;;  %10383 = vmatpush3.bf16.msra.mxu1 %v11056_v11  ;;  %v15063_v11 = vld [vmem:[#allocation19_spill] sm:$0xff] }
 0x2f4   :  { %v7094_v0 = vadd.f32 1e-05, %v7093_v47  ;;  %10359 = vmatpush3.bf16.msra.mxu0 %v11050_v22  ;;  %v15061_v22 = vld [vmem:[#allocation17_spill] sm:$0xff] }
 0x2f5   :  { %10360 = vmatprep.subr.bf16.mxu0 %v11053_v10 }
 0x2f6   :  { %11181 = vrsqrt.f32 %v7094_v0 }
 0x300   :  { %v11182_v12 = vpop.eup %11181 }
 0x301   :  { %v7097_v38 = vmul.f32 %v11182_v12, %v7096_v42 }
 0x303   :  { %v7099_v52 = vmul.f32 %v7097_v38, %v7090_v34  ;;  %v13437_v63 = vrot.slane %v7097_v38, %v7103_v20  ;;  %v15051_v34 = vld [vmem:[#allocation11_spill] sm:$0xff]  ;;  %v15057_v38 = vld [vmem:[#allocation13_spill] sm:$0xff] }
 0x305   :  { %v7100_v55 = vsub.f32 %v7098_v1, %v7099_v52  ;;  %v7168_v56 = vmul.f32 %v13437_v63, %v6758_v58  ;;  %v13454_v39 = vmul.f32 %v13437_v63, %v12646_v37  ;;  %v13458_v36 = vmul.f32 %v13437_v63, %v12675_v2  ;;  %v11054_v2 = vld [vmem:[%s14958_s6 + $0x8] sm:$0xff]  }
 0x306   :  { %v13467_v58 = vmul.f32 %v13437_v63, %v12681_v53  ;;  %v13471_v51 = vmul.f32 %v13437_v63, %v12728_v40  ;;  %v13475_v37 = vmul.f32 %v13437_v63, %v12733_v50  ;;  %v13482_v59 = vmul.f32 %v13437_v63, %v12752_v9  ;;  %10361 = vmatpush3.bf16.msra.mxu0 %v11054_v2  ;;  %v15058_v1 = vld [vmem:[#allocation14_spill] sm:$0xff] }
 0x307   :  { %v13463_v13 = vrot.slane %v7100_v55, %v7103_v20  ;;  %v13486_v53 = vmul.f32 %v13437_v63, %v12761_v7  ;;  %v13490_v40 = vmul.f32 %v13437_v63, %v12780_v41  ;;  %v13494_v50 = vmul.f32 %v13437_v63, %v12785_v25 }
 0x308   :  { %v13504_v7 = vmul.f32 %v13437_v63, %v15051_v34  ;;  %v13508_v41 = vmul.f32 %v13437_v63, %v12809_v35  ;;  %v13512_v25 = vmul.f32 %v13437_v63, %v12832_v14  ;;  %v13519_v47 = vmul.f32 %v13437_v63, %v12837_v44  ;;  %v15062_v34 = vld [vmem:[#allocation18_spill] sm:$0xff] }
 0x309   :  { %v13500_v9 = vadd.f32 %v13463_v13, %v7168_v56  ;;  %v13523_v0 = vmul.f32 %v13437_v63, %v12856_v15  ;;  %v13527_v35 = vmul.f32 %v13437_v63, %v12861_v3  ;;  %v13531_v14 = vmul.f32 %v13437_v63, %v12880_v6  ;;  %v15056_v3 = vld [vmem:[#allocation12_spill] sm:$0xff] }
 0x30a   :  { %15052 = vst [vmem:[#allocation11_spill] sm:$0xff] %v13519_v47  ;;  %v7125_v42 = vmul.f32 %v13437_v63, %v12885_v23  ;;  %v7126_v44 = vmul.f32 %v13437_v63, %v12908_v61  ;;  %v7127_v20 = vmul.f32 %v13437_v63, %v12913_v32  ;;  %v7128_v15 = vmul.f32 %v13437_v63, %v12932_v21  ;;  %v15059_v23 = vld [vmem:[#allocation15_spill] sm:$0xff]  ;;  %v15060_v61 = vld [vmem:[#allocation16_spill] sm:$0xff] }
 0x30b   :  { %15050 = vst [vmem:[#allocation32_spill] sm:$0xff] %v13500_v9  ;;  %15053 = vst [vmem:[#allocation33_spill] sm:$0xff] %v13523_v0  ;;  %v7129_v12 = vmul.f32 %v13437_v63, %v15056_v3  ;;  %v7130_v6 = vmul.f32 %v13437_v63, %v15057_v38  ;;  %v7131_v52 = vmul.f32 %v13437_v63, %v15058_v1  ;;  %v15064_v3 = vld [vmem:[#allocation20_spill] sm:$0xff]  ;;  %v15065_v38 = vld [vmem:[#allocation21_spill] sm:$0xff] }
 0x30c   :  { %15054 = vst [vmem:[#allocation34_spill] sm:$0xff] %v13527_v35  ;;  %15055 = vst [vmem:[#allocation35_spill] sm:$0xff] %v13531_v14  ;;  %v7132_v49 = vmul.f32 %v13437_v63, %v15059_v23  ;;  %v7133_v32 = vmul.f32 %v13437_v63, %v15060_v61  ;;  %v7134_v21 = vmul.f32 %v13437_v63, %v15061_v22  ;;  %v15066_v1 = vld [vmem:[#allocation22_spill] sm:$0xff]  ;;  %v15067_v23 = vld [vmem:[#allocation23_spill] sm:$0xff] }
 0x30d   :  { %v7135_v26 = vmul.f32 %v13437_v63, %v13013_v43  ;;  %v7136_v55 = vmul.f32 %v13437_v63, %v13036_v27  ;;  %v7137_v56 = vmul.f32 %v13437_v63, %v13041_v54  ;;  %v7138_v46 = vmul.f32 %v13437_v63, %v13060_v4  ;;  %v15070_v9 = vld [vmem:[#allocation26_spill] sm:$0xff]  ;;  %v15072_v14 = vld [vmem:[#allocation28_spill] sm:$0xff]  ;;  %v15073_v35 = vld [vmem:[#allocation29_spill] sm:$0xff] }
 0x30e   :  { %v7139_v10 = vmul.f32 %v13437_v63, %v13065_v62  ;;  %v7140_v2 = vmul.f32 %v13437_v63, %v13084_v28  ;;  %v7141_v60 = vmul.f32 %v13437_v63, %v13089_v18  ;;  %v7142_v43 = vmul.f32 %v13437_v63, %v13112_v17  ;;  %v15074_v0 = vld [vmem:[#allocation30_spill] sm:$0xff]  ;;  %v15075_v47 = vld [vmem:[#allocation31_spill] sm:$0xff] }
 0x30f   :  { %v7143_v27 = vmul.f32 %v13437_v63, %v13117_v48  ;;  %v7144_v54 = vmul.f32 %v13437_v63, %v13136_v19  ;;  %v7145_v4 = vmul.f32 %v13437_v63, %v15062_v34  ;;  %v7146_v62 = vmul.f32 %v13437_v63, %v15063_v11 }
 0x310   :  { %v7147_v28 = vmul.f32 %v13437_v63, %v15064_v3  ;;  %v7148_v18 = vmul.f32 %v13437_v63, %v15065_v38  ;;  %v7149_v17 = vmul.f32 %v13437_v63, %v15066_v1  ;;  %v7150_v48 = vmul.f32 %v13437_v63, %v15067_v23  ;;  %v15068_v1 = vld [vmem:[#allocation24_spill] sm:$0xff]  ;;  %v15069_v23 = vld [vmem:[#allocation25_spill] sm:$0xff] }
 0x311   :  { %v7151_v19 = vmul.f32 %v13437_v63, %v13217_v24  ;;  %v7152_v61 = vmul.f32 %v13437_v63, %v13240_v31  ;;  %v7153_v22 = vmul.f32 %v13437_v63, %v13245_v29  ;;  %v7154_v34 = vmul.f32 %v13437_v63, %v13267_v45 }
 0x312   :  { %v7155_v11 = vmul.f32 %v13437_v63, %v13269_v30  ;;  %v7156_v3 = vmul.f32 %v13437_v63, %v13290_v57  ;;  %v7157_v38 = vmul.f32 %v13437_v63, %v13292_v16  ;;  %v7158_v24 = vmul.f32 %v13437_v63, %v15068_v1 }
 0x313   :  { %v7159_v31 = vmul.f32 %v13437_v63, %v15069_v23  ;;  %v7160_v29 = vmul.f32 %v13437_v63, %v15070_v9  ;;  %v7161_v45 = vmul.f32 %v13437_v63, %v15071_v8  ;;  %v7162_v30 = vmul.f32 %v13437_v63, %v13363_v33 }
 0x314   :  { %v7163_v57 = vmul.f32 %v13437_v63, %v13365_v5  ;;  %v7164_v16 = vmul.f32 %v13437_v63, %v15072_v14  ;;  %v7165_v1 = vmul.f32 %v13437_v63, %v15073_v35  ;;  %v7166_v23 = vmul.f32 %v13437_v63, %v15074_v0  ;;  %v15084_v14 = vld [vmem:[#allocation33_spill] sm:$0xff] }
 0x315   :  { %v7167_v9 = vmul.f32 %v13437_v63, %v15075_v47  ;;  %v13621_v8 = vadd.f32 %v13463_v13, %v13454_v39  ;;  %v13625_v33 = vadd.f32 %v13463_v13, %v13458_v36  ;;  %v13629_v5 = vadd.f32 %v13463_v13, %v13467_v58  ;;  %v15082_v47 = vld [vmem:[#allocation11_spill] sm:$0xff] }
 0x316   :  { %v13633_v35 = vadd.f32 %v13463_v13, %v13471_v51  ;;  %v13637_v0 = vadd.f32 %v13463_v13, %v13475_v37  ;;  %v13641_v39 = vadd.f32 %v13463_v13, %v13482_v59  ;;  %v13645_v36 = vadd.f32 %v13463_v13, %v13486_v53 }
 0x317   :  { %15076 = vst [vmem:[#allocation12_spill] sm:$0xff] %v13621_v8  ;;  %15077 = vst [vmem:[#allocation13_spill] sm:$0xff] %v13629_v5  ;;  %v13649_v58 = vadd.f32 %v13463_v13, %v13490_v40  ;;  %v13653_v51 = vadd.f32 %v13463_v13, %v13494_v50  ;;  %v13657_v37 = vadd.f32 %v13463_v13, %v13504_v7  ;;  %vm7443_vm12 = vcmp.gt.f32.partialorder %v13625_v33, 0.0 }
 0x318   :  { %15078 = vst [vmem:[#allocation14_spill] sm:$0xff] %v13637_v0  ;;  %v13661_v59 = vadd.f32 %v13463_v13, %v13508_v41  ;;  %v13665_v53 = vadd.f32 %v13463_v13, %v13512_v25  ;;  %v13669_v40 = vadd.f32 %v13463_v13, %v15082_v47  ;;  %v13673_v50 = vadd.f32 %v13463_v13, %v15084_v14 }
 0x319   :  { %15079 = vst [vmem:[#allocation15_spill] sm:$0xff] %v13653_v51  ;;  %15080 = vst [vmem:[#allocation16_spill] sm:$0xff] %v13657_v37  ;;  %v15086_v51 = vld [vmem:[#allocation34_spill] sm:$0xff]  ;;  %v15087_v37 = vld [vmem:[#allocation35_spill] sm:$0xff]  ;;  %v13687_v25 = vadd.f32 %v13463_v13, %v7126_v44  ;;  %v13690_v47 = vadd.f32 %v13463_v13, %v7127_v20  ;;  %v13693_v14 = vadd.f32 %v13463_v13, %v7128_v15  ;;  %vm7450_vm2 = vcmp.gt.f32.partialorder %v13645_v36, 0.0 }
 0x31a   :  { %15081 = vst [vmem:[#allocation17_spill] sm:$0xff] %v13661_v59  ;;  %15083 = vst [vmem:[#allocation18_spill] sm:$0xff] %v13669_v40  ;;  %v13677_v7 = vadd.f32 %v13463_v13, %v15086_v51  ;;  %v13681_v41 = vadd.f32 %v13463_v13, %v15087_v37  ;;  %v13684_v59 = vadd.f32 %v13463_v13, %v7125_v42  ;;  %vm7449_vm4 = vcmp.gt.f32.partialorder %v13641_v39, 0.0 }
 0x31b   :  { %15085 = vst [vmem:[#allocation19_spill] sm:$0xff] %v13673_v50  ;;  %v13696_v50 = vadd.f32 %v13463_v13, %v7129_v12  ;;  %v13699_v51 = vadd.f32 %v13463_v13, %v7130_v6  ;;  %v13702_v37 = vadd.f32 %v13463_v13, %v7131_v52  ;;  %v13705_v42 = vadd.f32 %v13463_v13, %v7132_v49 }
 0x31c   :  { %15088 = vst [vmem:[#allocation20_spill] sm:$0xff] %v13684_v59  ;;  %v13708_v44 = vadd.f32 %v13463_v13, %v7133_v32  ;;  %v13711_v20 = vadd.f32 %v13463_v13, %v7134_v21  ;;  %v13714_v15 = vadd.f32 %v13463_v13, %v7135_v26  ;;  %v13717_v12 = vadd.f32 %v13463_v13, %v7136_v55 }
 0x31d   :  { %15089 = vst [vmem:[#allocation21_spill] sm:$0xff] %v13696_v50  ;;  %v13720_v6 = vadd.f32 %v13463_v13, %v7137_v56  ;;  %v13723_v52 = vadd.f32 %v13463_v13, %v7138_v46  ;;  %v13726_v49 = vadd.f32 %v13463_v13, %v7139_v10  ;;  %v13729_v32 = vadd.f32 %v13463_v13, %v7140_v2 }
 0x31e   :  { %15090 = vst [vmem:[#allocation22_spill] sm:$0xff] %v13708_v44  ;;  %v13732_v21 = vadd.f32 %v13463_v13, %v7141_v60  ;;  %v13735_v26 = vadd.f32 %v13463_v13, %v7142_v43  ;;  %v13738_v55 = vadd.f32 %v13463_v13, %v7143_v27  ;;  %v13741_v56 = vadd.f32 %v13463_v13, %v7144_v54 }
 0x31f   :  { %15091 = vst [vmem:[#allocation23_spill] sm:$0xff] %v13720_v6  ;;  %15092 = vst [vmem:[#allocation24_spill] sm:$0xff] %v13729_v32  ;;  %v13744_v46 = vadd.f32 %v13463_v13, %v7145_v4  ;;  %v13747_v10 = vadd.f32 %v13463_v13, %v7146_v62  ;;  %v13750_v2 = vadd.f32 %v13463_v13, %v7147_v28  ;;  %vm7451_vm10 = vcmp.gt.f32.partialorder %v13649_v58, 0.0 }
 0x320   :  { %15093 = vst [vmem:[#allocation25_spill] sm:$0xff] %v13732_v21  ;;  %15094 = vst [vmem:[#allocation26_spill] sm:$0xff] %v13741_v56  ;;  %v13753_v60 = vadd.f32 %v13463_v13, %v7148_v18  ;;  %v13756_v43 = vadd.f32 %v13463_v13, %v7149_v17  ;;  %v13759_v27 = vadd.f32 %v13463_v13, %v7150_v48  ;;  %vm7455_vm11 = vcmp.gt.f32.partialorder %v13665_v53, 0.0 }
 0x321   :  { %15095 = vst [vmem:[#allocation27_spill] sm:$0xff] %v13744_v46  ;;  %v13762_v54 = vadd.f32 %v13463_v13, %v7151_v19  ;;  %v13765_v4 = vadd.f32 %v13463_v13, %v7152_v61  ;;  %v13768_v62 = vadd.f32 %v13463_v13, %v7153_v22  ;;  %v13771_v28 = vadd.f32 %v13463_v13, %v7154_v34 }
 0x322   :  { %15096 = vst [vmem:[#allocation28_spill] sm:$0xff] %v13756_v43  ;;  %v13774_v18 = vadd.f32 %v13463_v13, %v7155_v11  ;;  %v13777_v17 = vadd.f32 %v13463_v13, %v7156_v3  ;;  %v13780_v48 = vadd.f32 %v13463_v13, %v7157_v38  ;;  %v13783_v19 = vadd.f32 %v13463_v13, %v7158_v24 }
 0x323   :  { %15097 = vst [vmem:[#allocation29_spill] sm:$0xff] %v13765_v4  ;;  %15098 = vst [vmem:[#allocation30_spill] sm:$0xff] %v13768_v62  ;;  %v13786_v61 = vadd.f32 %v13463_v13, %v7159_v31  ;;  %v13789_v22 = vadd.f32 %v13463_v13, %v7160_v29  ;;  %v13792_v34 = vadd.f32 %v13463_v13, %v7161_v45  ;;  %v11208_v45 = vmov 1983009808  }
 0x324   :  { %15099 = vst [vmem:[#allocation31_spill] sm:$0xff] %v13771_v28  ;;  %15100 = vst [vmem:[#allocation11_spill] sm:$0xff] %v13774_v18  ;;  %v13795_v11 = vadd.f32 %v13463_v13, %v7162_v30  ;;  %v13798_v3 = vadd.f32 %v13463_v13, %v7163_v57  ;;  %v13801_v38 = vadd.f32 %v13463_v13, %v7164_v16  ;;  %v15113_v30 = vld [vmem:[#allocation7_spill] sm:$0xff]  ;;  %v15114_v57 = vld [vmem:[#allocation8_spill] sm:$0xff]  ;;  %v7247_v46 = vmax.f32 %v13637_v0, 0.0 }
 0x325   :  { %15101 = vst [vmem:[#allocation33_spill] sm:$0xff] %v13777_v17  ;;  %15102 = vst [vmem:[#allocation34_spill] sm:$0xff] %v13780_v48  ;;  %v13804_v24 = vadd.f32 %v13463_v13, %v7165_v1  ;;  %v13807_v31 = vadd.f32 %v13463_v13, %v7166_v23  ;;  %v13810_v29 = vadd.f32 %v13463_v13, %v7167_v9  ;;  %v7571_v48 = vunpack.c.l.s4 %v11208_v45  ;;  %v15115_v16 = vld [vmem:[#allocation9_spill] sm:$0xff]  ;;  %v15116_v1 = vld [vmem:[#allocation6_spill] sm:$0xff] }
 0x326   :  { %15103 = vst [vmem:[#allocation35_spill] sm:$0xff] %v13783_v19  ;;  %15104 = vst [vmem:[#allocation36_spill] sm:$0xff] %v13786_v61  ;;  %v7107_v21 = vmul.f32 %v13437_v63, %v15114_v57  ;;  %v7110_v6 = vmul.f32 %v13437_v63, %v15115_v16  ;;  %v15117_v23 = vld [vmem:[#allocation10_spill] sm:$0xff]  ;;  %v7239_v9 = vmax.f32 %v13621_v8, 0.0  ;;  %v7242_v45 = vmax.f32 %v13625_v33, 0.0  ;;  %v15119_v17 = vld [vmem:[#allocation16_spill] sm:$0xff] }
 0x327   :  { %15105 = vst [vmem:[#allocation37_spill] sm:$0xff] %v13789_v22  ;;  %15106 = vst [vmem:[#allocation38_spill] sm:$0xff] %v13792_v34  ;;  %v7572_v62 = vunpack.c.0.s8 %v7571_v48  ;;  %v7106_v34 = vmul.f32 %v13437_v63, %v15113_v30  ;;  %v7111_v43 = vmul.f32 %v13437_v63, %v15117_v23  ;;  %v7243_v48 = vmax.f32 %v13629_v5, 0.0  ;;  %v15120_v23 = vld [vmem:[#allocation17_spill] sm:$0xff]  ;;  %v15121_v61 = vld [vmem:[#allocation19_spill] sm:$0xff] }
 0x328   :  { %15107 = vst [vmem:[#allocation39_spill] sm:$0xff] %v13795_v11  ;;  %15108 = vst [vmem:[#allocation40_spill] sm:$0xff] %v13798_v3  ;;  %v7246_v30 = vmax.f32 %v13633_v35, 0.0  ;;  %v7248_v57 = vmax.f32 %v13641_v39, 0.0  ;;  %v7249_v16 = vmax.f32 %v13645_v36, 0.0  ;;  %v7252_v63 = vmax.f32 %v15119_v17, 0.0 }
 0x329   :  { %15109 = vst [vmem:[#allocation41_spill] sm:$0xff] %v13801_v38  ;;  %15110 = vst [vmem:[#allocation42_spill] sm:$0xff] %v13804_v24  ;;  %v13819_v24 = vsub.s32 %v7572_v62, %v15116_v1  ;;  %v7250_v62 = vmax.f32 %v13649_v58, 0.0  ;;  %v15118_v1 = vld [vmem:[#allocation15_spill] sm:$0xff]  ;;  %v7253_v8 = vmax.f32 %v15120_v23, 0.0  ;;  %v7254_v38 = vmax.f32 %v13665_v53, 0.0 }
 0x32a   :  { %15111 = vst [vmem:[#allocation43_spill] sm:$0xff] %v13807_v31  ;;  %15112 = vst [vmem:[#allocation44_spill] sm:$0xff] %v13810_v29  ;;  %v7251_v22 = vmax.f32 %v15118_v1, 0.0  ;;  %v7255_v5 = vmax.f32 %v13669_v40, 0.0  ;;  %v7256_v18 = vmax.f32 %v15121_v61, 0.0  ;;  %v7257_v0 = vmax.f32 %v13677_v7, 0.0 }
 0x32b   :  { %v7258_v29 = vmax.f32 %v13681_v41, 0.0  ;;  %v7259_v3 = vmax.f32 %v13684_v59, 0.0  ;;  %v7260_v19 = vmax.f32 %v13687_v25, 0.0  ;;  %v13849_v4 = vsel %vm6759_vm1, %v7239_v9, 0.0  ;;  %v11070_v33 = vld [vmem:[%s14958_s6 + $0x28] sm:$0xff]  }
 0x32c   :  { %v13852_v59 = vsel %vm6759_vm1, %v7242_v45, 0.0  ;;  %v13855_v1 = vsel %vm6759_vm1, %v7243_v48, 0.0  ;;  %v13858_v28 = vsel %vm6759_vm1, %v7246_v30, 0.0  ;;  %v13861_v11 = vsel %vm6759_vm1, %v7247_v46, 0.0 }
 0x32d   :  { %v13864_v40 = vsel %vm6759_vm1, %v7248_v57, 0.0  ;;  %v13867_v32 = vsel %vm6759_vm1, %v7249_v16, 0.0  ;;  %v13870_v9 = vsel %vm6759_vm1, %v7250_v62, 0.0  ;;  %v13873_v45 = vsel %vm6759_vm1, %v7251_v22, 0.0 }
 0x32e   :  { %v13876_v48 = vsel %vm6759_vm1, %v7252_v63, 0.0  ;;  %v13879_v30 = vsel %vm6759_vm1, %v7253_v8, 0.0  ;;  %v13882_v46 = vsel %vm6759_vm1, %v7254_v38, 0.0  ;;  %v13885_v57 = vsel %vm6759_vm1, %v7255_v5, 0.0 }
 0x32f   :  { %v13888_v16 = vsel %vm6759_vm1, %v7256_v18, 0.0  ;;  %v13891_v62 = vsel %vm6759_vm1, %v7257_v0, 0.0  ;;  %v13894_v22 = vsel %vm6759_vm1, %v7258_v29, 0.0  ;;  %v13897_v63 = vsel %vm6759_vm1, %v7259_v3, 0.0  ;;  %v11057_v0 = vld [vmem:[%s14958_s6 + $0x50] sm:$0xff]  }
 0x330   :  { %15122 = vst [vmem:[#allocation7_spill] sm:$0xff] %v13894_v22  ;;  %15123 = vst [vmem:[#allocation8_spill] sm:$0xff] %v13897_v63  ;;  %v13900_v8 = vsel %vm6759_vm1, %v7260_v19, 0.0  ;;  %v7177_v38 = vadd.f32 %v13463_v13, %v7107_v21  ;;  %v7181_v5 = vadd.f32 %v13463_v13, %v7111_v43  ;;  %v7176_v56 = vadd.f32 %v13463_v13, %v7106_v34  ;;  %v11058_v3 = vld [vmem:[%s14958_s6 + $0x10] sm:$0xff]  }
 0x331   :  { %15124 = vst [vmem:[#allocation9_spill] sm:$0xff] %v13900_v8  ;;  %v7180_v18 = vadd.f32 %v13463_v13, %v7110_v6  ;;  %v11059_v19 = vld [vmem:[%s14958_s6 + $0xd0] sm:$0xff]   ;;  %vm7454_vm3 = vcmp.gt.f32.partialorder %v15120_v23, 0.0  ;;  %vm7453_vm5 = vcmp.gt.f32.partialorder %v15119_v17, 0.0  ;;  %10362 = vmatprep.subr.bf16.mxu0 %v11057_v0  ;;  %v11209_v43 = vmov 0.0   ;;  %v11062_v0 = vld [vmem:[%s14958_s6 + $0x18] sm:$0xff]  }
 0x332   :  { %v11060_v13 = vld [vmem:[%s14958_s6 + $0x90] sm:$0xff]   ;;  %v7245_v6 = vmax.f32 %v7181_v5, 0.0  ;;  %vm7442_vm6 = vcmp.gt.f32.partialorder %v7177_v38, 0.0  ;;  %vm7446_vm7 = vcmp.gt.f32.partialorder %v7181_v5, 0.0  ;;  %v7241_v21 = vmax.f32 %v7177_v38, 0.0  ;;  %10384 = vmatprep.subr.bf16.mxu1 %v11059_v19  ;;  %10363 = vmatpush3.bf16.msra.mxu0 %v11058_v3  ;;  %v11061_v5 = vld [vmem:[%s14958_s6 + $0x58] sm:$0xff]  }
 0x333   :  { %v7506_v34 = vsel %vm7442_vm6, 1.0, %v11209_v43  ;;  %v7510_v29 = vsel %vm7446_vm7, 1.0, %v11209_v43  ;;  %v7244_v31 = vmax.f32 %v7180_v18, 0.0  ;;  %vm7441_vm8 = vcmp.gt.f32.partialorder %v7176_v56, 0.0  ;;  %10385 = vmatpush3.bf16.msra.mxu1 %v11060_v13  ;;  %v11063_v3 = vld [vmem:[%s14958_s6 + $0xd8] sm:$0xff]   ;;  %10364 = vmatprep.subr.bf16.mxu0 %v11061_v5  ;;  %v11068_v17 = vld [vmem:[%s14958_s6 + $0xa0] sm:$0xff]  }
 0x334   :  { %v13925_v44 = vsel %vm6759_vm1, %v7245_v6, 0.0  ;;  %v7589_v50 = vrot.slane %v7506_v34, %v13819_v24  ;;  %v7628_v8 = vrot.slane %v7510_v29, %v13819_v24  ;;  %v7306_v38 = vsel %vm6759_vm1, %v7241_v21, 0.0  ;;  %v11064_v21 = vld [vmem:[%s14958_s6 + $0x98] sm:$0xff]   ;;  %10386 = vmatprep.subr.bf16.mxu1 %v11063_v3 }
 0x335   :  { %v13940_v19 = vsel %vm6759_vm1, %v7244_v31, 0.0  ;;  %vm7445_vm9 = vcmp.gt.f32.partialorder %v7180_v18, 0.0  ;;  %v7505_v13 = vsel %vm7441_vm8, 1.0, %v11209_v43  ;;  %v7240_v6 = vmax.f32 %v7176_v56, 0.0 }
 0x336   :  { %v10555_v34 = vpack.i.bf16 %v7628_v8, %v7589_v50  ;;  %v7509_v29 = vsel %vm7445_vm9, 1.0, %v11209_v43  ;;  %v7576_v63 = vrot.slane %v7505_v13, %v13819_v24  ;;  %v7514_v22 = vsel %vm7450_vm2, 1.0, %v11209_v43  ;;  %10365 = vmatpush3.bf16.msra.mxu0 %v11062_v0  ;;  %v11066_v0 = vld [vmem:[%s14958_s6 + $0x20] sm:$0xff]  }
 0x337   :  { %v7616_v31 = vrot.slane %v7509_v29, %v13819_v24  ;;  %v7304_v18 = vsel %vm6759_vm1, %v7240_v6, 0.0  ;;  %v7518_v56 = vsel %vm7454_vm3, 1.0, %v11209_v43  ;;  %v7665_v50 = vrot.slane %v7514_v22, %v13819_v24  ;;  %10387 = vmatpush3.bf16.msra.mxu1 %v11064_v21  ;;  %v11065_v22 = vld [vmem:[%s14958_s6 + $0x60] sm:$0xff]  }
 0x338   :  { %10556 = vrot.lane.b32.xlu1 %v10555_v34, %s11210_s1  ;;  %v7305_v36 = vadd.f32 %v7304_v18, %v13849_v4  ;;  %v7702_v8 = vrot.slane %v7518_v56, %v13819_v24  ;;  %v7513_v5 = vsel %vm7449_vm4, 1.0, %v11209_v43  ;;  %v7517_v23 = vsel %vm7453_vm5, 1.0, %v11209_v43  ;;  %v11067_v4 = vld [vmem:[%s14958_s6 + $0xe0] sm:$0xff]   ;;  %10366 = vmatprep.subr.bf16.mxu0 %v11065_v22  ;;  %v11069_v18 = vld [vmem:[%s14958_s6 + $0x68] sm:$0xff]  }
 0x339   :  { %v10545_v3 = vpack.i.bf16 %v7616_v31, %v7576_v63  ;;  %v7653_v39 = vrot.slane %v7513_v5, %v13819_v24  ;;  %v7690_v13 = vrot.slane %v7517_v23, %v13819_v24  ;;  %v7515_v34 = vsel %vm7451_vm10, 1.0, %v11209_v43  ;;  %10388 = vmatprep.subr.bf16.mxu1 %v11067_v4 }
 0x33a   :  { %v7307_v6 = vadd.f32 %v7306_v38, %v7305_v36  ;;  %v10560_v21 = vpack.i.bf16 %v7702_v8, %v7665_v50  ;;  %v7519_v29 = vsel %vm7455_vm11, 1.0, %v11209_v43  ;;  %v7677_v58 = vrot.slane %v7515_v34, %v13819_v24  ;;  %10367 = vmatpush3.bf16.msra.mxu0 %v11066_v0 }
 0x33b   :  { %10546 = vrot.lane.b32.xlu0 %v10545_v3, %s11211_s2  ;;  %v10550_v63 = vpack.i.bf16 %v7690_v13, %v7653_v39  ;;  %v7714_v53 = vrot.slane %v7519_v29, %v13819_v24  ;;  %vm7447_vm13 = vcmp.gt.f32.partialorder %v13633_v35, 0.0  ;;  %v7507_v31 = vsel %vm7443_vm12, 1.0, %v11209_v43  ;;  %10389 = vmatpush3.bf16.msra.mxu1 %v11068_v17  ;;  %v11072_v35 = vld [vmem:[%s14958_s6 + $0xa8] sm:$0xff]   ;;  %v11073_v13 = vld [vmem:[%s14958_s6 + $0x70] sm:$0xff]  }
 0x33c   :  { %v7309_v38 = vadd.f32 %v13852_v59, %v7307_v6  ;;  %10561 = vrot.lane.b32.xlu1 %v10560_v21, %s11210_s1  ;;  %v11071_v59 = vld [vmem:[%s14958_s6 + $0xe8] sm:$0xff]   ;;  %v7511_v56 = vsel %vm7447_vm13, 1.0, %v11209_v43  ;;  %v7602_v50 = vrot.slane %v7507_v31, %v13819_v24  ;;  %vm7465_vm14 = vcmp.gt.f32.partialorder %v13699_v51, 0.0  ;;  %10368 = vmatprep.subr.bf16.mxu0 %v11069_v18  ;;  %v11076_v6 = vld [vmem:[%s14958_s6 + $0xb0] sm:$0xff]  }
 0x33d   :  { %vm7469_vm15 = vcmp.gt.f32.partialorder %v13711_v20, 0.0  ;;  %v10570_v8 = vpack.i.bf16 %v7714_v53, %v7677_v58  ;;  %v7640_v5 = vrot.slane %v7511_v56, %v13819_v24  ;;  %v7529_v23 = vsel %vm7465_vm14, 1.0, %v11209_v43  ;;  %10390 = vmatprep.subr.bf16.mxu1 %v11071_v59 }
 0x33e   :  { %v7311_v36 = vadd.f32 %v13855_v1, %v7309_v38  ;;  %v7533_v22 = vsel %vm7469_vm15, 1.0, %v11209_v43  ;;  %v7801_v0 = vrot.slane %v7529_v23, %v13819_v24  ;;  %vm7457_vm0 = vcmp.gt.f32.partialorder %v15121_v61, 0.0  ;;  %10369 = vmatpush3.bf16.msra.mxu0 %v11070_v33  ;;  %v11075_v61 = vld [vmem:[%s14958_s6 + $0xf0] sm:$0xff]   ;;  %v11077_v33 = vld [vmem:[%s14958_s6 + $0x78] sm:$0xff]  }
 0x33f   :  { %10551 = vrot.lane.b32.xlu0 %v10550_v63, %s11211_s2  ;;  %vm7461_vm2 = vcmp.gt.f32.partialorder %v13687_v25, 0.0  ;;  %v10565_v4 = vpack.i.bf16 %v7640_v5, %v7602_v50  ;;  %v7838_v3 = vrot.slane %v7533_v22, %v13819_v24  ;;  %v7521_v39 = vsel %vm7457_vm0, 1.0, %v11209_v43  ;;  %10391 = vmatpush3.bf16.msra.mxu1 %v11072_v35  ;;  %v11074_v25 = vld [vmem:[%s14958_s6 + $0x30] sm:$0xff]   ;;  %v11080_v50 = vld [vmem:[%s14958_s6 + $0xb8] sm:$0xff]  }
 0x340   :  { %v7313_v1 = vadd.f32 %v13940_v19, %v7311_v36  ;;  %10571 = vrot.lane.b32.xlu1 %v10570_v8, %s11212_s3  ;;  %v7525_v19 = vsel %vm7461_vm2, 1.0, %v11209_v43  ;;  %v7727_v17 = vrot.slane %v7521_v39, %v13819_v24  ;;  %vm7466_vm3 = vcmp.gt.f32.partialorder %v13702_v37, 0.0  ;;  %10370 = vmatprep.subr.bf16.mxu0 %v11073_v13 }
 0x341   :  { %vm7470_vm4 = vcmp.gt.f32.partialorder %v13714_v15, 0.0  ;;  %v10580_v34 = vpack.i.bf16 %v7838_v3, %v7801_v0  ;;  %v7764_v63 = vrot.slane %v7525_v19, %v13819_v24  ;;  %v7530_v29 = vsel %vm7466_vm3, 1.0, %v11209_v43  ;;  %10392 = vmatprep.subr.bf16.mxu1 %v11075_v61  ;;  %v11081_v3 = vld [vmem:[%s14958_s6 + $0x140] sm:$0xff]  }
 0x342   :  { %v7315_v21 = vadd.f32 %v13925_v44, %v7313_v1  ;;  %v7534_v58 = vsel %vm7470_vm4, 1.0, %v11209_v43  ;;  %v7813_v38 = vrot.slane %v7530_v29, %v13819_v24  ;;  %vm7458_vm5 = vcmp.gt.f32.partialorder %v13677_v7, 0.0  ;;  %10371 = vmatpush3.bf16.msra.mxu0 %v11074_v25  ;;  %v11078_v7 = vld [vmem:[%s14958_s6 + $0x38] sm:$0xff]  }
 0x343   :  { %10566 = vrot.lane.b32.xlu0 %v10565_v4, %s11212_s3  ;;  %vm7462_vm6 = vcmp.gt.f32.partialorder %v13690_v47, 0.0  ;;  %v10575_v53 = vpack.i.bf16 %v7764_v63, %v7727_v17  ;;  %v7850_v31 = vrot.slane %v7534_v58, %v13819_v24  ;;  %v7522_v18 = vsel %vm7458_vm5, 1.0, %v11209_v43  ;;  %10393 = vmatpush3.bf16.msra.mxu1 %v11076_v6 }
 0x344   :  { %v7317_v44 = vadd.f32 %v13858_v28, %v7315_v21  ;;  %10581 = vrot.lane.b32.xlu1 %v10580_v34, %s11211_s2  ;;  %v11079_v28 = vld [vmem:[%s14958_s6 + $0xf8] sm:$0xff]   ;;  %v7526_v59 = vsel %vm7462_vm6, 1.0, %v11209_v43  ;;  %v7739_v56 = vrot.slane %v7522_v18, %v13819_v24  ;;  %vm7467_vm7 = vcmp.gt.f32.partialorder %v13705_v42, 0.0  ;;  %10372 = vmatprep.subr.bf16.mxu0 %v11077_v33 }
 0x345   :  { %vm7471_vm8 = vcmp.gt.f32.partialorder %v13717_v12, 0.0  ;;  %v10590_v36 = vpack.i.bf16 %v7850_v31, %v7813_v38  ;;  %v7776_v8 = vrot.slane %v7526_v59, %v13819_v24  ;;  %v7531_v5 = vsel %vm7467_vm7, 1.0, %v11209_v43  ;;  %10394 = vmatprep.subr.bf16.mxu1 %v11079_v28 }
 0x346   :  { %v7319_v35 = vadd.f32 %v13861_v11, %v7317_v44  ;;  %v7535_v23 = vsel %vm7471_vm8, 1.0, %v11209_v43  ;;  %v7825_v22 = vrot.slane %v7531_v5, %v13819_v24  ;;  %vm7459_vm9 = vcmp.gt.f32.partialorder %v13681_v41, 0.0  ;;  %10373 = vmatpush3.bf16.msra.mxu0 %v11078_v7 }
 0x347   :  { %10576 = vrot.lane.b32.xlu0 %v10575_v53, %s11211_s2  ;;  %vm7463_vm10 = vcmp.gt.f32.partialorder %v13693_v14, 0.0  ;;  %v10585_v0 = vpack.i.bf16 %v7776_v8, %v7739_v56  ;;  %v7862_v1 = vrot.slane %v7535_v23, %v13819_v24  ;;  %v7523_v4 = vsel %vm7459_vm9, 1.0, %v11209_v43  ;;  %10395 = vmatpush3.bf16.msra.mxu1 %v11080_v50  ;;  %v15125_v50 = vld [vmem:[#allocation29_spill] sm:$0xff] }
 0x348   :  { %v7321_v11 = vadd.f32 %v13864_v40, %v7319_v35  ;;  %10591 = vrot.lane.b32.xlu1 %v10590_v36, %s11210_s1  ;;  %v7527_v39 = vsel %vm7463_vm10, 1.0, %v11209_v43  ;;  %v7751_v41 = vrot.slane %v7523_v4, %v13819_v24  ;;  %vm7481_vm11 = vcmp.gt.f32.partialorder %v13747_v10, 0.0  ;;  %v11084_v40 = vld [vmem:[%s14958_s6 + $0x1c0] sm:$0xff]   ;;  %10402 = vmatprep.subr.bf16.mxu0 %v11081_v3 }
 0x349   :  { %vm7485_vm12 = vcmp.gt.f32.partialorder %v13759_v27, 0.0  ;;  %v10600_v25 = vpack.i.bf16 %v7862_v1, %v7825_v22  ;;  %v7788_v61 = vrot.slane %v7527_v39, %v13819_v24  ;;  %v7545_v19 = vsel %vm7481_vm11, 1.0, %v11209_v43  ;;  %10424 = vmatprep.subr.bf16.mxu1 %v11084_v40  ;;  %v15126_v22 = vld [vmem:[#allocation24_spill] sm:$0xff]  ;;  %v15129_v40 = vld [vmem:[#allocation43_spill] sm:$0xff] }
 0x34a   :  { %v7323_v13 = vadd.f32 %v13867_v32, %v7321_v11  ;;  %v7549_v17 = vsel %vm7485_vm12, 1.0, %v11209_v43  ;;  %v7949_v6 = vrot.slane %v7545_v19, %v13819_v24  ;;  %vm7473_vm13 = vcmp.gt.f32.partialorder %v13723_v52, 0.0  ;;  %v15127_v11 = vld [vmem:[#allocation26_spill] sm:$0xff] }
 0x34b   :  { %10586 = vrot.lane.b32.xlu0 %v10585_v0, %s11210_s1  ;;  %vm7477_vm14 = vcmp.gt.f32.partialorder %v13735_v26, 0.0  ;;  %v10595_v32 = vpack.i.bf16 %v7788_v61, %v7751_v41  ;;  %v7986_v34 = vrot.slane %v7549_v17, %v13819_v24  ;;  %v7537_v63 = vsel %vm7473_vm13, 1.0, %v11209_v43  ;;  %v15128_v41 = vld [vmem:[#allocation39_spill] sm:$0xff] }
 0x34c   :  { %v7325_v21 = vadd.f32 %v13870_v9, %v7323_v13  ;;  %10601 = vrot.lane.b32.xlu1 %v10600_v25, %s11212_s3  ;;  %v7541_v29 = vsel %vm7477_vm14, 1.0, %v11209_v43  ;;  %v7875_v58 = vrot.slane %v7537_v63, %v13819_v24  ;;  %vm7482_vm15 = vcmp.gt.f32.partialorder %v13750_v2, 0.0 }
 0x34d   :  { %vm7486_vm0 = vcmp.gt.f32.partialorder %v13762_v54, 0.0  ;;  %v10610_v44 = vpack.i.bf16 %v7986_v34, %v7949_v6  ;;  %v7912_v9 = vrot.slane %v7541_v29, %v13819_v24  ;;  %v7546_v53 = vsel %vm7482_vm15, 1.0, %v11209_v43  ;;  %v15130_v6 = vld [vmem:[#allocation31_spill] sm:$0xff] }
 0x34e   :  { %v7327_v38 = vadd.f32 %v13873_v45, %v7325_v21  ;;  %v7550_v31 = vsel %vm7486_vm0, 1.0, %v11209_v43  ;;  %v7961_v18 = vrot.slane %v7546_v53, %v13819_v24  ;;  %vm7474_vm2 = vcmp.gt.f32.partialorder %v13726_v49, 0.0  ;;  %v15131_v21 = vld [vmem:[#allocation35_spill] sm:$0xff] }
 0x34f   :  { %10596 = vrot.lane.b32.xlu0 %v10595_v32, %s11212_s3  ;;  %vm7478_vm3 = vcmp.gt.f32.partialorder %v13738_v55, 0.0  ;;  %v10605_v45 = vpack.i.bf16 %v7912_v9, %v7875_v58  ;;  %v7998_v7 = vrot.slane %v7550_v31, %v13819_v24  ;;  %v7538_v28 = vsel %vm7474_vm2, 1.0, %v11209_v43 }
 0x350   :  { %v7329_v33 = vadd.f32 %v13876_v48, %v7327_v38  ;;  %10611 = vrot.lane.b32.xlu1 %v10610_v44, %s11211_s2  ;;  %v7542_v59 = vsel %vm7478_vm3, 1.0, %v11209_v43  ;;  %v7887_v56 = vrot.slane %v7538_v28, %v13819_v24  ;;  %vm7483_vm4 = vcmp.gt.f32.partialorder %v13753_v60, 0.0  ;;  %v15132_v38 = vld [vmem:[#allocation40_spill] sm:$0xff]  ;;  %v15136_v28 = vld [vmem:[#allocation7_spill] sm:$0xff] }
 0x351   :  { %vm7487_vm5 = vcmp.gt.f32.partialorder %v15125_v50, 0.0  ;;  %v10620_v36 = vpack.i.bf16 %v7998_v7, %v7961_v18  ;;  %v7924_v48 = vrot.slane %v7542_v59, %v13819_v24  ;;  %v7547_v8 = vsel %vm7483_vm4, 1.0, %v11209_v43  ;;  %v15133_v44 = vld [vmem:[#allocation44_spill] sm:$0xff] }
 0x352   :  { %v7331_v35 = vadd.f32 %v13879_v30, %v7329_v33  ;;  %v7551_v5 = vsel %vm7487_vm5, 1.0, %v11209_v43  ;;  %v7973_v23 = vrot.slane %v7547_v8, %v13819_v24  ;;  %vm7475_vm6 = vcmp.gt.f32.partialorder %v15126_v22, 0.0  ;;  %v15135_v7 = vld [vmem:[#allocation36_spill] sm:$0xff]  ;;  %v15137_v8 = vld [vmem:[#allocation41_spill] sm:$0xff] }
 0x353   :  { %10606 = vrot.lane.b32.xlu0 %v10605_v45, %s11211_s2  ;;  %vm7479_vm7 = vcmp.gt.f32.partialorder %v15127_v11, 0.0  ;;  %v10615_v30 = vpack.i.bf16 %v7924_v48, %v7887_v56  ;;  %v8010_v1 = vrot.slane %v7551_v5, %v13819_v24  ;;  %v7539_v4 = vsel %vm7475_vm6, 1.0, %v11209_v43  ;;  %v15134_v45 = vld [vmem:[#allocation11_spill] sm:$0xff]  ;;  %v15138_v5 = vld [vmem:[#allocation32_spill] sm:$0xff] }
 0x354   :  { %v7333_v0 = vadd.f32 %v13882_v46, %v7331_v35  ;;  %10621 = vrot.lane.b32.xlu1 %v10620_v36, %s11210_s1  ;;  %v7543_v3 = vsel %vm7479_vm7, 1.0, %v11209_v43  ;;  %v7899_v39 = vrot.slane %v7539_v4, %v13819_v24  ;;  %vm7497_vm8 = vcmp.gt.f32.partialorder %v15128_v41, 0.0 }
 0x355   :  { %vm7501_vm9 = vcmp.gt.f32.partialorder %v15129_v40, 0.0  ;;  %v10630_v25 = vpack.i.bf16 %v8010_v1, %v7973_v23  ;;  %v7936_v46 = vrot.slane %v7543_v3, %v13819_v24  ;;  %v7561_v61 = vsel %vm7497_vm8, 1.0, %v11209_v43  ;;  %v15139_v23 = vld [vmem:[#allocation8_spill] sm:$0xff] }
 0x356   :  { %v7335_v13 = vadd.f32 %v13885_v57, %v7333_v0  ;;  %v7565_v19 = vsel %vm7501_vm9, 1.0, %v11209_v43  ;;  %v8097_v17 = vrot.slane %v7561_v61, %v13819_v24  ;;  %vm7489_vm10 = vcmp.gt.f32.partialorder %v15130_v6, 0.0 }
 0x357   :  { %10616 = vrot.lane.b32.xlu0 %v10615_v30, %s11210_s1  ;;  %vm7493_vm11 = vcmp.gt.f32.partialorder %v15131_v21, 0.0  ;;  %v10625_v57 = vpack.i.bf16 %v7936_v46, %v7899_v39  ;;  %v8134_v34 = vrot.slane %v7565_v19, %v13819_v24  ;;  %v7553_v63 = vsel %vm7489_vm10, 1.0, %v11209_v43  ;;  %v15142_v46 = vld [vmem:[#allocation9_spill] sm:$0xff] }
 0x358   :  { %v7337_v32 = vadd.f32 %v13888_v16, %v7335_v13  ;;  %10631 = vrot.lane.b32.xlu1 %v10630_v25, %s11212_s3  ;;  %v7557_v29 = vsel %vm7493_vm11, 1.0, %v11209_v43  ;;  %v8023_v58 = vrot.slane %v7553_v63, %v13819_v24  ;;  %vm7498_vm12 = vcmp.gt.f32.partialorder %v15132_v38, 0.0  ;;  %v15140_v13 = vld [vmem:[#allocation33_spill] sm:$0xff] }
 0x359   :  { %vm7502_vm13 = vcmp.gt.f32.partialorder %v15133_v44, 0.0  ;;  %v10640_v53 = vpack.i.bf16 %v8134_v34, %v8097_v17  ;;  %v8060_v16 = vrot.slane %v7557_v29, %v13819_v24  ;;  %v7562_v31 = vsel %vm7498_vm12, 1.0, %v11209_v43  ;;  %v15141_v25 = vld [vmem:[#allocation37_spill] sm:$0xff] }
 0x35a   :  { %v7339_v9 = vadd.f32 %v13891_v62, %v7337_v32  ;;  %v7566_v18 = vsel %vm7502_vm13, 1.0, %v11209_v43  ;;  %v8109_v33 = vrot.slane %v7562_v31, %v13819_v24  ;;  %vm7490_vm14 = vcmp.gt.f32.partialorder %v15134_v45, 0.0 }
 0x35b   :  { %10626 = vrot.lane.b32.xlu0 %v10625_v57, %s11212_s3  ;;  %vm7494_vm15 = vcmp.gt.f32.partialorder %v15135_v7, 0.0  ;;  %v10635_v62 = vpack.i.bf16 %v8060_v16, %v8023_v58  ;;  %v8146_v56 = vrot.slane %v7566_v18, %v13819_v24  ;;  %v7554_v35 = vsel %vm7490_vm14, 1.0, %v11209_v43  ;;  %v15144_v58 = vld [vmem:[#allocation13_spill] sm:$0xff] }
 0x35c   :  { %v7341_v59 = vadd.f32 %v15136_v28, %v7339_v9  ;;  %10641 = vrot.lane.b32.xlu1 %v10640_v53, %s11211_s2  ;;  %v7558_v36 = vsel %vm7494_vm15, 1.0, %v11209_v43  ;;  %v8035_v48 = vrot.slane %v7554_v35, %v13819_v24  ;;  %vm7499_vm0 = vcmp.gt.f32.partialorder %v15137_v8, 0.0  ;;  %v15147_v28 = vld [vmem:[#allocation14_spill] sm:$0xff] }
 0x35d   :  { %vm7503_vm2 = vcmp.gt.f32.partialorder %v15138_v5, 0.0  ;;  %v10650_v30 = vpack.i.bf16 %v8146_v56, %v8109_v33  ;;  %v8072_v1 = vrot.slane %v7558_v36, %v13819_v24  ;;  %v7563_v4 = vsel %vm7499_vm0, 1.0, %v11209_v43  ;;  %v15149_v36 = vld [vmem:[#allocation21_spill] sm:$0xff] }
 0x35e   :  { %v7343_v0 = vadd.f32 %v15139_v23, %v7341_v59  ;;  %v7567_v3 = vsel %vm7503_vm2, 1.0, %v11209_v43  ;;  %v8121_v39 = vrot.slane %v7563_v4, %v13819_v24  ;;  %vm7491_vm3 = vcmp.gt.f32.partialorder %v15140_v13, 0.0  ;;  %v15148_v59 = vld [vmem:[#allocation15_spill] sm:$0xff] }
 0x35f   :  { %10636 = vrot.lane.b32.xlu0 %v10635_v62, %s11211_s2  ;;  %vm7495_vm4 = vcmp.gt.f32.partialorder %v15141_v25, 0.0  ;;  %v10645_v19 = vpack.i.bf16 %v8072_v1, %v8035_v48  ;;  %v8158_v17 = vrot.slane %v7567_v3, %v13819_v24  ;;  %v7555_v32 = vsel %vm7491_vm3, 1.0, %v11209_v43 }
 0x360   :  { %v7345_v61 = vadd.f32 %v15142_v46, %v7343_v0  ;;  %10651 = vrot.lane.b32.xlu1 %v10650_v30, %s11210_s1  ;;  %v15143_v57 = vmax.f32 %v13690_v47, 0.0  ;;  %v7559_v63 = vsel %vm7495_vm4, 1.0, %v11209_v43  ;;  %v8047_v29 = vrot.slane %v7555_v32, %v13819_v24  ;;  %v15146_v47 = vld [vmem:[#allocation12_spill] sm:$0xff] }
 0x361   :  { %vm7444_vm5 = vcmp.gt.f32.partialorder %v15144_v58, 0.0  ;;  %v10660_v53 = vpack.i.bf16 %v8158_v17, %v8121_v39  ;;  %v8084_v16 = vrot.slane %v7559_v63, %v13819_v24  ;;  %v15145_v18 = vmax.f32 %v13693_v14, 0.0  ;;  %v15154_v17 = vld [vmem:[#allocation22_spill] sm:$0xff]  ;;  %v15157_v63 = vld [vmem:[#allocation20_spill] sm:$0xff] }
 0x362   :  { %v7346_v34 = vsel %vm6759_vm1, %v15143_v57, 0.0  ;;  %v7508_v31 = vsel %vm7444_vm5, 1.0, %v11209_v43  ;;  %vm7440_vm6 = vcmp.gt.f32.partialorder %v15146_v47, 0.0  ;;  %vm7448_vm7 = vcmp.gt.f32.partialorder %v15147_v28, 0.0 }
 0x363   :  { %v7347_v9 = vadd.f32 %v7346_v34, %v7345_v61  ;;  %v7348_v33 = vsel %vm6759_vm1, %v15145_v18, 0.0  ;;  %10646 = vrot.lane.b32.xlu0 %v10645_v19, %s11210_s1  ;;  %7608 = vst.msk [vmem:[%s14961_s9 + $0x2] sm:$0x3] %vm6759_vm1, %v7508_v31  ;;  %vm7452_vm8 = vcmp.gt.f32.partialorder %v15148_v59, 0.0  ;;  %v10655_v56 = vpack.i.bf16 %v8084_v16, %v8047_v29  ;;  %v15156_v34 = vld [vmem:[#allocation18_spill] sm:$0xff]  ;;  %v15160_v31 = vld [vmem:[#allocation23_spill] sm:$0xff] }
 0x364   :  { %10661 = vrot.lane.b32.xlu1 %v10660_v53, %s11212_s3  ;;  %v7504_v14 = vsel %vm7440_vm6, 1.0, %v11209_v43  ;;  %v7512_v35 = vsel %vm7448_vm7, 1.0, %v11209_v43  ;;  %v15150_v48 = vmax.f32 %v15149_v36, 0.0  ;;  %v7516_v0 = vsel %vm7452_vm8, 1.0, %v11209_v43  ;;  %v15159_v53 = vld [vmem:[#allocation28_spill] sm:$0xff]  ;;  %v15161_v18 = vld [vmem:[#allocation25_spill] sm:$0xff] }
 0x365   :  { %v7349_v62 = vadd.f32 %v7348_v33, %v7347_v9  ;;  %7568 = vst.msk [vmem:[%s14961_s9] sm:$0x3] %vm6759_vm1, %v7504_v14  ;;  %7645 = vst.msk [vmem:[%s14961_s9 + $0x4] sm:$0x3] %vm6759_vm1, %v7512_v35  ;;  %v7268_v30 = vmax.f32 %v13711_v20, 0.0  ;;  %v7269_v4 = vmax.f32 %v13714_v15, 0.0 }
 0x366   :  { %v7350_v23 = vsel %vm6759_vm1, %v15150_v48, 0.0  ;;  %7682 = vst.msk [vmem:[%s14961_s9 + $0x6] sm:$0x3] %vm6759_vm1, %v7516_v0  ;;  %v15151_v3 = vmax.f32 %v13699_v51, 0.0  ;;  %v15152_v46 = vmax.f32 %v13702_v37, 0.0  ;;  %vm7464_vm9 = vcmp.gt.f32.partialorder %v15149_v36, 0.0 }
 0x367   :  { %v7351_v1 = vadd.f32 %v7350_v23, %v7349_v62  ;;  %10656 = vrot.lane.b32.xlu0 %v10655_v56, %s11212_s3  ;;  %v15153_v20 = vmax.f32 %v13705_v42, 0.0  ;;  %v15155_v32 = vmax.f32 %v15154_v17, 0.0  ;;  %vm7468_vm10 = vcmp.gt.f32.partialorder %v15154_v17, 0.0  ;;  %v15158_v9 = vld [vmem:[#allocation27_spill] sm:$0xff]  ;;  %v15162_v62 = vld [vmem:[#allocation38_spill] sm:$0xff] }
 0x368   :  { %v7352_v39 = vsel %vm6759_vm1, %v15151_v3, 0.0  ;;  %v7354_v61 = vsel %vm6759_vm1, %v15152_v46, 0.0  ;;  %v7528_v51 = vsel %vm7464_vm9, 1.0, %v11209_v43  ;;  %v7532_v37 = vsel %vm7468_vm10, 1.0, %v11209_v43  ;;  %v15163_v56 = vld [vmem:[#allocation42_spill] sm:$0xff] }
 0x369   :  { %v7356_v19 = vsel %vm6759_vm1, %v15153_v20, 0.0  ;;  %v7358_v15 = vsel %vm6759_vm1, %v15155_v32, 0.0  ;;  %v7353_v57 = vadd.f32 %v7352_v39, %v7351_v1  ;;  %vm7456_vm11 = vcmp.gt.f32.partialorder %v15156_v34, 0.0  ;;  %7793 = vst.msk [vmem:[%s14961_s9 + $0xc] sm:$0x3] %vm6759_vm1, %v7528_v51  ;;  %v15164_v14 = vld [vmem:[#allocation30_spill] sm:$0xff] }
 0x36a   :  { %vm7460_vm12 = vcmp.gt.f32.partialorder %v15157_v63, 0.0  ;;  %7830 = vst.msk [vmem:[%s14961_s9 + $0xe] sm:$0x3] %vm6759_vm1, %v7532_v37  ;;  %v7520_v42 = vsel %vm7456_vm11, 1.0, %v11209_v43  ;;  %vm7480_vm13 = vcmp.gt.f32.partialorder %v15158_v9, 0.0  ;;  %vm7484_vm14 = vcmp.gt.f32.partialorder %v15159_v53, 0.0 }
 0x36b   :  { %v7355_v29 = vadd.f32 %v7354_v61, %v7353_v57  ;;  %v7524_v58 = vsel %vm7460_vm12, 1.0, %v11209_v43  ;;  %7719 = vst.msk [vmem:[%s14961_s9 + $0x8] sm:$0x3] %vm6759_vm1, %v7520_v42  ;;  %v7544_v16 = vsel %vm7480_vm13, 1.0, %v11209_v43  ;;  %vm7472_vm15 = vcmp.gt.f32.partialorder %v15160_v31, 0.0  ;;  %v15165_v35 = vld [vmem:[#allocation34_spill] sm:$0xff] }
 0x36c   :  { %7756 = vst.msk [vmem:[%s14961_s9 + $0xa] sm:$0x3] %vm6759_vm1, %v7524_v58  ;;  %vm7476_vm0 = vcmp.gt.f32.partialorder %v15161_v18, 0.0  ;;  %v7548_v47 = vsel %vm7484_vm14, 1.0, %v11209_v43  ;;  %7941 = vst.msk [vmem:[%s14961_s9 + $0x14] sm:$0x3] %vm6759_vm1, %v7544_v16 }
 0x36d   :  { %v7357_v33 = vadd.f32 %v7356_v19, %v7355_v29  ;;  %v7536_v28 = vsel %vm7472_vm15, 1.0, %v11209_v43  ;;  %v7540_v59 = vsel %vm7476_vm0, 1.0, %v11209_v43  ;;  %7978 = vst.msk [vmem:[%s14961_s9 + $0x16] sm:$0x3] %vm6759_vm1, %v7548_v47  ;;  %vm7496_vm2 = vcmp.gt.f32.partialorder %v15162_v62, 0.0 }
 0x36e   :  { %7867 = vst.msk [vmem:[%s14961_s9 + $0x10] sm:$0x3] %vm6759_vm1, %v7536_v28  ;;  %7904 = vst.msk [vmem:[%s14961_s9 + $0x12] sm:$0x3] %vm6759_vm1, %v7540_v59  ;;  %vm7500_vm3 = vcmp.gt.f32.partialorder %v15163_v56, 0.0  ;;  %vm7488_vm4 = vcmp.gt.f32.partialorder %v15164_v14, 0.0 }
 0x36f   :  { %vm7492_vm5 = vcmp.gt.f32.partialorder %v15165_v35, 0.0  ;;  %v7359_v36 = vadd.f32 %v7358_v15, %v7357_v33  ;;  %v7560_v48 = vsel %vm7496_vm2, 1.0, %v11209_v43  ;;  %v7564_v23 = vsel %vm7500_vm3, 1.0, %v11209_v43 }
 0x370   :  { %v7552_v0 = vsel %vm7488_vm4, 1.0, %v11209_v43  ;;  %v7270_v1 = vmax.f32 %v13717_v12, 0.0  ;;  %v7360_v3 = vsel %vm6759_vm1, %v7268_v30, 0.0  ;;  %8089 = vst.msk [vmem:[%s14961_s9 + $0x1c] sm:$0x3] %vm6759_vm1, %v7560_v48  ;;  %v7556_v39 = vsel %vm7492_vm5, 1.0, %v11209_v43 }
 0x371   :  { %8126 = vst.msk [vmem:[%s14961_s9 + $0x1e] sm:$0x3] %vm6759_vm1, %v7564_v23  ;;  %8015 = vst.msk [vmem:[%s14961_s9 + $0x18] sm:$0x3] %vm6759_vm1, %v7552_v0  ;;  %v7361_v12 = vadd.f32 %v7360_v3, %v7359_v36  ;;  %v7271_v30 = vmax.f32 %v15160_v31, 0.0  ;;  %v7362_v46 = vsel %vm6759_vm1, %v7269_v4, 0.0 }
 0x372   :  { %8052 = vst.msk [vmem:[%s14961_s9 + $0x1a] sm:$0x3] %vm6759_vm1, %v7556_v39  ;;  %v7272_v20 = vmax.f32 %v13723_v52, 0.0  ;;  %v7364_v43 = vsel %vm6759_vm1, %v7270_v1, 0.0  ;;  %v7273_v17 = vmax.f32 %v13726_v49, 0.0  ;;  %v7274_v57 = vmax.f32 %v15126_v22, 0.0 }
 0x373   :  { %v7363_v61 = vadd.f32 %v7362_v46, %v7361_v12  ;;  %v7366_v32 = vsel %vm6759_vm1, %v7271_v30, 0.0  ;;  %v7275_v34 = vmax.f32 %v15161_v18, 0.0  ;;  %v7276_v52 = vmax.f32 %v13735_v26, 0.0 }
 0x374   :  { %v7368_v51 = vsel %vm6759_vm1, %v7272_v20, 0.0  ;;  %v7370_v4 = vsel %vm6759_vm1, %v7273_v17, 0.0  ;;  %v7372_v29 = vsel %vm6759_vm1, %v7274_v57, 0.0  ;;  %v7277_v49 = vmax.f32 %v13738_v55, 0.0 }
 0x375   :  { %v7365_v19 = vadd.f32 %v7364_v43, %v7363_v61  ;;  %v7374_v58 = vsel %vm6759_vm1, %v7275_v34, 0.0  ;;  %v7278_v22 = vmax.f32 %v15127_v11, 0.0  ;;  %v7376_v31 = vsel %vm6759_vm1, %v7276_v52, 0.0 }
 0x376   :  { %v7279_v18 = vmax.f32 %v15158_v9, 0.0  ;;  %v7378_v47 = vsel %vm6759_vm1, %v7277_v49, 0.0  ;;  %v7280_v26 = vmax.f32 %v13747_v10, 0.0  ;;  %v7281_v55 = vmax.f32 %v13750_v2, 0.0 }
 0x377   :  { %v7367_v15 = vadd.f32 %v7366_v32, %v7365_v19  ;;  %v7380_v59 = vsel %vm6759_vm1, %v7278_v22, 0.0  ;;  %v7282_v11 = vmax.f32 %v13753_v60, 0.0  ;;  %v7283_v9 = vmax.f32 %v15159_v53, 0.0 }
 0x378   :  { %v7382_v48 = vsel %vm6759_vm1, %v7279_v18, 0.0  ;;  %v7384_v0 = vsel %vm6759_vm1, %v7280_v26, 0.0  ;;  %v7386_v3 = vsel %vm6759_vm1, %v7281_v55, 0.0  ;;  %v7284_v10 = vmax.f32 %v13759_v27, 0.0 }
 0x379   :  { %v7369_v37 = vadd.f32 %v7368_v51, %v7367_v15  ;;  %v7388_v12 = vsel %vm6759_vm1, %v7282_v11, 0.0  ;;  %v7285_v2 = vmax.f32 %v13762_v54, 0.0  ;;  %v7390_v46 = vsel %vm6759_vm1, %v7283_v9, 0.0 }
 0x37a   :  { %v7286_v60 = vmax.f32 %v15125_v50, 0.0  ;;  %v7392_v20 = vsel %vm6759_vm1, %v7284_v10, 0.0  ;;  %v7287_v53 = vmax.f32 %v15164_v14, 0.0  ;;  %v7288_v27 = vmax.f32 %v15130_v6, 0.0 }
 0x37b   :  { %v7371_v63 = vadd.f32 %v7370_v4, %v7369_v37  ;;  %v7394_v19 = vsel %vm6759_vm1, %v7285_v2, 0.0  ;;  %v7289_v54 = vmax.f32 %v15134_v45, 0.0  ;;  %v7290_v50 = vmax.f32 %v15140_v13, 0.0 }
 0x37c   :  { %v7396_v32 = vsel %vm6759_vm1, %v7286_v60, 0.0  ;;  %v7398_v57 = vsel %vm6759_vm1, %v7287_v53, 0.0  ;;  %v7400_v37 = vsel %vm6759_vm1, %v7288_v27, 0.0  ;;  %v7291_v14 = vmax.f32 %v15165_v35, 0.0 }
 0x37d   :  { %v7373_v42 = vadd.f32 %v7372_v29, %v7371_v63  ;;  %v7402_v4 = vsel %vm6759_vm1, %v7289_v54, 0.0  ;;  %v7292_v6 = vmax.f32 %v15131_v21, 0.0  ;;  %v7404_v52 = vsel %vm6759_vm1, %v7290_v50, 0.0 }
 0x37e   :  { %v7293_v45 = vmax.f32 %v15135_v7, 0.0  ;;  %v7294_v13 = vmax.f32 %v15141_v25, 0.0  ;;  %v7295_v35 = vmax.f32 %v15162_v62, 0.0  ;;  %v7296_v21 = vmax.f32 %v15128_v41, 0.0 }
 0x37f   :  { %v7375_v16 = vadd.f32 %v7374_v58, %v7373_v42  ;;  %v7406_v42 = vsel %vm6759_vm1, %v7291_v14, 0.0  ;;  %v7408_v58 = vsel %vm6759_vm1, %v7292_v6, 0.0  ;;  %v7297_v7 = vmax.f32 %v15132_v38, 0.0 }
 0x380   :  { %v7410_v22 = vsel %vm6759_vm1, %v7293_v45, 0.0  ;;  %v7298_v25 = vmax.f32 %v15137_v8, 0.0  ;;  %v7416_v26 = vsel %vm6759_vm1, %v7296_v21, 0.0  ;;  %v7299_v62 = vmax.f32 %v15163_v56, 0.0 }
 0x381   :  { %v7377_v33 = vadd.f32 %v7376_v31, %v7375_v16  ;;  %v7300_v41 = vmax.f32 %v15129_v40, 0.0  ;;  %vm7580_vm6 = vcmask 517376   ;;  %v7301_v8 = vmax.f32 %v15133_v44, 0.0 }
 0x382   :  { %v7422_v9 = vsel %vm6759_vm1, %v7299_v62, 0.0  ;;  %vm7593_vm7 = vcmask 779776   ;;  %vm7606_vm8 = vcmask 1042176  }
 0x383   :  { %v7379_v28 = vadd.f32 %v7378_v47, %v7377_v33  ;;  %v7412_v33 = vsel %vm6759_vm1, %v7294_v13, 0.0  ;;  %v7414_v47 = vsel %vm6759_vm1, %v7295_v35, 0.0  ;;  %v7424_v40 = vsel %vm6759_vm1, %v7300_v41, 0.0 }
 0x385   :  { %v7381_v36 = vadd.f32 %v7380_v59, %v7379_v28 }
 0x387   :  { %v7383_v23 = vadd.f32 %v7382_v48, %v7381_v36  ;;  %v7418_v36 = vsel %vm6759_vm1, %v7297_v7, 0.0 }
 0x389   :  { %v7385_v1 = vadd.f32 %v7384_v0, %v7383_v23  ;;  %v7420_v23 = vsel %vm6759_vm1, %v7298_v25, 0.0 }
 0x38b   :  { %v7387_v39 = vadd.f32 %v7386_v3, %v7385_v1 }
 0x38d   :  { %v7389_v30 = vadd.f32 %v7388_v12, %v7387_v39  ;;  %v7302_v12 = vmax.f32 %v15138_v5, 0.0  ;;  %v7426_v5 = vsel %vm6759_vm1, %v7301_v8, 0.0 }
 0x38f   :  { %v7391_v61 = vadd.f32 %v7390_v46, %v7389_v30 }
 0x391   :  { %v7393_v43 = vadd.f32 %v7392_v20, %v7391_v61 }
 0x393   :  { %v7395_v17 = vadd.f32 %v7394_v19, %v7393_v43 }
 0x395   :  { %v7397_v15 = vadd.f32 %v7396_v32, %v7395_v17  ;;  %v7428_v17 = vsel %vm6759_vm1, %v7302_v12, 0.0  ;;  %vm9625_vm1 = vcmask 74752  }
 0x397   :  { %v7399_v51 = vadd.f32 %v7398_v57, %v7397_v15 }
 0x399   :  { %v7401_v34 = vadd.f32 %v7400_v37, %v7399_v51 }
 0x39b   :  { %v7403_v63 = vadd.f32 %v7402_v4, %v7401_v34 }
 0x39d   :  { %v7405_v29 = vadd.f32 %v7404_v52, %v7403_v63 }
 0x39f   :  { %v7407_v49 = vadd.f32 %v7406_v42, %v7405_v29 }
 0x3a1   :  { %v7409_v16 = vadd.f32 %v7408_v58, %v7407_v49 }
 0x3a3   :  { %v7411_v31 = vadd.f32 %v7410_v22, %v7409_v16 }
 0x3a5   :  { %v7413_v18 = vadd.f32 %v7412_v33, %v7411_v31 }
 0x3a7   :  { %v7415_v28 = vadd.f32 %v7414_v47, %v7413_v18 }
 0x3a9   :  { %v7417_v59 = vadd.f32 %v7416_v26, %v7415_v28  ;;  %v11082_v26 = vld [vmem:[%s14958_s6 + $0x100] sm:$0xff]  }
 0x3aa   :  { %v10557_v55 = vpop.permute.xlu1 %10556 }
 0x3ab   :  { %v7419_v48 = vadd.f32 %v7418_v36, %v7417_v59  ;;  %v10559_v11 = vunpack.i.h.bf16 %v10557_v55  ;;  %v10558_v0 = vunpack.i.l.bf16 %v10557_v55  ;;  %v11086_v55 = vld [vmem:[%s14958_s6 + $0x148] sm:$0xff]  }
 0x3ad   :  { %v7421_v38 = vadd.f32 %v7420_v23, %v7419_v48  ;;  %v10547_v1 = vpop.permute.xlu0 %10546 }
 0x3ae   :  { %v10549_v3 = vunpack.i.h.bf16 %v10547_v1  ;;  %v10548_v39 = vunpack.i.l.bf16 %v10547_v1  ;;  %v10562_v56 = vpop.permute.xlu1 %10561  ;;  %v11085_v1 = vld [vmem:[%s14958_s6 + $0x180] sm:$0xff]  }
 0x3af   :  { %v7423_v10 = vadd.f32 %v7422_v9, %v7421_v38  ;;  %v10564_v30 = vunpack.i.h.bf16 %v10562_v56  ;;  %v10563_v2 = vunpack.i.l.bf16 %v10562_v56  ;;  %v11087_v9 = vld [vmem:[%s14958_s6 + $0x108] sm:$0xff]   ;;  %v11090_v56 = vld [vmem:[%s14958_s6 + $0x150] sm:$0xff]  }
 0x3b0   :  { %7620 = vst.msk [vmem:[%s14961_s9 + $0x2] sm:$0x3] %vm7580_vm6, %v10549_v3  ;;  %7581 = vst.msk [vmem:[%s14961_s9] sm:$0x3] %vm7580_vm6, %v10548_v39  ;;  %v11088_v3 = vld [vmem:[%s14958_s6 + $0x1c8] sm:$0xff]  }
 0x3b1   :  { %v7425_v44 = vadd.f32 %v7424_v40, %v7423_v10  ;;  %v10552_v46 = vpop.permute.xlu0 %10551  ;;  %7594 = vst.msk [vmem:[%s14961_s9] sm:$0x3] %vm7593_vm7, %v10558_v0  ;;  %7632 = vst.msk [vmem:[%s14961_s9 + $0x2] sm:$0x3] %vm7593_vm7, %v10559_v11 }
 0x3b2   :  { %v10554_v61 = vunpack.i.h.bf16 %v10552_v46  ;;  %v10553_v60 = vunpack.i.l.bf16 %v10552_v46  ;;  %v10572_v20 = vpop.permute.xlu1 %10571 }
 0x3b3   :  { %v7427_v43 = vadd.f32 %v7426_v5, %v7425_v44  ;;  %v10574_v53 = vunpack.i.h.bf16 %v10572_v20  ;;  %v10573_v19 = vunpack.i.l.bf16 %v10572_v20  ;;  %v11091_v5 = vld [vmem:[%s14958_s6 + $0x110] sm:$0xff]  }
 0x3b4   :  { %7694 = vst.msk [vmem:[%s14961_s9 + $0x6] sm:$0x3] %vm7580_vm6, %v10554_v61  ;;  %7657 = vst.msk [vmem:[%s14961_s9 + $0x4] sm:$0x3] %vm7580_vm6, %v10553_v60  ;;  %v11092_v61 = vld [vmem:[%s14958_s6 + $0x1d0] sm:$0xff]  }
 0x3b5   :  { %v7429_v27 = vadd.f32 %v7428_v17, %v7427_v43  ;;  %7669 = vst.msk [vmem:[%s14961_s9 + $0x4] sm:$0x3] %vm7593_vm7, %v10563_v2  ;;  %7706 = vst.msk [vmem:[%s14961_s9 + $0x6] sm:$0x3] %vm7593_vm7, %v10564_v30  ;;  %v10567_v32 = vpop.permute.xlu0 %10566  ;;  %v11089_v2 = vld [vmem:[%s14958_s6 + $0x188] sm:$0xff]  }
 0x3b6   :  { %7681 = vst.msk [vmem:[%s14961_s9 + $0x4] sm:$0x3] %vm7606_vm8, %v10573_v19  ;;  %7718 = vst.msk [vmem:[%s14961_s9 + $0x6] sm:$0x3] %vm7606_vm8, %v10574_v53  ;;  %v10569_v15 = vunpack.i.h.bf16 %v10567_v32  ;;  %v10568_v54 = vunpack.i.l.bf16 %v10567_v32  ;;  %v10582_v57 = vpop.permute.xlu1 %10581  ;;  %v11094_v53 = vld [vmem:[%s14958_s6 + $0x158] sm:$0xff]  }
 0x3b7   :  { %7430 = vadd.xlane.f32.xlu0 %v7429_v27  ;;  %v10584_v51 = vunpack.i.h.bf16 %v10582_v57  ;;  %v10583_v50 = vunpack.i.l.bf16 %v10582_v57 }
 0x3b8   :  { %7607 = vst.msk [vmem:[%s14961_s9] sm:$0x3] %vm7606_vm8, %v10568_v54  ;;  %7644 = vst.msk [vmem:[%s14961_s9 + $0x2] sm:$0x3] %vm7606_vm8, %v10569_v15 }
 0x3b9   :  { %7842 = vst.msk [vmem:[%s14961_s9 + $0xe] sm:$0x3] %vm7580_vm6, %v10584_v51  ;;  %7805 = vst.msk [vmem:[%s14961_s9 + $0xc] sm:$0x3] %vm7580_vm6, %v10583_v50  ;;  %v10577_v37 = vpop.permute.xlu0 %10576  ;;  %v11093_v51 = vld [vmem:[%s14958_s6 + $0x190] sm:$0xff]  }
 0x3ba   :  { %v10579_v34 = vunpack.i.h.bf16 %v10577_v37  ;;  %v10578_v14 = vunpack.i.l.bf16 %v10577_v37  ;;  %v10592_v4 = vpop.permute.xlu1 %10591  ;;  %v11095_v37 = vld [vmem:[%s14958_s6 + $0x118] sm:$0xff]  }
 0x3bb   :  { %v10594_v63 = vunpack.i.h.bf16 %v10592_v4  ;;  %v10593_v6 = vunpack.i.l.bf16 %v10592_v4 }
 0x3bc   :  { %7768 = vst.msk [vmem:[%s14961_s9 + $0xa] sm:$0x3] %vm7580_vm6, %v10579_v34  ;;  %7731 = vst.msk [vmem:[%s14961_s9 + $0x8] sm:$0x3] %vm7580_vm6, %v10578_v14  ;;  %v11096_v34 = vld [vmem:[%s14958_s6 + $0x1d8] sm:$0xff]  }
 0x3bd   :  { %7817 = vst.msk [vmem:[%s14961_s9 + $0xc] sm:$0x3] %vm7593_vm7, %v10593_v6  ;;  %7854 = vst.msk [vmem:[%s14961_s9 + $0xe] sm:$0x3] %vm7593_vm7, %v10594_v63  ;;  %v10587_v52 = vpop.permute.xlu0 %10586  ;;  %v11099_v63 = vld [vmem:[%s14958_s6 + $0x160] sm:$0xff]  }
 0x3be   :  { %v10589_v29 = vunpack.i.h.bf16 %v10587_v52  ;;  %v10588_v45 = vunpack.i.l.bf16 %v10587_v52  ;;  %v10602_v42 = vpop.permute.xlu1 %10601 }
 0x3bf   :  { %v10604_v49 = vunpack.i.h.bf16 %v10602_v42  ;;  %v10603_v13 = vunpack.i.l.bf16 %v10602_v42  ;;  %v14446_v58 = vld [vmem:[%s14961_s9] sm:$0xff] }
 0x3c0   :  { %7743 = vst.msk [vmem:[%s14961_s9 + $0x8] sm:$0x3] %vm7593_vm7, %v10588_v45  ;;  %7780 = vst.msk [vmem:[%s14961_s9 + $0xa] sm:$0x3] %vm7593_vm7, %v10589_v29  ;;  %v8178_v16 = vrot.slane %v14446_v58, %v13819_v24  ;;  %v8171_v35 = vcombine.high %v14446_v58, %v14446_v58 }
 0x3c1   :  { %7829 = vst.msk [vmem:[%s14961_s9 + $0xc] sm:$0x3] %vm7606_vm8, %v10603_v13  ;;  %7866 = vst.msk [vmem:[%s14961_s9 + $0xe] sm:$0x3] %vm7606_vm8, %v10604_v49  ;;  %v10597_v22 = vpop.permute.xlu0 %10596  ;;  %v11098_v13 = vld [vmem:[%s14958_s6 + $0x198] sm:$0xff]  }
 0x3c2   :  { %v10599_v31 = vunpack.i.h.bf16 %v10597_v22  ;;  %v10598_v21 = vunpack.i.l.bf16 %v10597_v22  ;;  %v10612_v33 = vpop.permute.xlu1 %10611  ;;  %v8186_v18 = vcombine.high %v8178_v16, %v8178_v16  ;;  %v8185_v28 = vrot.slane %v8171_v35, %v13819_v24  ;;  %v11101_v35 = vld [vmem:[%s14958_s6 + $0x1e0] sm:$0xff]  }
 0x3c3   :  { %v10614_v7 = vunpack.i.h.bf16 %v10612_v33  ;;  %v10613_v47 = vunpack.i.l.bf16 %v10612_v33  ;;  %v8255_v62 = vpack.c.bf16 %v8178_v16, %v8178_v16  ;;  %v11100_v16 = vld [vmem:[%s14958_s6 + $0x120] sm:$0xff]  }
 0x3c4   :  { %7755 = vst.msk [vmem:[%s14961_s9 + $0x8] sm:$0x3] %vm7606_vm8, %v10598_v21  ;;  %7792 = vst.msk [vmem:[%s14961_s9 + $0xa] sm:$0x3] %vm7606_vm8, %v10599_v31  ;;  %v8256_v25 = vpack.c.bf16 %v8186_v18, %v8186_v18  ;;  %v8187_v36 = vcombine.high %v8185_v28, %v8185_v28  ;;  %v8257_v8 = vpack.c.bf16 %v8185_v28, %v8185_v28  ;;  %v11103_v31 = vld [vmem:[%s14958_s6 + $0x168] sm:$0xff]   ;;  %v11102_v28 = vld [vmem:[%s14958_s6 + $0x1a0] sm:$0xff]  }
 0x3c5   :  { %7990 = vst.msk [vmem:[%s14961_s9 + $0x16] sm:$0x3] %vm7580_vm6, %v10614_v7  ;;  %7953 = vst.msk [vmem:[%s14961_s9 + $0x14] sm:$0x3] %vm7580_vm6, %v10613_v47  ;;  %v10607_v59 = vpop.permute.xlu0 %10606 }
 0x3c6   :  { %v10609_v48 = vunpack.i.h.bf16 %v10607_v59  ;;  %v10608_v41 = vunpack.i.l.bf16 %v10607_v59  ;;  %9327 = vmatprep.mubr.bf16.mxu0 %v8256_v25  ;;  %v10622_v23 = vpop.permute.xlu1 %10621  ;;  %v8258_v38 = vpack.c.bf16 %v8187_v36, %v8187_v36  ;;  %v11104_v25 = vld [vmem:[%s14958_s6 + $0x128] sm:$0xff]  }
 0x3c7   :  { %9328 = vmatmul.mubr.bf16.vlgmr.msra.gmra.mrb[128].mxu0 %v8255_v62  ;;  %v10624_v11 = vunpack.i.h.bf16 %v10622_v23  ;;  %v10623_v0 = vunpack.i.l.bf16 %v10622_v23  ;;  %v11107_v62 = vld [vmem:[%s14958_s6 + $0x170] sm:$0xff]  }
 0x3c8   :  { %7916 = vst.msk [vmem:[%s14961_s9 + $0x12] sm:$0x3] %vm7580_vm6, %v10609_v48  ;;  %7879 = vst.msk [vmem:[%s14961_s9 + $0x10] sm:$0x3] %vm7580_vm6, %v10608_v41  ;;  %10403 = vmatpush3.bf16.msra.mxu0 %v11082_v26  ;;  %9367 = vmatprep.mubr.bf16.mxu1 %v8258_v38  ;;  %v11105_v26 = vld [vmem:[%s14958_s6 + $0x1e8] sm:$0xff]   ;;  %v11108_v23 = vld [vmem:[%s14958_s6 + $0x130] sm:$0xff]  }
 0x3c9   :  { %7965 = vst.msk [vmem:[%s14961_s9 + $0x14] sm:$0x3] %vm7593_vm7, %v10623_v0  ;;  %8002 = vst.msk [vmem:[%s14961_s9 + $0x16] sm:$0x3] %vm7593_vm7, %v10624_v11  ;;  %v10617_v39 = vpop.permute.xlu0 %10616  ;;  %10404 = vmatprep.subr.bf16.mxu0 %v11086_v55  ;;  %9368 = vmatmul.mubr.bf16.vlgmr.msra.gmra.mrb[128].mxu1 %v8257_v8  ;;  %v11106_v41 = vld [vmem:[%s14958_s6 + $0x1a8] sm:$0xff]   ;;  %v11109_v38 = vld [vmem:[%s14958_s6 + $0x1f0] sm:$0xff]  }
 0x3ca   :  { %v10619_v10 = vunpack.i.h.bf16 %v10617_v39  ;;  %v10618_v12 = vunpack.i.l.bf16 %v10617_v39  ;;  %v10632_v40 = vpop.permute.xlu1 %10631  ;;  %10425 = vmatpush3.bf16.msra.mxu1 %v11085_v1  ;;  %v11111_v11 = vld [vmem:[%s14958_s6 + $0x178] sm:$0xff]   ;;  %v11110_v8 = vld [vmem:[%s14958_s6 + $0x1b0] sm:$0xff]   ;;  %v11115_v39 = vld [vmem:[%s14958_s6 + $0x240] sm:$0xff]  }
 0x3cb   :  { %v10634_v44 = vunpack.i.h.bf16 %v10632_v40  ;;  %v10633_v30 = vunpack.i.l.bf16 %v10632_v40  ;;  %v14525_v46 = vld [vmem:[%s14961_s9 + $0x8] sm:$0xff]  ;;  %10426 = vmatprep.subr.bf16.mxu1 %v11088_v3  ;;  %v11113_v3 = vld [vmem:[%s14958_s6 + $0x1f8] sm:$0xff]   ;;  %v11116_v40 = vld [vmem:[%s14958_s6 + $0x200] sm:$0xff]  }
 0x3cc   :  { %7891 = vst.msk [vmem:[%s14961_s9 + $0x10] sm:$0x3] %vm7593_vm7, %v10618_v12  ;;  %7928 = vst.msk [vmem:[%s14961_s9 + $0x12] sm:$0x3] %vm7593_vm7, %v10619_v10  ;;  %10405 = vmatpush3.bf16.msra.mxu0 %v11087_v9  ;;  %v14543_v60 = vrot.slane %v14525_v46, %v13819_v24  ;;  %v8188_v20 = vcombine.high %v14525_v46, %v14525_v46  ;;  %v11112_v9 = vld [vmem:[%s14958_s6 + $0x138] sm:$0xff]  }
 0x3cd   :  { %7977 = vst.msk [vmem:[%s14961_s9 + $0x14] sm:$0x3] %vm7606_vm8, %v10633_v30  ;;  %8014 = vst.msk [vmem:[%s14961_s9 + $0x16] sm:$0x3] %vm7606_vm8, %v10634_v44  ;;  %v10627_v43 = vpop.permute.xlu0 %10626  ;;  %10406 = vmatprep.subr.bf16.mxu0 %v11090_v56  ;;  %v11114_v12 = vld [vmem:[%s14958_s6 + $0x1b8] sm:$0xff]   ;;  %v11117_v30 = vld [vmem:[%s14958_s6 + $0x2c0] sm:$0xff]  }
 0x3ce   :  { %v10629_v19 = vunpack.i.h.bf16 %v10627_v43  ;;  %v10628_v17 = vunpack.i.l.bf16 %v10627_v43  ;;  %v10642_v27 = vpop.permute.xlu1 %10641  ;;  %v8203_v32 = vcombine.high %v14543_v60, %v14543_v60  ;;  %v14561_v15 = vrot.slane %v8188_v20, %v13819_v24  ;;  %10427 = vmatpush3.bf16.msra.mxu1 %v11089_v2  ;;  %v11118_v20 = vld [vmem:[%s14958_s6 + $0x280] sm:$0xff]   ;;  %v11121_v43 = vld [vmem:[%s14958_s6 + $0x208] sm:$0xff]  }
 0x3cf   :  { %v10644_v54 = vunpack.i.h.bf16 %v10642_v27  ;;  %v10643_v57 = vunpack.i.l.bf16 %v10642_v27  ;;  %10428 = vmatprep.subr.bf16.mxu1 %v11092_v61  ;;  %v8259_v44 = vpack.c.bf16 %v14543_v60, %v14543_v60  ;;  %v11123_v27 = vld [vmem:[%s14958_s6 + $0x288] sm:$0xff]  }
 0x3d0   :  { %7903 = vst.msk [vmem:[%s14961_s9 + $0x10] sm:$0x3] %vm7606_vm8, %v10628_v17  ;;  %7940 = vst.msk [vmem:[%s14961_s9 + $0x12] sm:$0x3] %vm7606_vm8, %v10629_v19  ;;  %10407 = vmatpush3.bf16.msra.mxu0 %v11091_v5  ;;  %v8260_v50 = vpack.c.bf16 %v8203_v32, %v8203_v32  ;;  %v8204_v14 = vcombine.high %v14561_v15, %v14561_v15  ;;  %v11120_v5 = vld [vmem:[%s14958_s6 + $0x248] sm:$0xff]   ;;  %v8261_v60 = vpack.c.bf16 %v14561_v15, %v14561_v15  ;;  %v11124_v17 = vld [vmem:[%s14958_s6 + $0x250] sm:$0xff]  }
 0x3d1   :  { %8138 = vst.msk [vmem:[%s14961_s9 + $0x1e] sm:$0x3] %vm7580_vm6, %v10644_v54  ;;  %8101 = vst.msk [vmem:[%s14961_s9 + $0x1c] sm:$0x3] %vm7580_vm6, %v10643_v57  ;;  %v10637_v4 = vpop.permute.xlu0 %10636  ;;  %10408 = vmatprep.subr.bf16.mxu0 %v11094_v53  ;;  %v11122_v53 = vld [vmem:[%s14958_s6 + $0x2c8] sm:$0xff]   ;;  %v11125_v32 = vld [vmem:[%s14958_s6 + $0x210] sm:$0xff]  }
 0x3d2   :  { %v10639_v6 = vunpack.i.h.bf16 %v10637_v4  ;;  %v10638_v52 = vunpack.i.l.bf16 %v10637_v4  ;;  %9407 = vmatprep.mubr.bf16.mxu0 %v8260_v50  ;;  %v8262_v29 = vpack.c.bf16 %v8204_v14, %v8204_v14  ;;  %v10652_v45 = vpop.permute.xlu1 %10651  ;;  %10429 = vmatpush3.bf16.msra.mxu1 %v11093_v51  ;;  %v11126_v15 = vld [vmem:[%s14958_s6 + $0x2d0] sm:$0xff]   ;;  %v11128_v54 = vld [vmem:[%s14958_s6 + $0x258] sm:$0xff]   ;;  %v11133_v14 = vld [vmem:[%s14958_s6 + $0x220] sm:$0xff]  }
 0x3d3   :  { %v10654_v42 = vunpack.i.h.bf16 %v10652_v45  ;;  %v10653_v49 = vunpack.i.l.bf16 %v10652_v45  ;;  %10430 = vmatprep.subr.bf16.mxu1 %v11096_v34  ;;  %v11127_v57 = vld [vmem:[%s14958_s6 + $0x290] sm:$0xff]   ;;  %v11129_v51 = vld [vmem:[%s14958_s6 + $0x218] sm:$0xff]   ;;  %v11134_v4 = vld [vmem:[%s14958_s6 + $0x2e0] sm:$0xff]  }
 0x3d4   :  { %8064 = vst.msk [vmem:[%s14961_s9 + $0x1a] sm:$0x3] %vm7580_vm6, %v10639_v6  ;;  %8027 = vst.msk [vmem:[%s14961_s9 + $0x18] sm:$0x3] %vm7580_vm6, %v10638_v52  ;;  %10409 = vmatpush3.bf16.msra.mxu0 %v11095_v37  ;;  %9447 = vmatprep.mubr.bf16.mxu1 %v8262_v29  ;;  %v11130_v50 = vld [vmem:[%s14958_s6 + $0x2d8] sm:$0xff]   ;;  %v11132_v37 = vld [vmem:[%s14958_s6 + $0x260] sm:$0xff]  }
 0x3d5   :  { %8113 = vst.msk [vmem:[%s14961_s9 + $0x1c] sm:$0x3] %vm7593_vm7, %v10653_v49  ;;  %8150 = vst.msk [vmem:[%s14961_s9 + $0x1e] sm:$0x3] %vm7593_vm7, %v10654_v42  ;;  %v10647_v22 = vpop.permute.xlu0 %10646  ;;  %10410 = vmatprep.subr.bf16.mxu0 %v11099_v63  ;;  %v11131_v34 = vld [vmem:[%s14958_s6 + $0x298] sm:$0xff]   ;;  %v11136_v63 = vld [vmem:[%s14958_s6 + $0x268] sm:$0xff]  }
 0x3d6   :  { %v10649_v21 = vunpack.i.h.bf16 %v10647_v22  ;;  %v10648_v33 = vunpack.i.l.bf16 %v10647_v22  ;;  %v10662_v18 = vpop.permute.xlu1 %10661  ;;  %10431 = vmatpush3.bf16.msra.mxu1 %v11098_v13  ;;  %v11135_v6 = vld [vmem:[%s14958_s6 + $0x2a0] sm:$0xff]   ;;  %v11137_v52 = vld [vmem:[%s14958_s6 + $0x228] sm:$0xff]   ;;  %v11140_v45 = vld [vmem:[%s14958_s6 + $0x270] sm:$0xff]  }
 0x3d7   :  { %v10664_v7 = vunpack.i.h.bf16 %v10662_v18  ;;  %v10663_v47 = vunpack.i.l.bf16 %v10662_v18  ;;  %10432 = vmatprep.subr.bf16.mxu1 %v11101_v35  ;;  %v14652_v48 = vld [vmem:[%s14961_s9 + $0x10] sm:$0xff]  ;;  %v11138_v29 = vld [vmem:[%s14958_s6 + $0x2e8] sm:$0xff]   ;;  %v11144_v35 = vld [vmem:[%s14958_s6 + $0x278] sm:$0xff]  }
 0x3d8   :  { %8039 = vst.msk [vmem:[%s14961_s9 + $0x18] sm:$0x3] %vm7593_vm7, %v10648_v33  ;;  %8076 = vst.msk [vmem:[%s14961_s9 + $0x1a] sm:$0x3] %vm7593_vm7, %v10649_v21  ;;  %10411 = vmatpush3.bf16.msra.mxu0 %v11100_v16  ;;  %v8205_v0 = vcombine.high %v14652_v48, %v14652_v48  ;;  %v14678_v1 = vrot.slane %v14652_v48, %v13819_v24  ;;  %v11139_v49 = vld [vmem:[%s14958_s6 + $0x2a8] sm:$0xff]   ;;  %v11141_v13 = vld [vmem:[%s14958_s6 + $0x230] sm:$0xff]  }
 0x3d9   :  { %8125 = vst.msk [vmem:[%s14961_s9 + $0x1c] sm:$0x3] %vm7606_vm8, %v10663_v47  ;;  %8162 = vst.msk [vmem:[%s14961_s9 + $0x1e] sm:$0x3] %vm7606_vm8, %v10664_v7  ;;  %v10657_v59 = vpop.permute.xlu0 %10656  ;;  %10412 = vmatprep.subr.bf16.mxu0 %v11103_v31  ;;  %v11142_v16 = vld [vmem:[%s14958_s6 + $0x2f0] sm:$0xff]   ;;  %v11145_v33 = vld [vmem:[%s14958_s6 + $0x238] sm:$0xff]  }
 0x3da   :  { %v10659_v36 = vunpack.i.h.bf16 %v10657_v59  ;;  %v10658_v55 = vunpack.i.l.bf16 %v10657_v59  ;;  %10433 = vmatpush3.bf16.msra.mxu1 %v11102_v28  ;;  %v14693_v56 = vrot.slane %v8205_v0, %v13819_v24  ;;  %v8220_v10 = vcombine.high %v14678_v1, %v14678_v1  ;;  %v11143_v21 = vld [vmem:[%s14958_s6 + $0x2b0] sm:$0xff]   ;;  %v11146_v18 = vld [vmem:[%s14958_s6 + $0x2f8] sm:$0xff]   ;;  %v11148_v7 = vld [vmem:[%s14958_s6 + $0x340] sm:$0xff]  }
 0x3db   :  { %10434 = vmatprep.subr.bf16.mxu1 %v11105_v26  ;;  %v11149_v26 = vld [vmem:[%s14958_s6 + $0x300] sm:$0xff]   ;;  %v8263_v59 = vpack.c.bf16 %v14678_v1, %v14678_v1  ;;  %v11157_v1 = vld [vmem:[%s14958_s6 + $0x350] sm:$0xff]  }
 0x3dc   :  { %8051 = vst.msk [vmem:[%s14961_s9 + $0x18] sm:$0x3] %vm7606_vm8, %v10658_v55  ;;  %8088 = vst.msk [vmem:[%s14961_s9 + $0x1a] sm:$0x3] %vm7606_vm8, %v10659_v36  ;;  %10413 = vmatpush3.bf16.msra.mxu0 %v11104_v25  ;;  %v8221_v2 = vcombine.high %v14693_v56, %v14693_v56  ;;  %v8264_v61 = vpack.c.bf16 %v8220_v10, %v8220_v10  ;;  %v11147_v25 = vld [vmem:[%s14958_s6 + $0x2b8] sm:$0xff]   ;;  %v11153_v36 = vld [vmem:[%s14958_s6 + $0x348] sm:$0xff]  }
 0x3dd   :  { %10414 = vmatprep.subr.bf16.mxu0 %v11107_v62  ;;  %v11162_v10 = vld [vmem:[%s14958_s6 + $0x318] sm:$0xff]  }
 0x3de   :  { %10435 = vmatpush3.bf16.msra.mxu1 %v11106_v41  ;;  %v8266_v19 = vpack.c.bf16 %v8221_v2, %v8221_v2  ;;  %v11151_v41 = vld [vmem:[%s14958_s6 + $0x380] sm:$0xff]  }
 0x3df   :  { %10436 = vmatprep.subr.bf16.mxu1 %v11109_v38  ;;  %v11154_v38 = vld [vmem:[%s14958_s6 + $0x308] sm:$0xff]   ;;  %v11167_v2 = vld [vmem:[%s14958_s6 + $0x3e0] sm:$0xff]  }
 0x3e0   :  { %10415 = vmatpush3.bf16.msra.mxu0 %v11108_v23  ;;  %v8265_v23 = vpack.c.bf16 %v14693_v56, %v14693_v56  ;;  %v11160_v56 = vld [vmem:[%s14958_s6 + $0x390] sm:$0xff]  }
 0x3e1   :  { %10416 = vmatprep.subr.bf16.mxu0 %v11111_v11  ;;  %v11155_v11 = vld [vmem:[%s14958_s6 + $0x3c8] sm:$0xff]  }
 0x3e2   :  { %10437 = vmatpush3.bf16.msra.mxu1 %v11110_v8  ;;  %v11156_v8 = vld [vmem:[%s14958_s6 + $0x388] sm:$0xff]  }
 0x3e3   :  { %10438 = vmatprep.subr.bf16.mxu1 %v11113_v3  ;;  %v14778_v42 = vld [vmem:[%s14961_s9 + $0x18] sm:$0xff]  ;;  %v11159_v3 = vld [vmem:[%s14958_s6 + $0x3d0] sm:$0xff]  }
 0x3e4   :  { %10417 = vmatpush3.bf16.msra.mxu0 %v11112_v9  ;;  %v8222_v22 = vcombine.high %v14778_v42, %v14778_v42  ;;  %v14796_v31 = vrot.slane %v14778_v42, %v13819_v24  ;;  %v11158_v9 = vld [vmem:[%s14958_s6 + $0x310] sm:$0xff]  }
 0x3e5   :  { %10446 = vmatprep.subr.bf16.mxu0 %v11115_v39  ;;  %v11161_v39 = vld [vmem:[%s14958_s6 + $0x358] sm:$0xff]  }
 0x3e6   :  { %10439 = vmatpush3.bf16.msra.mxu1 %v11114_v12  ;;  %v14811_v47 = vrot.slane %v8222_v22, %v13819_v24  ;;  %v8237_v28 = vcombine.high %v14796_v31, %v14796_v31  ;;  %v11150_v24 = vld [vmem:[%s14958_s6 + $0x3c0] sm:$0xff]   ;;  %v11163_v12 = vld [vmem:[%s14958_s6 + $0x3d8] sm:$0xff]  }
 0x3e7   :  { %9408 = vmatmul.mubr.bf16.vlgmr.msra.gmra.mrb[132].mxu0 %v8259_v44  ;;  %10468 = vmatprep.subr.bf16.mxu1 %v11117_v30  ;;  %v11164_v44 = vld [vmem:[%s14958_s6 + $0x398] sm:$0xff]   ;;  %v11166_v30 = vld [vmem:[%s14958_s6 + $0x320] sm:$0xff]  }
 0x3e8   :  { %10447 = vmatpush3.bf16.msra.mxu0 %v11116_v40  ;;  %9487 = vmatprep.mubr.bf16.mxu0 %v8264_v61  ;;  %v8238_v62 = vcombine.high %v14811_v47, %v14811_v47  ;;  %v8268_v55 = vpack.c.bf16 %v8237_v28, %v8237_v28  ;;  %v11165_v40 = vld [vmem:[%s14958_s6 + $0x360] sm:$0xff]  }
 0x3e9   :  { %10448 = vmatprep.subr.bf16.mxu0 %v11120_v5  ;;  %9448 = vmatmul.mubr.bf16.vlgmr.msra.gmra.mrb[132].mxu1 %v8261_v60  ;;  %v11169_v5 = vld [vmem:[%s14958_s6 + $0x368] sm:$0xff]   ;;  %v11168_v61 = vld [vmem:[%s14958_s6 + $0x3a0] sm:$0xff]  }
 0x3ea   :  { %10469 = vmatpush3.bf16.msra.mxu1 %v11118_v20  ;;  %9527 = vmatprep.mubr.bf16.mxu1 %v8266_v19  ;;  %v8270_v0 = vpack.c.bf16 %v8238_v62, %v8238_v62  ;;  %v11170_v20 = vld [vmem:[%s14958_s6 + $0x328] sm:$0xff]   ;;  %v11174_v19 = vld [vmem:[%s14958_s6 + $0x330] sm:$0xff]  }
 0x3eb   :  { %10470 = vmatprep.subr.bf16.mxu1 %v11122_v53  ;;  %v11171_v60 = vld [vmem:[%s14958_s6 + $0x3e8] sm:$0xff]  }
 0x3ec   :  { %10449 = vmatpush3.bf16.msra.mxu0 %v11121_v43  ;;  %v11173_v43 = vld [vmem:[%s14958_s6 + $0x370] sm:$0xff]   ;;  %v11172_v53 = vld [vmem:[%s14958_s6 + $0x3a8] sm:$0xff]  }
 0x3ed   :  { %10450 = vmatprep.subr.bf16.mxu0 %v11124_v17  ;;  %v11175_v17 = vld [vmem:[%s14958_s6 + $0x3f0] sm:$0xff]  }
 0x3ee   :  { %10471 = vmatpush3.bf16.msra.mxu1 %v11123_v27  ;;  %v11177_v27 = vld [vmem:[%s14958_s6 + $0x378] sm:$0xff]  }
 0x3ef   :  { %10472 = vmatprep.subr.bf16.mxu1 %v11126_v15  ;;  %v11178_v15 = vld [vmem:[%s14958_s6 + $0x338] sm:$0xff]  }
 0x3f0   :  { %10451 = vmatpush3.bf16.msra.mxu0 %v11125_v32  ;;  %v11176_v32 = vld [vmem:[%s14958_s6 + $0x3b0] sm:$0xff]  }
 0x3f1   :  { %10452 = vmatprep.subr.bf16.mxu0 %v11128_v54  ;;  %v11179_v54 = vld [vmem:[%s14958_s6 + $0x3f8] sm:$0xff]  }
 0x3f2   :  { %10473 = vmatpush3.bf16.msra.mxu1 %v11127_v57  ;;  %v11180_v57 = vld [vmem:[%s14958_s6 + $0x3b8] sm:$0xff]  }
 0x3f3   :  { %10474 = vmatprep.subr.bf16.mxu1 %v11130_v50  ;;  %v8269_v50 = vpack.c.bf16 %v14811_v47, %v14811_v47 }
 0x3f4   :  { %10453 = vmatpush3.bf16.msra.mxu0 %v11129_v51  ;;  %v8267_v51 = vpack.c.bf16 %v14796_v31, %v14796_v31 }
 0x3f5   :  { %10454 = vmatprep.subr.bf16.mxu0 %v11132_v37 }
 0x3f6   :  { %10475 = vmatpush3.bf16.msra.mxu1 %v11131_v34 }
 0x3f7   :  { %10476 = vmatprep.subr.bf16.mxu1 %v11134_v4 }
 0x3f8   :  { %10455 = vmatpush3.bf16.msra.mxu0 %v11133_v14 }
 0x3f9   :  { %10456 = vmatprep.subr.bf16.mxu0 %v11136_v63 }
 0x3fa   :  { %10477 = vmatpush3.bf16.msra.mxu1 %v11135_v6 }
 0x3fb   :  { %10478 = vmatprep.subr.bf16.mxu1 %v11138_v29 }
 0x3fc   :  { %10457 = vmatpush3.bf16.msra.mxu0 %v11137_v52 }
 0x3fd   :  { %10458 = vmatprep.subr.bf16.mxu0 %v11140_v45 }
 0x3fe   :  { %10479 = vmatpush3.bf16.msra.mxu1 %v11139_v49 }
 0x3ff   :  { %10480 = vmatprep.subr.bf16.mxu1 %v11142_v16 }
 0x400   :  { %10459 = vmatpush3.bf16.msra.mxu0 %v11141_v13 }
 0x401   :  { %10460 = vmatprep.subr.bf16.mxu0 %v11144_v35 }
 0x402   :  { %10481 = vmatpush3.bf16.msra.mxu1 %v11143_v21 }
 0x403   :  { %10482 = vmatprep.subr.bf16.mxu1 %v11146_v18 }
 0x404   :  { %10461 = vmatpush3.bf16.msra.mxu0 %v11145_v33 }
 0x405   :  { %10490 = vmatprep.subr.bf16.mxu0 %v11148_v7 }
 0x406   :  { %10483 = vmatpush3.bf16.msra.mxu1 %v11147_v25 }
 0x407   :  { %9488 = vmatmul.mubr.bf16.vlgmr.msra.gmra.mrb[136].mxu0 %v8263_v59  ;;  %10512 = vmatprep.subr.bf16.mxu1 %v11150_v24 }
 0x408   :  { %10491 = vmatpush3.bf16.msra.mxu0 %v11149_v26  ;;  %9567 = vmatprep.mubr.bf16.mxu0 %v8268_v55 }
 0x409   :  { %10492 = vmatprep.subr.bf16.mxu0 %v11153_v36  ;;  %9528 = vmatmul.mubr.bf16.vlgmr.msra.gmra.mrb[136].mxu1 %v8265_v23 }
 0x40a   :  { %10513 = vmatpush3.bf16.msra.mxu1 %v11151_v41  ;;  %9607 = vmatprep.mubr.bf16.mxu1 %v8270_v0 }
 0x40b   :  { %10514 = vmatprep.subr.bf16.mxu1 %v11155_v11 }
 0x40c   :  { %10493 = vmatpush3.bf16.msra.mxu0 %v11154_v38 }
 0x40d   :  { %10494 = vmatprep.subr.bf16.mxu0 %v11157_v1 }
 0x40e   :  { %10515 = vmatpush3.bf16.msra.mxu1 %v11156_v8 }
 0x40f   :  { %10516 = vmatprep.subr.bf16.mxu1 %v11159_v3 }
 0x410   :  { %10495 = vmatpush3.bf16.msra.mxu0 %v11158_v9 }
 0x411   :  { %10496 = vmatprep.subr.bf16.mxu0 %v11161_v39 }
 0x412   :  { %10517 = vmatpush3.bf16.msra.mxu1 %v11160_v56 }
 0x413   :  { %10518 = vmatprep.subr.bf16.mxu1 %v11163_v12 }
 0x414   :  { %10497 = vmatpush3.bf16.msra.mxu0 %v11162_v10 }
 0x415   :  { %10498 = vmatprep.subr.bf16.mxu0 %v11165_v40 }
 0x416   :  { %10519 = vmatpush3.bf16.msra.mxu1 %v11164_v44 }
 0x417   :  { %10520 = vmatprep.subr.bf16.mxu1 %v11167_v2 }
 0x418   :  { %10499 = vmatpush3.bf16.msra.mxu0 %v11166_v30 }
 0x419   :  { %10500 = vmatprep.subr.bf16.mxu0 %v11169_v5 }
 0x41a   :  { %10521 = vmatpush3.bf16.msra.mxu1 %v11168_v61 }
 0x41b   :  { %10522 = vmatprep.subr.bf16.mxu1 %v11171_v60 }
 0x41c   :  { %10501 = vmatpush3.bf16.msra.mxu0 %v11170_v20 }
 0x41d   :  { %10502 = vmatprep.subr.bf16.mxu0 %v11173_v43 }
 0x41e   :  { %10523 = vmatpush3.bf16.msra.mxu1 %v11172_v53 }
 0x41f   :  { %10524 = vmatprep.subr.bf16.mxu1 %v11175_v17 }
 0x420   :  { %10503 = vmatpush3.bf16.msra.mxu0 %v11174_v19 }
 0x421   :  { %10504 = vmatprep.subr.bf16.mxu0 %v11177_v27 }
 0x422   :  { %10525 = vmatpush3.bf16.msra.mxu1 %v11176_v32 }
 0x423   :  { %10526 = vmatprep.subr.bf16.mxu1 %v11179_v54 }
 0x424   :  { %10505 = vmatpush3.bf16.msra.mxu0 %v11178_v15  ;;  %v10357_v15 = vld [vmem:[%s14959_s7] ss:$0 sm:$0xff] }
 0x426   :  { %10527 = vmatpush3.bf16.msra.mxu1 %v11180_v57 }
 0x427   :  { %9568 = vmatmul.mubr.bf16.vlgmr.msra.gmra.mrb[140].mxu0 %v8267_v51 }
 0x429   :  { %9608 = vmatmul.mubr.bf16.vlgmr.msra.gmra.mrb[140].mxu1 %v8269_v50 }
 0x444   :  { %v7431_v37 = vpop.xlane.xlu0 %7430 }
 0x445   :  { %v7432_v34 = vrot.slane %v7431_v37, 4 }
 0x447   :  { %v7433_v14 = vadd.f32 %v7432_v34, %v7431_v37 }
 0x449   :  { %v7434_v4 = vrot.slane %v7433_v14, 2 }
 0x44b   :  { %v7435_v63 = vadd.f32 %v7434_v4, %v7433_v14 }
 0x44d   :  { %v7436_v6 = vrot.slane %v7435_v63, 1 }
 0x44f   :  { %v7437_v52 = vadd.f32 %v7436_v6, %v7435_v63 }
 0x451   :  { %10536 = vpush %v7437_v52 }
 0x482   :  { %s10537_s6 = spop %10536 }
 0x483   :  { %s7439_s2 = smul.f32 0.00024414063, %s10537_s6 }
 0x485   :  { %v9615_v29 = vstv %s7439_s2 }
 0x486   :  { %v9627_v45 = vmul.f32 %v9615_v29, %v14446_v58  ;;  %v9628_v49 = vmul.f32 %v9615_v29, %v14525_v46  ;;  %v9629_v13 = vmul.f32 %v9615_v29, %v14652_v48  ;;  %v9630_v16 = vmul.f32 %v9615_v29, %v14778_v42 }
 0x488   :  { %9631 = vst [vmem:[%s14961_s9] sm:$0xff] %v9627_v45  ;;  %9632 = vst [vmem:[%s14961_s9 + $0x8] sm:$0xff] %v9628_v49 }
 0x489   :  { %9633 = vst [vmem:[%s14961_s9 + $0x10] sm:$0xff] %v9629_v13  ;;  %9634 = vst [vmem:[%s14961_s9 + $0x18] sm:$0xff] %v9630_v16 }
 0x49a   :  { %v10374_v58 = vpop.f32.mrb[128].mxu0 }
 0x49b   :  { %v10375_v46 = vpop.f32.mrb[129].mxu0 }
 0x49c   :  { %v10376_v48 = vadd.f32 %v10375_v46, %v10374_v58  ;;  %v10377_v42 = vpop.f32.mrb[130].mxu0  ;;  %v10396_v35 = vpop.f32.mrb[128].mxu1 }
 0x49d   :  { %v10378_v22 = vpop.f32.mrb[131].mxu0  ;;  %v10397_v31 = vpop.f32.mrb[129].mxu1 }
 0x49e   :  { %v10398_v21 = vadd.f32 %v10397_v31, %v10396_v35  ;;  %v10399_v33 = vpop.f32.mrb[130].mxu1 }
 0x49f   :  { %v10400_v18 = vpop.f32.mrb[131].mxu1 }
 0x4a0   :  { %v9370_v7 = vadd.f32 %v10398_v21, %v10376_v48 }
 0x4ba   :  { %v10418_v47 = vpop.f32.mrb[132].mxu0 }
 0x4bb   :  { %v10419_v28 = vpop.f32.mrb[133].mxu0 }
 0x4bc   :  { %v10420_v25 = vadd.f32 %v10419_v28, %v10418_v47  ;;  %v10421_v26 = vpop.f32.mrb[134].mxu0  ;;  %v10440_v59 = vpop.f32.mrb[132].mxu1 }
 0x4bd   :  { %v10422_v24 = vpop.f32.mrb[135].mxu0  ;;  %v10441_v36 = vpop.f32.mrb[133].mxu1 }
 0x4be   :  { %v9410_v62 = vadd.f32 %v10420_v25, %v9370_v7  ;;  %v10442_v55 = vadd.f32 %v10441_v36, %v10440_v59  ;;  %v10443_v41 = vpop.f32.mrb[134].mxu1 }
 0x4bf   :  { %v10444_v23 = vpop.f32.mrb[135].mxu1 }
 0x4c0   :  { %v9450_v38 = vadd.f32 %v10442_v55, %v9410_v62 }
 0x4da   :  { %v10462_v11 = vpop.f32.mrb[136].mxu0 }
 0x4db   :  { %v10463_v0 = vpop.f32.mrb[137].mxu0 }
 0x4dc   :  { %v10464_v1 = vadd.f32 %v10463_v0, %v10462_v11  ;;  %v10465_v8 = vpop.f32.mrb[138].mxu0  ;;  %v10484_v9 = vpop.f32.mrb[136].mxu1 }
 0x4dd   :  { %v10466_v3 = vpop.f32.mrb[139].mxu0  ;;  %v10485_v56 = vpop.f32.mrb[137].mxu1 }
 0x4de   :  { %v9490_v39 = vadd.f32 %v10464_v1, %v9450_v38  ;;  %v10486_v10 = vadd.f32 %v10485_v56, %v10484_v9  ;;  %v10487_v12 = vpop.f32.mrb[138].mxu1 }
 0x4df   :  { %v10488_v40 = vpop.f32.mrb[139].mxu1 }
 0x4e0   :  { %v9530_v44 = vadd.f32 %v10486_v10, %v9490_v39 }
 0x4fa   :  { %v10506_v30 = vpop.f32.mrb[140].mxu0 }
 0x4fb   :  { %v10507_v2 = vpop.f32.mrb[141].mxu0 }
 0x4fc   :  { %v10508_v5 = vadd.f32 %v10507_v2, %v10506_v30  ;;  %v10509_v61 = vpop.f32.mrb[142].mxu0  ;;  %v10528_v20 = vpop.f32.mrb[140].mxu1 }
 0x4fd   :  { %v10510_v60 = vpop.f32.mrb[143].mxu0  ;;  %v10529_v53 = vpop.f32.mrb[141].mxu1 }
 0x4fe   :  { %v9570_v43 = vadd.f32 %v10508_v5, %v9530_v44  ;;  %v10530_v19 = vadd.f32 %v10529_v53, %v10528_v20  ;;  %v10531_v17 = vpop.f32.mrb[142].mxu1 }
 0x4ff   :  { %v10532_v27 = vpop.f32.mrb[143].mxu1 }
 0x500   :  { %v9610_v32 = vadd.f32 %v10530_v19, %v9570_v43 }
 0x502   :  { %v9616_v54 = vmul.f32 %v9615_v29, %v9610_v32 }
 0x504   :  { %v9624_v57 = vadd.f32 %v10357_v15, %v9616_v54 }
 0x506   :  { %9626 = vst.msk [vmem:[#allocation3] sm:$0x3] %vm9625_vm1, %v9624_v57 }
 0x507   :  { %11194 = shalt.err (!%p11191_p4)
}
 0x508   :  { %s11195_s26 = scalar_lea.hbm %s14960_s8, 32 }
 0x509   :  { %p11196_p5 = scmp.ne.s32.totalorder %s14960_s8, %s11195_s26  ;;  %p11199_p6 = scmp.lt.u32.totalorder %s11195_s26, %s14960_s8 }
 0x50b   :  { %p11201_p7 = pnand %p11199_p6, %p11196_p5 }
 0x50d   :  { %11204 = shalt.err (!%p11201_p7)
}
 0x50e   :  { %9644 = dma.vmem_to_hbm [thread:$0]  %s9642_s23, 32, %s14960_s8, [#allocation4]  }
 0x50f   :  { %11205 = dma.done.wait [#allocation4], 32  }
 0x510   :  { %11206 = vsyncadd [#allocation4], 4294967264 }
 0x511   :  { %9652 = vsyncpa [#allocation4], 1 }

</bundles_post_ra>
